<compile_context>
chip_gen: v7x
topology: tpu7x:2x2x1
jax: 0.10.0
libtpu: 0.0.40
codegen_flags: <defaults>
</compile_context>

<pallas_src>
import functools

import jax
import jax.numpy as jnp
from jax.experimental import pallas as pl
from jax.experimental.pallas import tpu as pltpu


def _conv3x3(src_ref, w_ref, bias_row, *, H, W, Cp, taps_per_mm):
    """3x3 'same' conv as K-fused MXU matmuls.

    src_ref : (H+2, W+2, Cp) zero-bordered VMEM scratch (mxu_dtype)
    w_ref   : (9*Cp, Cp)     weights, (dy, dx, cin)-major K, BN scale folded, mxu_dtype
    bias_row: (Cp,)          folded conv-bias + BN shift, f32
    taps_per_mm: 9 (single matmul) or 3 (one matmul per tap row)
    returns (H*W, Cp) float32
    """
    acc = None
    for g in range(9 // taps_per_mm):
        taps = []
        for t in range(taps_per_mm):
            dy, dx = divmod(g * taps_per_mm + t, 3)
            taps.append(src_ref[dy:dy + H, dx:dx + W, :])
        patch = jnp.concatenate(taps, axis=-1).reshape(H * W, taps_per_mm * Cp)
        k0 = g * taps_per_mm * Cp
        part = jnp.dot(patch, w_ref[k0:k0 + taps_per_mm * Cp, :],
                       preferred_element_type=jnp.float32)
        acc = part if acc is None else acc + part
    return acc + bias_row


def residual_block_kernel(x_ref, w1_ref, w2_ref, b1_ref, b2_ref, out_ref,
                          xpad_ref, mid_ref, *, H, W, Cp, mxu_dtype, taps_per_mm):
    """One batch element per grid step.

    x_ref   : (1, H, W, Cp)   unpadded NHWC input (channels padded to Cp), f32
    w*_ref  : (9*Cp, Cp)      conv weights, BN scale folded, mxu_dtype
    b*_ref  : (1, Cp)         folded conv-bias + BN shift, f32
    out_ref : (1, H, W, Cp)   lane-dense f32 output block
    xpad_ref, mid_ref : (H+2, W+2, Cp) mxu_dtype VMEM scratch with a zero border
    """
    # Re-zero the 4 halo strips of both scratches every step (a few thin
    # stores, ~(2H+2W+8)*Cp elements) so the kernel stays correct under
    # megacore "parallel" batch sharding.  The interior is fully rewritten
    # below, so only the border needs refreshing.
    zrow = jnp.zeros((1, W + 2, Cp), mxu_dtype)
    zcol = jnp.zeros((H + 2, 1, Cp), mxu_dtype)
    for ref in (xpad_ref, mid_ref):
        ref[0:1, :, :] = zrow
        ref[H + 1:H + 2, :, :] = zrow
        ref[:, 0:1, :] = zcol
        ref[:, W + 1:W + 2, :] = zcol

    # In-kernel spatial halo: write only the interior of the padded scratch,
    # already cast to the MXU feed dtype (no-op cast on the f32 path).
    xpad_ref[1:1 + H, 1:1 + W, :] = x_ref[0].astype(mxu_dtype)

    # ---- conv1 (+ folded bias/BN) + ReLU (f32 accumulation / elementwise) ----
    y1 = jnp.maximum(
        _conv3x3(xpad_ref, w1_ref, b1_ref[0], H=H, W=W, Cp=Cp,
                 taps_per_mm=taps_per_mm), 0.0)
    mid_ref[1:1 + H, 1:1 + W, :] = y1.reshape(H, W, Cp).astype(mxu_dtype)

    # ---- conv2 (+ folded bias/BN) ----
    y2 = _conv3x3(mid_ref, w2_ref, b2_ref[0], H=H, W=W, Cp=Cp,
                  taps_per_mm=taps_per_mm)

    # Skip connection straight from the f32 input block (free aligned view;
    # padded channels stay exactly zero), then final ReLU.
    out_ref[0] = jnp.maximum(y2.reshape(H, W, Cp) + x_ref[0], 0.0)


def residual_block(x_nchw, params, *, eps=1e-5, mxu_dtype=jnp.bfloat16,
                   vmem_limit_bytes=None):
    """ResidualBlock forward. Input / output are NCHW float32 (PyTorch convention).

    mxu_dtype=jnp.bfloat16 (default) feeds the MXU at full bf16 rate on all TPU
    generations; accumulation and elementwise math remain f32.  Use
    mxu_dtype=jnp.float32 for a bit-strict match against the f32 reference.
    BatchNorm uses inference (running-stat) semantics, as in PyTorch eval().
    """
    N, C, H, W = x_nchw.shape
    Cp = ((C + 127) // 128) * 128          # lane-dense channel width

    # NCHW -> NHWC and pad channels to Cp (one fused XLA copy).  The spatial
    # halo is built inside the kernel, not here.
    x = jnp.transpose(x_nchw, (0, 2, 3, 1)).astype(jnp.float32)
    x = jnp.pad(x, ((0, 0), (0, 0), (0, 0), (0, Cp - C)))

    # Fold conv bias + BatchNorm (running stats) into the weights / a bias:
    #   bn(conv(x)+b) = (s*w) . x + (s*(b - mean) + beta),  s = gamma/sqrt(var+eps)
    def prep(w_hwio, bias, g, beta, m, v):
        s = g / jnp.sqrt(v + eps)
        wsc = w_hwio * s[None, None, None, :]                        # scale C_out
        wp = jnp.zeros((3, 3, Cp, Cp), jnp.float32).at[:, :, :C, :C].set(wsc)
        wp = wp.reshape(9 * Cp, Cp).astype(mxu_dtype)                # (dy,dx,cin)-major K
        b = s * (bias - m) + beta
        bp = jnp.zeros((1, Cp), jnp.float32).at[0, :C].set(b)
        return wp, bp

    w1p, b1p = prep(params["w1"], params["bias1"], params["g1"],
                    params["beta1"], params["m1"], params["v1"])
    w2p, b2p = prep(params["w2"], params["bias2"], params["g2"],
                    params["beta2"], params["m2"], params["v2"])

    # Fuse all 9 taps onto K (single matmul per conv) only while the im2col
    # patch temp stays within a modest VMEM budget; otherwise fall back to
    # 3 row-fused matmuls.
    patch_bytes = H * W * 9 * Cp * jnp.dtype(mxu_dtype).itemsize
    taps_per_mm = 9 if patch_bytes <= (8 << 20) else 3

    kernel = functools.partial(residual_block_kernel, H=H, W=W, Cp=Cp,
                               mxu_dtype=mxu_dtype, taps_per_mm=taps_per_mm)

    out_padded = pl.pallas_call(
        kernel,
        out_shape=jax.ShapeDtypeStruct((N, H, W, Cp), jnp.float32),
        grid_spec=pltpu.PrefetchScalarGridSpec(
            num_scalar_prefetch=0,
            grid=(N,),
            in_specs=[
                pl.BlockSpec((1, H, W, Cp), lambda n: (n, 0, 0, 0)),
                pl.BlockSpec((9 * Cp, Cp), lambda n: (0, 0)),
                pl.BlockSpec((9 * Cp, Cp), lambda n: (0, 0)),
                pl.BlockSpec((1, Cp), lambda n: (0, 0)),
                pl.BlockSpec((1, Cp), lambda n: (0, 0)),
            ],
            out_specs=pl.BlockSpec((1, H, W, Cp), lambda n: (n, 0, 0, 0)),
            scratch_shapes=[
                pltpu.VMEM((H + 2, W + 2, Cp), mxu_dtype),   # zero-bordered input
                pltpu.VMEM((H + 2, W + 2, Cp), mxu_dtype),   # zero-bordered conv1 act
            ],
        ),
        # Halo border is re-zeroed every step, so the batch axis can be
        # megacore-sharded ("parallel"); raise vmem_limit_bytes for large H,W
        # on v6e (do not exceed 64 MiB physical on v7x).
        compiler_params=pltpu.CompilerParams(
            dimension_semantics=("parallel",),
            vmem_limit_bytes=vmem_limit_bytes),
    )(x, w1p, w2p, b1p, b2p)

    # drop channel padding, back to NCHW
    return jnp.transpose(out_padded[..., :C], (0, 3, 1, 2))


def residual_block_ref(x_nchw, params, *, eps=1e-5):
    """Pure-JAX reference (NCHW, same semantics) for a correctness check."""
    def conv(x, w_hwio, b):
        y = jax.lax.conv_general_dilated(
            x, w_hwio, window_strides=(1, 1), padding=((1, 1), (1, 1)),
            dimension_numbers=("NCHW", "HWIO", "NCHW"))
        return y + b[None, :, None, None]

    def bn(x, g, beta, m, v):
        g, beta, m, v = (t[None, :, None, None] for t in (g, beta, m, v))
        return g * (x - m) / jnp.sqrt(v + eps) + beta

    h = conv(x_nchw, params["w1"], params["bias1"])
    h = jnp.maximum(bn(h, params["g1"], params["beta1"], params["m1"], params["v1"]), 0.0)
    h = conv(h, params["w2"], params["bias2"])
    h = bn(h, params["g2"], params["beta2"], params["m2"], params["v2"])
    return jnp.maximum(h + x_nchw, 0.0)


if __name__ == "__main__":
    key = jax.random.PRNGKey(0)
    kx, kw1, kw2, kb1, kb2 = jax.random.split(key, 5)

    N, C, H, W = 2, 8, 16, 16
    x = jax.random.normal(kx, (N, C, H, W), jnp.float32)

    # deterministic parameter init (PyTorch-like uniform bound = 1/sqrt(fan_in))
    bound = 1.0 / (C * 3 * 3) ** 0.5
    params = dict(
        # conv weights stored HWIO (3, 3, C_in, C_out)
        w1=jax.random.uniform(kw1, (3, 3, C, C), jnp.float32, -bound, bound),
        bias1=jax.random.uniform(kb1, (C,), jnp.float32, -bound, bound),
        g1=jnp.ones((C,), jnp.float32), beta1=jnp.zeros((C,), jnp.float32),
        m1=jnp.zeros((C,), jnp.float32), v1=jnp.ones((C,), jnp.float32),
        w2=jax.random.uniform(kw2, (3, 3, C, C), jnp.float32, -bound, bound),
        bias2=jax.random.uniform(kb2, (C,), jnp.float32, -bound, bound),
        g2=jnp.ones((C,), jnp.float32), beta2=jnp.zeros((C,), jnp.float32),
        m2=jnp.zeros((C,), jnp.float32), v2=jnp.ones((C,), jnp.float32),
    )

    ref = residual_block_ref(x, params)

    # f32 MXU feed: strict check against the pure-JAX reference.
    out_f32 = residual_block(x, params, mxu_dtype=jnp.float32)
    jax.block_until_ready(out_f32)
    assert out_f32.shape == (N, C, H, W)
    assert jnp.allclose(out_f32, ref, rtol=1e-4, atol=1e-4), "f32 mismatch vs JAX reference"

    # default bf16 MXU feed: loose check (matmul operands are bf16, skip path stays f32).
    out_bf16 = residual_block(x, params)
    jax.block_until_ready(out_bf16)
    assert out_bf16.shape == (N, C, H, W)
    assert jnp.allclose(out_bf16, ref, rtol=1e-1, atol=1e-1), "bf16 mismatch vs JAX reference"

    print("KERNEL_OK")
</pallas_src>

<mosaic_0001>
module attributes {stable_mosaic.version = 11 : i64} {
  func.func @residual_block_kernel(%arg0: i32, %arg1: memref<1x16x16x128xf32, #tpu.memory_space<vmem>>, %arg2: memref<1152x128xf32, #tpu.memory_space<vmem>>, %arg3: memref<1152x128xf32, #tpu.memory_space<vmem>>, %arg4: memref<1x128xf32, #tpu.memory_space<vmem>>, %arg5: memref<1x128xf32, #tpu.memory_space<vmem>>, %arg6: memref<1x16x16x128xf32, #tpu.memory_space<vmem>>, %arg7: memref<18x18x128xf32, #tpu.memory_space<vmem>>, %arg8: memref<18x18x128xf32, #tpu.memory_space<vmem>>) attributes {dimension_semantics = [#tpu.dimension_semantics<parallel>], iteration_bounds = array<i64: 2>, scalar_prefetch = 0 : i64, scratch_operands = 2 : i64, tpu.core_type = #tpu.core_type<tc>, window_params = [{transform_indices = @transform_0, window_bounds = array<i64: 1, 16, 16, 128>}, {pipeline_mode = #tpu.pipeline_mode<synchronous>, transform_indices = @transform_1, window_bounds = array<i64: 1152, 128>}, {pipeline_mode = #tpu.pipeline_mode<synchronous>, transform_indices = @transform_2, window_bounds = array<i64: 1152, 128>}, {pipeline_mode = #tpu.pipeline_mode<synchronous>, transform_indices = @transform_3, window_bounds = array<i64: 1, 128>}, {pipeline_mode = #tpu.pipeline_mode<synchronous>, transform_indices = @transform_4, window_bounds = array<i64: 1, 128>}, {transform_indices = @transform_5, window_bounds = array<i64: 1, 16, 16, 128>}]} {
    %cst = arith.constant 0.000000e+00 : f32
    %0 = vector.broadcast %cst : f32 to vector<1x18x128xf32>
    %cst_0 = arith.constant 0.000000e+00 : f32
    %1 = vector.broadcast %cst_0 : f32 to vector<18x1x128xf32>
    %c0 = arith.constant 0 : index
    %c0_1 = arith.constant 0 : index
    %c0_2 = arith.constant 0 : index
    %2 = vector.load %arg7[%c0, %c0_1, %c0_2] : memref<18x18x128xf32, #tpu.memory_space<vmem>>, vector<1x18x128xf32>
    tpu.vector_store %arg7[%c0, %c0_1, %c0_2], %0 {strides = array<i32>} : memref<18x18x128xf32, #tpu.memory_space<vmem>>, vector<1x18x128xf32>,
    %c17 = arith.constant 17 : index
    %c0_3 = arith.constant 0 : index
    %c0_4 = arith.constant 0 : index
    %3 = vector.load %arg7[%c17, %c0_3, %c0_4] : memref<18x18x128xf32, #tpu.memory_space<vmem>>, vector<1x18x128xf32>
    tpu.vector_store %arg7[%c17, %c0_3, %c0_4], %0 {strides = array<i32>} : memref<18x18x128xf32, #tpu.memory_space<vmem>>, vector<1x18x128xf32>,
    %c0_5 = arith.constant 0 : index
    %c0_6 = arith.constant 0 : index
    %c0_7 = arith.constant 0 : index
    %4 = vector.load %arg7[%c0_5, %c0_6, %c0_7] : memref<18x18x128xf32, #tpu.memory_space<vmem>>, vector<18x1x128xf32>
    tpu.vector_store %arg7[%c0_5, %c0_6, %c0_7], %1 {strides = array<i32>} : memref<18x18x128xf32, #tpu.memory_space<vmem>>, vector<18x1x128xf32>,
    %c0_8 = arith.constant 0 : index
    %c17_9 = arith.constant 17 : index
    %c0_10 = arith.constant 0 : index
    %5 = vector.load %arg7[%c0_8, %c17_9, %c0_10] : memref<18x18x128xf32, #tpu.memory_space<vmem>>, vector<18x1x128xf32>
    tpu.vector_store %arg7[%c0_8, %c17_9, %c0_10], %1 {strides = array<i32>} : memref<18x18x128xf32, #tpu.memory_space<vmem>>, vector<18x1x128xf32>,
    %c0_11 = arith.constant 0 : index
    %c0_12 = arith.constant 0 : index
    %c0_13 = arith.constant 0 : index
    %6 = vector.load %arg8[%c0_11, %c0_12, %c0_13] : memref<18x18x128xf32, #tpu.memory_space<vmem>>, vector<1x18x128xf32>
    tpu.vector_store %arg8[%c0_11, %c0_12, %c0_13], %0 {strides = array<i32>} : memref<18x18x128xf32, #tpu.memory_space<vmem>>, vector<1x18x128xf32>,
    %c17_14 = arith.constant 17 : index
    %c0_15 = arith.constant 0 : index
    %c0_16 = arith.constant 0 : index
    %7 = vector.load %arg8[%c17_14, %c0_15, %c0_16] : memref<18x18x128xf32, #tpu.memory_space<vmem>>, vector<1x18x128xf32>
    tpu.vector_store %arg8[%c17_14, %c0_15, %c0_16], %0 {strides = array<i32>} : memref<18x18x128xf32, #tpu.memory_space<vmem>>, vector<1x18x128xf32>,
    %c0_17 = arith.constant 0 : index
    %c0_18 = arith.constant 0 : index
    %c0_19 = arith.constant 0 : index
    %8 = vector.load %arg8[%c0_17, %c0_18, %c0_19] : memref<18x18x128xf32, #tpu.memory_space<vmem>>, vector<18x1x128xf32>
    tpu.vector_store %arg8[%c0_17, %c0_18, %c0_19], %1 {strides = array<i32>} : memref<18x18x128xf32, #tpu.memory_space<vmem>>, vector<18x1x128xf32>,
    %c0_20 = arith.constant 0 : index
    %c17_21 = arith.constant 17 : index
    %c0_22 = arith.constant 0 : index
    %9 = vector.load %arg8[%c0_20, %c17_21, %c0_22] : memref<18x18x128xf32, #tpu.memory_space<vmem>>, vector<18x1x128xf32>
    tpu.vector_store %arg8[%c0_20, %c17_21, %c0_22], %1 {strides = array<i32>} : memref<18x18x128xf32, #tpu.memory_space<vmem>>, vector<18x1x128xf32>,
    %c0_23 = arith.constant 0 : index
    %c0_24 = arith.constant 0 : index
    %c0_25 = arith.constant 0 : index
    %c0_26 = arith.constant 0 : index
    %10 = vector.load %arg1[%c0_23, %c0_24, %c0_25, %c0_26] : memref<1x16x16x128xf32, #tpu.memory_space<vmem>>, vector<1x16x16x128xf32>
    %11 = vector.shape_cast %10 : vector<1x16x16x128xf32> to vector<16x16x128xf32>
    %c1 = arith.constant 1 : index
    %c1_27 = arith.constant 1 : index
    %c0_28 = arith.constant 0 : index
    %12 = vector.load %arg7[%c1, %c1_27, %c0_28] : memref<18x18x128xf32, #tpu.memory_space<vmem>>, vector<16x16x128xf32>
    tpu.vector_store %arg7[%c1, %c1_27, %c0_28], %11 {strides = array<i32>} : memref<18x18x128xf32, #tpu.memory_space<vmem>>, vector<16x16x128xf32>,
    %c0_29 = arith.constant 0 : index
    %c0_30 = arith.constant 0 : index
    %13 = vector.load %arg4[%c0_29, %c0_30] : memref<1x128xf32, #tpu.memory_space<vmem>>, vector<1x128xf32>
    %14 = vector.shape_cast %13 : vector<1x128xf32> to vector<128xf32>
    %c0_31 = arith.constant 0 : index
    %c0_32 = arith.constant 0 : index
    %c0_33 = arith.constant 0 : index
    %15 = vector.load %arg7[%c0_31, %c0_32, %c0_33] : memref<18x18x128xf32, #tpu.memory_space<vmem>>, vector<16x16x128xf32>
    %c0_34 = arith.constant 0 : index
    %c1_35 = arith.constant 1 : index
    %c0_36 = arith.constant 0 : index
    %16 = vector.load %arg7[%c0_34, %c1_35, %c0_36] : memref<18x18x128xf32, #tpu.memory_space<vmem>>, vector<16x16x128xf32>
    %c0_37 = arith.constant 0 : index
    %c2 = arith.constant 2 : index
    %c0_38 = arith.constant 0 : index
    %17 = vector.load %arg7[%c0_37, %c2, %c0_38] : memref<18x18x128xf32, #tpu.memory_space<vmem>>, vector<16x16x128xf32>
    %c1_39 = arith.constant 1 : index
    %c0_40 = arith.constant 0 : index
    %c0_41 = arith.constant 0 : index
    %18 = vector.load %arg7[%c1_39, %c0_40, %c0_41] : memref<18x18x128xf32, #tpu.memory_space<vmem>>, vector<16x16x128xf32>
    %c1_42 = arith.constant 1 : index
    %c1_43 = arith.constant 1 : index
    %c0_44 = arith.constant 0 : index
    %19 = vector.load %arg7[%c1_42, %c1_43, %c0_44] : memref<18x18x128xf32, #tpu.memory_space<vmem>>, vector<16x16x128xf32>
    %c1_45 = arith.constant 1 : index
    %c2_46 = arith.constant 2 : index
    %c0_47 = arith.constant 0 : index
    %20 = vector.load %arg7[%c1_45, %c2_46, %c0_47] : memref<18x18x128xf32, #tpu.memory_space<vmem>>, vector<16x16x128xf32>
    %c2_48 = arith.constant 2 : index
    %c0_49 = arith.constant 0 : index
    %c0_50 = arith.constant 0 : index
    %21 = vector.load %arg7[%c2_48, %c0_49, %c0_50] : memref<18x18x128xf32, #tpu.memory_space<vmem>>, vector<16x16x128xf32>
    %c2_51 = arith.constant 2 : index
    %c1_52 = arith.constant 1 : index
    %c0_53 = arith.constant 0 : index
    %22 = vector.load %arg7[%c2_51, %c1_52, %c0_53] : memref<18x18x128xf32, #tpu.memory_space<vmem>>, vector<16x16x128xf32>
    %c2_54 = arith.constant 2 : index
    %c2_55 = arith.constant 2 : index
    %c0_56 = arith.constant 0 : index
    %23 = vector.load %arg7[%c2_54, %c2_55, %c0_56] : memref<18x18x128xf32, #tpu.memory_space<vmem>>, vector<16x16x128xf32>
    %24 = tpu.concatenate %15, %16, %17, %18, %19, %20, %21, %22, %23 in 2 : vector<16x16x128xf32>, vector<16x16x128xf32>, vector<16x16x128xf32>, vector<16x16x128xf32>, vector<16x16x128xf32>, vector<16x16x128xf32>, vector<16x16x128xf32>, vector<16x16x128xf32>, vector<16x16x128xf32> -> vector<16x16x1152xf32>
    %25 = vector.shape_cast %24 : vector<16x16x1152xf32> to vector<256x1152xf32>
    %c0_57 = arith.constant 0 : index
    %c0_58 = arith.constant 0 : index
    %26 = vector.load %arg2[%c0_57, %c0_58] : memref<1152x128xf32, #tpu.memory_space<vmem>>, vector<1152x128xf32>
    %cst_59 = arith.constant dense<0.000000e+00> : vector<256x128xf32>
    %27 = tpu.matmul %25, %26, %cst_59 {dimension_numbers = #tpu.dot_dimension_numbers<[1], [0], [0], [1], [0, 0, 1, 1], [], []>} : vector<256x1152xf32>, vector<1152x128xf32>, vector<256x128xf32> -> vector<256x128xf32>
    %28 = vector.shape_cast %14 : vector<128xf32> to vector<1x128xf32>
    %29 = vector.broadcast %28 : vector<1x128xf32> to vector<256x128xf32>
    %30 = arith.addf %27, %29 : vector<256x128xf32>
    %cst_60 = arith.constant 0.000000e+00 : f32
    %31 = vector.broadcast %cst_60 : f32 to vector<256x128xf32>
    %32 = arith.maximumf %30, %31 : vector<256x128xf32>
    %33 = vector.shape_cast %32 : vector<256x128xf32> to vector<16x16x128xf32>
    %c1_61 = arith.constant 1 : index
    %c1_62 = arith.constant 1 : index
    %c0_63 = arith.constant 0 : index
    %34 = vector.load %arg8[%c1_61, %c1_62, %c0_63] : memref<18x18x128xf32, #tpu.memory_space<vmem>>, vector<16x16x128xf32>
    tpu.vector_store %arg8[%c1_61, %c1_62, %c0_63], %33 {strides = array<i32>} : memref<18x18x128xf32, #tpu.memory_space<vmem>>, vector<16x16x128xf32>,
    %c0_64 = arith.constant 0 : index
    %c0_65 = arith.constant 0 : index
    %35 = vector.load %arg5[%c0_64, %c0_65] : memref<1x128xf32, #tpu.memory_space<vmem>>, vector<1x128xf32>
    %36 = vector.shape_cast %35 : vector<1x128xf32> to vector<128xf32>
    %c0_66 = arith.constant 0 : index
    %c0_67 = arith.constant 0 : index
    %c0_68 = arith.constant 0 : index
    %37 = vector.load %arg8[%c0_66, %c0_67, %c0_68] : memref<18x18x128xf32, #tpu.memory_space<vmem>>, vector<16x16x128xf32>
    %c0_69 = arith.constant 0 : index
    %c1_70 = arith.constant 1 : index
    %c0_71 = arith.constant 0 : index
    %38 = vector.load %arg8[%c0_69, %c1_70, %c0_71] : memref<18x18x128xf32, #tpu.memory_space<vmem>>, vector<16x16x128xf32>
    %c0_72 = arith.constant 0 : index
    %c2_73 = arith.constant 2 : index
    %c0_74 = arith.constant 0 : index
    %39 = vector.load %arg8[%c0_72, %c2_73, %c0_74] : memref<18x18x128xf32, #tpu.memory_space<vmem>>, vector<16x16x128xf32>
    %c1_75 = arith.constant 1 : index
    %c0_76 = arith.constant 0 : index
    %c0_77 = arith.constant 0 : index
    %40 = vector.load %arg8[%c1_75, %c0_76, %c0_77] : memref<18x18x128xf32, #tpu.memory_space<vmem>>, vector<16x16x128xf32>
    %c1_78 = arith.constant 1 : index
    %c1_79 = arith.constant 1 : index
    %c0_80 = arith.constant 0 : index
    %41 = vector.load %arg8[%c1_78, %c1_79, %c0_80] : memref<18x18x128xf32, #tpu.memory_space<vmem>>, vector<16x16x128xf32>
    %c1_81 = arith.constant 1 : index
    %c2_82 = arith.constant 2 : index
    %c0_83 = arith.constant 0 : index
    %42 = vector.load %arg8[%c1_81, %c2_82, %c0_83] : memref<18x18x128xf32, #tpu.memory_space<vmem>>, vector<16x16x128xf32>
    %c2_84 = arith.constant 2 : index
    %c0_85 = arith.constant 0 : index
    %c0_86 = arith.constant 0 : index
    %43 = vector.load %arg8[%c2_84, %c0_85, %c0_86] : memref<18x18x128xf32, #tpu.memory_space<vmem>>, vector<16x16x128xf32>
    %c2_87 = arith.constant 2 : index
    %c1_88 = arith.constant 1 : index
    %c0_89 = arith.constant 0 : index
    %44 = vector.load %arg8[%c2_87, %c1_88, %c0_89] : memref<18x18x128xf32, #tpu.memory_space<vmem>>, vector<16x16x128xf32>
    %c2_90 = arith.constant 2 : index
    %c2_91 = arith.constant 2 : index
    %c0_92 = arith.constant 0 : index
    %45 = vector.load %arg8[%c2_90, %c2_91, %c0_92] : memref<18x18x128xf32, #tpu.memory_space<vmem>>, vector<16x16x128xf32>
    %46 = tpu.concatenate %37, %38, %39, %40, %41, %42, %43, %44, %45 in 2 : vector<16x16x128xf32>, vector<16x16x128xf32>, vector<16x16x128xf32>, vector<16x16x128xf32>, vector<16x16x128xf32>, vector<16x16x128xf32>, vector<16x16x128xf32>, vector<16x16x128xf32>, vector<16x16x128xf32> -> vector<16x16x1152xf32>
    %47 = vector.shape_cast %46 : vector<16x16x1152xf32> to vector<256x1152xf32>
    %c0_93 = arith.constant 0 : index
    %c0_94 = arith.constant 0 : index
    %48 = vector.load %arg3[%c0_93, %c0_94] : memref<1152x128xf32, #tpu.memory_space<vmem>>, vector<1152x128xf32>
    %cst_95 = arith.constant dense<0.000000e+00> : vector<256x128xf32>
    %49 = tpu.matmul %47, %48, %cst_95 {dimension_numbers = #tpu.dot_dimension_numbers<[1], [0], [0], [1], [0, 0, 1, 1], [], []>} : vector<256x1152xf32>, vector<1152x128xf32>, vector<256x128xf32> -> vector<256x128xf32>
    %50 = vector.shape_cast %36 : vector<128xf32> to vector<1x128xf32>
    %51 = vector.broadcast %50 : vector<1x128xf32> to vector<256x128xf32>
    %52 = arith.addf %49, %51 : vector<256x128xf32>
    %53 = vector.shape_cast %52 : vector<256x128xf32> to vector<16x16x128xf32>
    %c0_96 = arith.constant 0 : index
    %c0_97 = arith.constant 0 : index
    %c0_98 = arith.constant 0 : index
    %c0_99 = arith.constant 0 : index
    %54 = vector.load %arg1[%c0_96, %c0_97, %c0_98, %c0_99] : memref<1x16x16x128xf32, #tpu.memory_space<vmem>>, vector<1x16x16x128xf32>
    %55 = vector.shape_cast %54 : vector<1x16x16x128xf32> to vector<16x16x128xf32>
    %56 = arith.addf %53, %55 : vector<16x16x128xf32>
    %cst_100 = arith.constant 0.000000e+00 : f32
    %57 = vector.broadcast %cst_100 : f32 to vector<16x16x128xf32>
    %58 = arith.maximumf %56, %57 : vector<16x16x128xf32>
    %c0_101 = arith.constant 0 : index
    %c0_102 = arith.constant 0 : index
    %c0_103 = arith.constant 0 : index
    %c0_104 = arith.constant 0 : index
    %59 = vector.load %arg6[%c0_101, %c0_102, %c0_103, %c0_104] : memref<1x16x16x128xf32, #tpu.memory_space<vmem>>, vector<1x16x16x128xf32>
    %60 = vector.shape_cast %59 : vector<1x16x16x128xf32> to vector<16x16x128xf32>
    %61 = vector.shape_cast %58 : vector<16x16x128xf32> to vector<1x16x16x128xf32>
    tpu.vector_store %arg6[%c0_101, %c0_102, %c0_103, %c0_104], %61 {strides = array<i32>} : memref<1x16x16x128xf32, #tpu.memory_space<vmem>>, vector<1x16x16x128xf32>,
    return
  }
  func.func @transform_0(%arg0: i32) -> (i32, i32, i32, i32) {
    %c0_i32 = arith.constant 0 : i32
    %c0_i32_0 = arith.constant 0 : i32
    %c0_i32_1 = arith.constant 0 : i32
    %c0_i32_2 = arith.constant 0 : i32
    return %arg0, %c0_i32, %c0_i32_0, %c0_i32_1 : i32, i32, i32, i32
  }
  func.func @transform_1(%arg0: i32) -> (i32, i32) {
    %c0_i32 = arith.constant 0 : i32
    %c0_i32_0 = arith.constant 0 : i32
    %c0_i32_1 = arith.constant 0 : i32
    return %c0_i32, %c0_i32_0 : i32, i32
  }
  func.func @transform_2(%arg0: i32) -> (i32, i32) {
    %c0_i32 = arith.constant 0 : i32
    %c0_i32_0 = arith.constant 0 : i32
    %c0_i32_1 = arith.constant 0 : i32
    return %c0_i32, %c0_i32_0 : i32, i32
  }
  func.func @transform_3(%arg0: i32) -> (i32, i32) {
    %c0_i32 = arith.constant 0 : i32
    %c0_i32_0 = arith.constant 0 : i32
    %c0_i32_1 = arith.constant 0 : i32
    return %c0_i32, %c0_i32_0 : i32, i32
  }
  func.func @transform_4(%arg0: i32) -> (i32, i32) {
    %c0_i32 = arith.constant 0 : i32
    %c0_i32_0 = arith.constant 0 : i32
    %c0_i32_1 = arith.constant 0 : i32
    return %c0_i32, %c0_i32_0 : i32, i32
  }
  func.func @transform_5(%arg0: i32) -> (i32, i32, i32, i32) {
    %c0_i32 = arith.constant 0 : i32
    %c0_i32_0 = arith.constant 0 : i32
    %c0_i32_1 = arith.constant 0 : i32
    %c0_i32_2 = arith.constant 0 : i32
    return %arg0, %c0_i32, %c0_i32_0, %c0_i32_1 : i32, i32, i32, i32
  }
}

</mosaic_0001>

<bundles_post_ra>
// kernel: tpu_custom_call.1
= control target key start
LH: loop header
LB: loop body
LE: loop exit
PB: predicated region body
PF: predicated region fallthrough
CT: control target
= control target key end

     0   :  { %10 = vsyncpa [#allocation5], 0  ;;  %s7008_s0 = inlined_call_operand.hbm [shape: f32[2,16,16,128], index: 0, kind: input, shape index: {}]   ;;  %s7009_s1 = inlined_call_operand.hbm [shape: f32[1152,128], index: 1, kind: input, shape index: {}]   ;;  %s7010_s2 = inlined_call_operand.hbm [shape: f32[1152,128], index: 2, kind: input, shape index: {}]   ;;  %s7011_s3 = inlined_call_operand.vmem [shape: f32[1,128], index: 3, kind: input, shape index: {}]   ;;  %s7012_s4 = inlined_call_operand.vmem [shape: f32[1,128], index: 4, kind: input, shape index: {}]   ;;  %s7013_s5 = inlined_call_operand.hbm [shape: f32[2,16,16,128], index: 5, kind: output, shape index: {}]  }
   0x1   :  { %12 = vsyncpa [#allocation5 + $0x1], 0 }
   0x2   :  { %13 = vsyncpa [#allocation8], 0 }
   0x3   :  { %14 = vsyncpa [#allocation6], 0 }
   0x4   :  { %16 = vsyncpa [#allocation6 + $0x1], 0  ;;  %s5347_s18 = smov 0   ;;  %s5349_s19 = smov 0  }
   0x5   :  { %s5351_s20 = smov 0   ;;  %s5353_s21 = smov 0  }
   0x6 LB: > { %s5368_s22 = sadd.s32 4294967295, %s5305_s21   ;;  %s3852_s23 = sadd.s32 4294967294, %s5305_s21   ;;  %s5305_s21 = sphi %s5353_s21, %s7104_s21   ;;  %s5301_s20 = sphi %s5351_s20, %s7103_s20   ;;  %s5297_s19 = sphi %s5349_s19, %s7102_s19   ;;  %s5293_s18 = sphi %s5347_s18, %s7101_s18  }
   0x7   : > { %p42_p0 = scmp.ne.s32.totalorder %s5297_s19, %s5293_s18  ;;  %p7014_p1 = scmp.eq.s32.totalorder %s5368_s22, 0 }
   0x8   : > { %p156_p3 = scmp.eq.s32.totalorder %s3852_s23, 1  ;;  %p3853_p5 = scmp.ge.s32.totalorder %s5305_s21, 1 }
   0x9   : > { %p5377_p4 = por %p7014_p1, %p42_p0  ;;  %p163_p7 = scmp.lt.s32.totalorder %s5305_s21, 3 }
   0xa   : > { %p5382_p6 = por %p156_p3, %p42_p0  ;;  %s5307_s27 = smov [#allocation7]  }
   0xb   : > { %s7049_s24 = scalar_select %p5377_p4, 1, 0 }
   0xc   : > { %s7050_s25 = scalar_select %p5382_p6, 1, 0 }
   0xd   : > { %p5387_p8 = pnand %p3853_p5, %p163_p7  ;;  %s175_s28 = sshll.u32 %s5307_s27, 4  ;;  %s5391_s28 = int_to_ptr.vmem [resolvable:$true] %s175_s28 }
   0xe   : > { %s5308_s30 = smov [#allocation9]   ;;  %s5149_s9 = scalar_lea.hbm %s7009_s1, 18432 }
   0xf   : > { %p5054_p9 = pneg %p5387_p8  ;;  %s188_s6 = sshll.u32 %s5308_s30, 4  ;;  %s5402_s6 = int_to_ptr.vmem [resolvable:$true] %s188_s6 }
  0x10   : > { %p5150_p12 = scmp.ne.s32.totalorder %s7009_s1, %s5149_s9  ;;  %p5156_p5 = scmp.lt.u32.totalorder %s5149_s9, %s7009_s1 }
  0x11   : > { %p5398_p11 = pnand %p5054_p9, %p7014_p1 }
  0x13   : > { %p5151_p13 = pneg %p5398_p11 }
  0x15   : > { %p5152_p0 = pnand %p5151_p13, %p5150_p12 }
  0x17   : > { %p5153_p3 = pneg %p5152_p0 }
  0x19   : > { %p5158_p7 = pnand %p5156_p5, %p5153_p3 }
  0x1b   : > { %5161 = shalt.err (!%p5158_p7)
}
  0x1c   : > { %s5162_s14 = scalar_lea.vmem %s5391_s28, 18432  ;;  %p5170_p2 = scmp.lt.s32.totalorder %s5391_s28, %s5391_s28 }
  0x1d   : > { %p5163_p9 = scmp.ne.s32.totalorder %s5391_s28, %s5162_s14  ;;  %p5171_p12 = scmp.lt.s32.totalorder %s5162_s14, %s5162_s14 }
  0x1f   : > { %p5165_p10 = pnand %p5163_p9, %p5151_p13  ;;  %p5172_p0 = por %p5171_p12, %p5170_p2 }
  0x21   : > { %p5166_p1 = pneg %p5165_p10 }
  0x23   : > { %p5173_p6 = pnand %p5172_p0, %p5166_p1 }
  0x25   : > { %5176 = shalt.err (!%p5173_p6)
}
  0x26   : > { %s5309_s15 = smov 128   ;;  %s5310_s16 = smov 8  }
  0x27   : > { %5057 = dma.hbm_to_vmem [thread:$0]  (!%p5398_p11), %s7009_s1, 18432, %s5391_s28, [#allocation8], %s5309_s15, %s5309_s15, %s5310_s16  }
  0x28   : > { %s5177_s7 = scalar_lea.hbm %s7010_s2, 18432 }
  0x29   : > { %p5178_p1 = scmp.ne.s32.totalorder %s7010_s2, %s5177_s7  ;;  %p5184_p10 = scmp.lt.u32.totalorder %s5177_s7, %s7010_s2 }
  0x2b   : > { %p5180_p2 = pnand %p5178_p1, %p5151_p13 }
  0x2d   : > { %p5181_p6 = pneg %p5180_p2 }
  0x2f   : > { %p5186_p3 = pnand %p5184_p10, %p5181_p6 }
  0x31   : > { %5189 = shalt.err (!%p5186_p3)
}
  0x32   : > { %s5190_s28 = scalar_lea.vmem %s5402_s6, 18432  ;;  %p5198_p12 = scmp.lt.s32.totalorder %s5402_s6, %s5402_s6 }
  0x33   : > { %p5191_p5 = scmp.ne.s32.totalorder %s5402_s6, %s5190_s28  ;;  %p5199_p0 = scmp.lt.s32.totalorder %s5190_s28, %s5190_s28 }
  0x35   : > { %p5193_p7 = pnand %p5191_p5, %p5151_p13  ;;  %p5200_p1 = por %p5199_p0, %p5198_p12 }
  0x37   : > { %p5194_p9 = pneg %p5193_p7 }
  0x39   : > { %p5201_p2 = pnand %p5200_p1, %p5194_p9 }
  0x3b   : > { %5204 = shalt.err (!%p5201_p2)
}
  0x3c   : > { %5060 = dma.hbm_to_vmem [thread:$0]  (!%p5398_p11), %s7010_s2, 18432, %s5402_s6, [#allocation8], %s5309_s15, %s5309_s15, %s5310_s16  }
  0x3d   : > { %s5463_s29 = sadd.s32 1, %s5305_s21   ;;  %s29_s14 = sadd.s32 1, %s5301_s20 }
  0x3e   : > { %s26_s17 = ssub.s32 %s5305_s21, %s5463_s29  ;;  %p36_p13 = scmp.ne.s32.totalorder %s5301_s20, %s5297_s19 }
  0x3f   : > { %p27_p6 = scmp.eq.s32.totalorder %s26_s17, 0  ;;  %p37_p10 = scmp.eq.s32.totalorder %s5305_s21, 0 }
  0x40   : > { %p7053_p3 = scmp.eq.s32.totalorder %s5368_s22, 1  ;;  %p5071_p7 = scmp.lt.s32.totalorder %s5305_s21, 2 }
  0x41   : > { %s5479_s27 = scalar_select %p27_p6, %s5301_s20, %s29_s14  }
  0x42   : > { %p5473_p5 = por %p7053_p3, %p36_p13  ;;  %p38_p9 = por %p37_p10, %p36_p13 }
  0x43   : > { %s208_s30 = sand.u32 1, %s5301_s20   ;;  %s3872_s6 = sshll.u32 %s5305_s21, 12 }
  0x44   : > { %s7054_s23 = scalar_select %p5473_p5, 1, 0 }
  0x45   : > { %s3857_s7 = sshll.u32 %s208_s30, 8  ;;  %s5486_s10 = scalar_lea.hbm %s7008_s0, %s3872_s6 }
  0x46   : > { %s212_s11 = scalar_lea.vmem [#allocation4], %s3857_s7  ;;  %p5490_p11 = pnand %p5071_p7, %p38_p9 }
  0x47   : > { %s219_s28 = sshll.u32 %s212_s11, 4  ;;  %s5494_s13 = scalar_lea.sflag [#allocation5], %s208_s30  ;;  %s5488_s28 = int_to_ptr.vmem [resolvable:$true] %s219_s28 }
  0x48   : > { %s5205_s14 = scalar_lea.hbm %s5486_s10, 4096  ;;  %p5207_p0 = pneg %p5490_p11 }
  0x49   : > { %p5206_p12 = scmp.ne.s32.totalorder %s5486_s10, %s5205_s14  ;;  %s5210_s6 = scalar_lea.hbm %s7008_s0, 8192 }
  0x4a   : > { %p5211_p13 = scmp.lt.u32.totalorder %s5486_s10, %s7008_s0  ;;  %p5212_p6 = scmp.lt.u32.totalorder %s5210_s6, %s5205_s14 }
  0x4b   : > { %p5208_p1 = pnand %p5207_p0, %p5206_p12  ;;  %p5214_p3 = scmp.lt.u32.totalorder %s5205_s14, %s5486_s10 }
  0x4c   : > { %p5213_p10 = por %p5212_p6, %p5211_p13 }
  0x4d   : > { %p5209_p2 = pneg %p5208_p1 }
  0x4e   : > { %p5215_p7 = por %p5214_p3, %p5213_p10 }
  0x50   : > { %p5216_p9 = pnand %p5215_p7, %p5209_p2 }
  0x52   : > { %5219 = shalt.err (!%p5216_p9)
}
  0x53   : > { %s5220_s30 = scalar_lea.vmem %s5488_s28, 4096  ;;  %s5311_s11 = smov [#allocation4]  }
  0x54   : > { %p5221_p12 = scmp.ne.s32.totalorder %s5488_s28, %s5220_s30  ;;  %s5225_s17 = sshll.u32 %s5311_s11, 4  ;;  %s5226_s17 = int_to_ptr.vmem [resolvable:$false] %s5225_s17 }
  0x55   : > { %s5227_s7 = scalar_lea.vmem %s5226_s17, 8192  ;;  %p5228_p4 = scmp.lt.s32.totalorder %s5488_s28, %s5226_s17 }
  0x56   : > { %p5223_p1 = pnand %p5221_p12, %p5207_p0  ;;  %p5229_p13 = scmp.lt.s32.totalorder %s5227_s7, %s5220_s30 }
  0x58   : > { %p5224_p5 = pneg %p5223_p1  ;;  %p5230_p6 = por %p5229_p13, %p5228_p4 }
  0x5a   : > { %p5231_p10 = pnand %p5230_p6, %p5224_p5 }
  0x5c   : > { %5234 = shalt.err (!%p5231_p10)
}
  0x5d   : > { %5064 = dma.hbm_to_vmem [thread:$0]  (!%p5490_p11), %s5486_s10, 4096, %s5488_s28, %s5494_s13, %s5309_s15, %s5309_s15, %s5310_s16  }
  0x5e   : > { %231 = sbr.rel (%p5387_p8) target bundleno = 1535 (0x5ff), region = 40 }
  0x65   : > { %s5528_s14 = sand.u32 1, %s5297_s19   ;;  %p7056_p4 = scmp.ne.s32.totalorder %s7049_s24, 0 }
  0x66   : > { %s3861_s6 = sshll.u32 %s5528_s14, 8  ;;  %s234_s8 = scalar_lea.sflag [#allocation5], %s5528_s14 }
  0x67   : > { %s5534_s12 = scalar_lea.vmem [#allocation4], %s3861_s6 }
  0x68   : > { %5280 = dma.done.wait (%p7056_p4), %s234_s8, 4096  }
  0x69   : > { %5282 = vsyncadd (%p7056_p4), %s234_s8, 4294963200  ;;  %p7057_p5 = scmp.eq.s32.totalorder %s5368_s22, 0 }
  0x6b   : > { %5284 = dma.done.wait (%p7057_p5), [#allocation8], 36864   ;;  %p7058_p8 = pmov %p7057_p5 }
  0x6c   : > { %v7017_v0 = vmov 0.0|0.0   ;;  %v5313_v1 = vmov 0.0   ;;  %v713_v2 = vld [vmem:[#allocation7] sm:$0xff]  ;;  %v714_v3 = vld [vmem:[#allocation7 + $0x8] sm:$0xff]  ;;  %v715_v4 = vld [vmem:[#allocation7 + $0x10] sm:$0xff]  ;;  %s6841_s10 = scalar_lea.vmem [#allocation10], %s3861_s6 }
  0x6d   : > { %5286 = vsyncadd (%p7058_p8), [#allocation8], 4294930432  ;;  %4130 = vmatprep.subr.bf16.mxu0 %v7017_v0  ;;  %272 = vst [vmem:[#allocation2] sm:$0xff] %v5313_v1  ;;  %v4131_v5 = vpack.c.bf16 %v714_v3, %v713_v2  ;;  %v716_v6 = vld [vmem:[#allocation7 + $0x18] sm:$0xff]  ;;  %v717_v8 = vld [vmem:[#allocation7 + $0x20] sm:$0xff]  ;;  %s3873_s28 = sshll.u32 %s5368_s22, 12 }
  0x6e   : > { %273 = vst [vmem:[#allocation2 + $0x8] sm:$0xff] %v5313_v1  ;;  %274 = vst [vmem:[#allocation2 + $0x10] sm:$0x3] %v5313_v1  ;;  %v4134_v7 = vpack.c.bf16 %v716_v6, %v715_v4  ;;  %v718_v9 = vld [vmem:[#allocation7 + $0x28] sm:$0xff]  ;;  %v719_v11 = vld [vmem:[#allocation7 + $0x30] sm:$0xff]  ;;  %s3760_s13 = sshll.u32 %s6841_s10, 4  ;;  %s6960_s11 = scalar_lea.hbm %s7013_s5, %s3873_s28  ;;  %s6962_s13 = int_to_ptr.vmem [resolvable:$true] %s3760_s13 }
  0x6f   : > { %276 = vst [vmem:[#allocation2 + $0x198] sm:$0xff] %v5313_v1  ;;  %277 = vst [vmem:[#allocation2 + $0x1a0] sm:$0xff] %v5313_v1  ;;  %4132 = vmatpush1.bf16.msra.mxu0 %v4131_v5  ;;  %v4137_v10 = vpack.c.bf16 %v718_v9, %v717_v8  ;;  %v720_v12 = vld [vmem:[#allocation7 + $0x38] sm:$0xff]  ;;  %v721_v15 = vld [vmem:[#allocation7 + $0x40] sm:$0xff]  ;;  %s3747_s22 = scalar_lea.sflag [#allocation6], %s5528_s14  ;;  %s5235_s17 = scalar_lea.vmem %s6962_s13, 4096 }
  0x70   : > { %278 = vst [vmem:[#allocation2 + $0x1a8] sm:$0x3] %v5313_v1  ;;  %280 = vst [vmem:[#allocation2 + $0x18] sm:$0x1] %v5313_v1  ;;  %4133 = vmatprep.subr.bf16.mxu0 %v7017_v0  ;;  %v4140_v14 = vpack.c.bf16 %v720_v12, %v719_v11  ;;  %v722_v16 = vld [vmem:[#allocation7 + $0x48] sm:$0xff]  ;;  %v5633_v17 = vld [vmem:[%s5534_s12] sm:$0xff]  ;;  %p5236_p11 = scmp.ne.s32.totalorder %s6962_s13, %s5235_s17 }
  0x71   : > { %281 = vst [vmem:[#allocation2 + $0x30] sm:$0x1] %v5313_v1  ;;  %282 = vst [vmem:[#allocation2 + $0x48] sm:$0x1] %v5313_v1  ;;  %v5637_v18 = vld [vmem:[%s5534_s12 + $0x8] sm:$0xff]  ;;  %v5640_v19 = vld [vmem:[%s5534_s12 + $0x10] sm:$0xff]  ;;  %v4143_v21 = vpack.c.bf16 %v722_v16, %v721_v15 }
  0x72   : > { %283 = vst [vmem:[#allocation2 + $0x60] sm:$0x1] %v5313_v1  ;;  %284 = vst [vmem:[#allocation2 + $0x78] sm:$0x1] %v5313_v1  ;;  %v5645_v20 = vld [vmem:[%s5534_s12 + $0x18] sm:$0xff]  ;;  %v723_v22 = vld [vmem:[#allocation7 + $0x50] sm:$0xff] }
  0x73   : > { %285 = vst [vmem:[#allocation2 + $0x90] sm:$0x1] %v5313_v1  ;;  %286 = vst [vmem:[#allocation2 + $0xa8] sm:$0x1] %v5313_v1  ;;  %4135 = vmatpush1.bf16.msra.mxu0 %v4134_v7  ;;  %v5649_v23 = vld [vmem:[%s5534_s12 + $0x20] sm:$0xff]  ;;  %v724_v24 = vld [vmem:[#allocation7 + $0x58] sm:$0xff] }
  0x74   : > { %287 = vst [vmem:[#allocation2 + $0xc0] sm:$0x1] %v5313_v1  ;;  %288 = vst [vmem:[#allocation2 + $0xd8] sm:$0x1] %v5313_v1  ;;  %4136 = vmatprep.subr.bf16.mxu0 %v7017_v0  ;;  %v5654_v25 = vld [vmem:[%s5534_s12 + $0x28] sm:$0xff]  ;;  %v5657_v26 = vld [vmem:[%s5534_s12 + $0x30] sm:$0xff]  ;;  %v4146_v30 = vpack.c.bf16 %v724_v24, %v723_v22 }
  0x75   : > { %289 = vst [vmem:[#allocation2 + $0xf0] sm:$0x1] %v5313_v1  ;;  %290 = vst [vmem:[#allocation2 + $0x108] sm:$0x1] %v5313_v1  ;;  %v456_v13 = vld [vmem:[#allocation2 + $0x1] sm:$0xff]  ;;  %v5662_v27 = vld [vmem:[%s5534_s12 + $0x38] sm:$0xff] }
  0x76   : > { %291 = vst [vmem:[#allocation2 + $0x120] sm:$0x1] %v5313_v1  ;;  %292 = vst [vmem:[#allocation2 + $0x138] sm:$0x1] %v5313_v1  ;;  %927 = vmatprep.mubr.f32.mxu0 %v456_v13  ;;  %v5665_v28 = vld [vmem:[%s5534_s12 + $0x40] sm:$0xff]  ;;  %v5670_v29 = vld [vmem:[%s5534_s12 + $0x48] sm:$0xff] }
  0x77   : > { %293 = vst [vmem:[#allocation2 + $0x150] sm:$0x1] %v5313_v1  ;;  %294 = vst [vmem:[#allocation2 + $0x168] sm:$0x1] %v5313_v1  ;;  %4138 = vmatpush1.bf16.msra.mxu0 %v4137_v10  ;;  %v725_v31 = vld [vmem:[#allocation7 + $0x60] sm:$0xff]  ;;  %v5674_v32 = vld [vmem:[%s5534_s12 + $0x50] sm:$0xff] }
  0x78   : > { %295 = vst [vmem:[#allocation2 + $0x180] sm:$0x1] %v5313_v1  ;;  %298 = vst [vmem:[#allocation2 + $0x29] sm:$0x1] %v5313_v1  ;;  %4139 = vmatprep.subr.bf16.mxu0 %v7017_v0  ;;  %v726_v33 = vld [vmem:[#allocation7 + $0x68] sm:$0xff]  ;;  %v5679_v34 = vld [vmem:[%s5534_s12 + $0x58] sm:$0xff] }
  0x79   : > { %299 = vst [vmem:[#allocation2 + $0x41] sm:$0x1] %v5313_v1  ;;  %300 = vst [vmem:[#allocation2 + $0x59] sm:$0x1] %v5313_v1  ;;  %v5682_v35 = vld [vmem:[%s5534_s12 + $0x60] sm:$0xff]  ;;  %v5687_v36 = vld [vmem:[%s5534_s12 + $0x68] sm:$0xff]  ;;  %v4149_v37 = vpack.c.bf16 %v726_v33, %v725_v31 }
  0x7a   : > { %301 = vst [vmem:[#allocation2 + $0x71] sm:$0x1] %v5313_v1  ;;  %302 = vst [vmem:[#allocation2 + $0x89] sm:$0x1] %v5313_v1  ;;  %v5691_v38 = vld [vmem:[%s5534_s12 + $0x70] sm:$0xff]  ;;  %v728_v40 = vld [vmem:[#allocation7 + $0x78] sm:$0xff] }
  0x7b   : > { %303 = vst [vmem:[#allocation2 + $0xa1] sm:$0x1] %v5313_v1  ;;  %304 = vst [vmem:[#allocation2 + $0xb9] sm:$0x1] %v5313_v1  ;;  %4141 = vmatpush1.bf16.msra.mxu0 %v4140_v14  ;;  %v727_v39 = vld [vmem:[#allocation7 + $0x70] sm:$0xff]  ;;  %v5696_v41 = vld [vmem:[%s5534_s12 + $0x78] sm:$0xff] }
  0x7c   : > { %305 = vst [vmem:[#allocation2 + $0xd1] sm:$0x1] %v5313_v1  ;;  %306 = vst [vmem:[#allocation2 + $0xe9] sm:$0x1] %v5313_v1  ;;  %4142 = vmatprep.subr.bf16.mxu0 %v7017_v0  ;;  %v5700_v42 = vld [vmem:[%s5534_s12 + $0x80] sm:$0xff]  ;;  %v4152_v43 = vpack.c.bf16 %v728_v40, %v727_v39  ;;  %v5704_v44 = vld [vmem:[%s5534_s12 + $0x88] sm:$0xff] }
  0x7d   : > { %307 = vst [vmem:[#allocation2 + $0x101] sm:$0x1] %v5313_v1  ;;  %308 = vst [vmem:[#allocation2 + $0x119] sm:$0x1] %v5313_v1  ;;  %v729_v45 = vld [vmem:[#allocation7 + $0x80] sm:$0xff]  ;;  %v730_v46 = vld [vmem:[#allocation7 + $0x88] sm:$0xff] }
  0x7e   : > { %309 = vst [vmem:[#allocation2 + $0x131] sm:$0x1] %v5313_v1  ;;  %310 = vst [vmem:[#allocation2 + $0x149] sm:$0x1] %v5313_v1  ;;  %v5709_v47 = vld [vmem:[%s5534_s12 + $0x90] sm:$0xff]  ;;  %v5713_v48 = vld [vmem:[%s5534_s12 + $0x98] sm:$0xff]  ;;  %v4155_v50 = vpack.c.bf16 %v730_v46, %v729_v45 }
  0x7f   : > { %311 = vst [vmem:[#allocation2 + $0x161] sm:$0x1] %v5313_v1  ;;  %312 = vst [vmem:[#allocation2 + $0x179] sm:$0x1] %v5313_v1  ;;  %4144 = vmatpush1.bf16.msra.mxu0 %v4143_v21  ;;  %v5717_v49 = vld [vmem:[%s5534_s12 + $0xa0] sm:$0xff]  ;;  %v731_v51 = vld [vmem:[#allocation7 + $0x90] sm:$0xff] }
  0x80   : > { %313 = vst [vmem:[#allocation2 + $0x191] sm:$0x1] %v5313_v1  ;;  %315 = vst [vmem:[#allocation3] sm:$0xff] %v5313_v1  ;;  %4145 = vmatprep.subr.bf16.mxu0 %v7017_v0  ;;  %v5721_v52 = vld [vmem:[%s5534_s12 + $0xa8] sm:$0xff]  ;;  %v732_v53 = vld [vmem:[#allocation7 + $0x98] sm:$0xff]  ;;  %p7098_p0 = scmp.ne.s32.totalorder %s7054_s23, 0 }
  0x81   : > { %316 = vst [vmem:[#allocation3 + $0x8] sm:$0xff] %v5313_v1  ;;  %317 = vst [vmem:[#allocation3 + $0x10] sm:$0x3] %v5313_v1  ;;  %v5726_v54 = vld [vmem:[%s5534_s12 + $0xb0] sm:$0xff]  ;;  %v5729_v55 = vld [vmem:[%s5534_s12 + $0xb8] sm:$0xff]  ;;  %v4158_v57 = vpack.c.bf16 %v732_v53, %v731_v51  ;;  %s5314_s7 = smov [#allocation10]  }
  0x82   : > { %319 = vst [vmem:[#allocation3 + $0x198] sm:$0xff] %v5313_v1  ;;  %320 = vst [vmem:[#allocation3 + $0x1a0] sm:$0xff] %v5313_v1  ;;  %v5734_v56 = vld [vmem:[%s5534_s12 + $0xc0] sm:$0xff]  ;;  %v734_v59 = vld [vmem:[#allocation7 + $0xa8] sm:$0xff]  ;;  %p5237_p2 = pnand %p5236_p11, %p7098_p0  ;;  %s5239_s6 = sshll.u32 %s5314_s7, 4  ;;  %s5240_s6 = int_to_ptr.vmem [resolvable:$false] %s5239_s6 }
  0x83   : > { %321 = vst [vmem:[#allocation3 + $0x1a8] sm:$0x3] %v5313_v1  ;;  %323 = vst [vmem:[#allocation3 + $0x18] sm:$0x1] %v5313_v1  ;;  %4147 = vmatpush1.bf16.msra.mxu0 %v4146_v30  ;;  %v733_v58 = vld [vmem:[#allocation7 + $0xa0] sm:$0xff]  ;;  %v5739_v60 = vld [vmem:[%s5534_s12 + $0xc8] sm:$0xff]  ;;  %p5242_p7 = scmp.lt.s32.totalorder %s6962_s13, %s5240_s6 }
  0x84   : > { %324 = vst [vmem:[#allocation3 + $0x30] sm:$0x1] %v5313_v1  ;;  %325 = vst [vmem:[#allocation3 + $0x48] sm:$0x1] %v5313_v1  ;;  %4148 = vmatprep.subr.bf16.mxu0 %v7017_v0  ;;  %v4161_v61 = vpack.c.bf16 %v734_v59, %v733_v58  ;;  %v735_v62 = vld [vmem:[#allocation7 + $0xb0] sm:$0xff]  ;;  %v736_v63 = vld [vmem:[#allocation7 + $0xb8] sm:$0xff]  ;;  %p5238_p3 = pneg %p5237_p2 }
  0x85   : > { %326 = vst [vmem:[#allocation3 + $0x60] sm:$0x1] %v5313_v1  ;;  %327 = vst [vmem:[#allocation3 + $0x78] sm:$0x1] %v5313_v1  ;;  %v5744_v2 = vld [vmem:[%s5534_s12 + $0xd0] sm:$0xff]  ;;  %v4164_v3 = vpack.c.bf16 %v736_v63, %v735_v62  ;;  %v737_v4 = vld [vmem:[#allocation7 + $0xc0] sm:$0xff] }
  0x86   : > { %328 = vst [vmem:[#allocation3 + $0x90] sm:$0x1] %v5313_v1  ;;  %329 = vst [vmem:[#allocation3 + $0xa8] sm:$0x1] %v5313_v1  ;;  %v738_v5 = vld [vmem:[#allocation7 + $0xc8] sm:$0xff]  ;;  %v5749_v6 = vld [vmem:[%s5534_s12 + $0xd8] sm:$0xff] }
  0x87   : > { %330 = vst [vmem:[#allocation3 + $0xc0] sm:$0x1] %v5313_v1  ;;  %331 = vst [vmem:[#allocation3 + $0xd8] sm:$0x1] %v5313_v1  ;;  %4150 = vmatpush1.bf16.msra.mxu0 %v4149_v37  ;;  %v4167_v7 = vpack.c.bf16 %v738_v5, %v737_v4  ;;  %v739_v8 = vld [vmem:[#allocation7 + $0xd0] sm:$0xff]  ;;  %v740_v9 = vld [vmem:[#allocation7 + $0xd8] sm:$0xff] }
  0x88   : > { %332 = vst [vmem:[#allocation3 + $0xf0] sm:$0x1] %v5313_v1  ;;  %333 = vst [vmem:[#allocation3 + $0x108] sm:$0x1] %v5313_v1  ;;  %4151 = vmatprep.subr.bf16.mxu0 %v7017_v0  ;;  %v5754_v10 = vld [vmem:[%s5534_s12 + $0xe0] sm:$0xff]  ;;  %v4170_v11 = vpack.c.bf16 %v740_v9, %v739_v8  ;;  %v742_v13 = vld [vmem:[#allocation7 + $0xe8] sm:$0xff] }
  0x89   : > { %334 = vst [vmem:[#allocation3 + $0x120] sm:$0x1] %v5313_v1  ;;  %335 = vst [vmem:[#allocation3 + $0x138] sm:$0x1] %v5313_v1  ;;  %v741_v12 = vld [vmem:[#allocation7 + $0xe0] sm:$0xff]  ;;  %v5759_v14 = vld [vmem:[%s5534_s12 + $0xe8] sm:$0xff] }
  0x8a   : > { %336 = vst [vmem:[#allocation3 + $0x150] sm:$0x1] %v5313_v1  ;;  %337 = vst [vmem:[#allocation3 + $0x168] sm:$0x1] %v5313_v1  ;;  %v4173_v15 = vpack.c.bf16 %v742_v13, %v741_v12  ;;  %v743_v16 = vld [vmem:[#allocation7 + $0xf0] sm:$0xff]  ;;  %v744_v21 = vld [vmem:[#allocation7 + $0xf8] sm:$0xff] }
  0x8b   : > { %338 = vst [vmem:[#allocation3 + $0x180] sm:$0x1] %v5313_v1  ;;  %341 = vst [vmem:[#allocation3 + $0x29] sm:$0x1] %v5313_v1  ;;  %4153 = vmatpush1.bf16.msra.mxu0 %v4152_v43  ;;  %v4176_v22 = vpack.c.bf16 %v744_v21, %v743_v16  ;;  %v745_v24 = vld [vmem:[#allocation7 + $0x100] sm:$0xff]  ;;  %v746_v30 = vld [vmem:[#allocation7 + $0x108] sm:$0xff] }
  0x8c   : > { %342 = vst [vmem:[#allocation3 + $0x41] sm:$0x1] %v5313_v1  ;;  %343 = vst [vmem:[#allocation3 + $0x59] sm:$0x1] %v5313_v1  ;;  %4154 = vmatprep.subr.bf16.mxu0 %v7017_v0  ;;  %v4179_v33 = vpack.c.bf16 %v746_v30, %v745_v24  ;;  %v457_v37 = vld [vmem:[#allocation2 + $0x9] sm:$0xff]  ;;  %v748_v40 = vld [vmem:[#allocation7 + $0x118] sm:$0xff] }
  0x8d   : > { %344 = vst [vmem:[#allocation3 + $0x71] sm:$0x1] %v5313_v1  ;;  %345 = vst [vmem:[#allocation3 + $0x89] sm:$0x1] %v5313_v1  ;;  %v747_v39 = vld [vmem:[#allocation7 + $0x110] sm:$0xff]  ;;  %v749_v45 = vld [vmem:[#allocation7 + $0x120] sm:$0xff] }
  0x8e   : > { %346 = vst [vmem:[#allocation3 + $0xa1] sm:$0x1] %v5313_v1  ;;  %347 = vst [vmem:[#allocation3 + $0xb9] sm:$0x1] %v5313_v1  ;;  %v4182_v43 = vpack.c.bf16 %v748_v40, %v747_v39  ;;  %v750_v46 = vld [vmem:[#allocation7 + $0x128] sm:$0xff]  ;;  %v751_v53 = vld [vmem:[#allocation7 + $0x130] sm:$0xff] }
  0x8f   : > { %348 = vst [vmem:[#allocation3 + $0xd1] sm:$0x1] %v5313_v1  ;;  %349 = vst [vmem:[#allocation3 + $0xe9] sm:$0x1] %v5313_v1  ;;  %4156 = vmatpush1.bf16.msra.mxu0 %v4155_v50  ;;  %v4185_v51 = vpack.c.bf16 %v750_v46, %v749_v45  ;;  %v757_v5 = vld [vmem:[#allocation7 + $0x160] sm:$0xff]  ;;  %v767_v39 = vld [vmem:[#allocation7 + $0x1b0] sm:$0xff] }
  0x90   : > { %350 = vst [vmem:[#allocation3 + $0x101] sm:$0x1] %v5313_v1  ;;  %351 = vst [vmem:[#allocation3 + $0x119] sm:$0x1] %v5313_v1  ;;  %4157 = vmatprep.subr.bf16.mxu0 %v7017_v0  ;;  %v769_v45 = vld [vmem:[#allocation7 + $0x1c0] sm:$0xff]  ;;  %s5241_s8 = scalar_lea.vmem %s5240_s6, 8192 }
  0x91   : > { %352 = vst [vmem:[#allocation3 + $0x131] sm:$0x1] %v5313_v1  ;;  %353 = vst [vmem:[#allocation3 + $0x149] sm:$0x1] %v5313_v1  ;;  %p5243_p9 = scmp.lt.s32.totalorder %s5241_s8, %s5235_s17 }
  0x92   : > { %354 = vst [vmem:[#allocation3 + $0x161] sm:$0x1] %v5313_v1  ;;  %355 = vst [vmem:[#allocation3 + $0x179] sm:$0x1] %v5313_v1 }
  0x93   : > { %356 = vst [vmem:[#allocation3 + $0x191] sm:$0x1] %v5313_v1  ;;  %279 = vst [vmem:[#allocation2] sm:$0x1] %v5313_v1  ;;  %4159 = vmatpush1.bf16.msra.mxu0 %v4158_v57  ;;  %v752_v57 = vld [vmem:[#allocation7 + $0x138] sm:$0xff]  ;;  %p5244_p12 = por %p5243_p9, %p5242_p7 }
  0x94   : > { %296 = vst [vmem:[#allocation2 + $0x198] sm:$0x1] %v5313_v1  ;;  %297 = vst [vmem:[#allocation2 + $0x11] sm:$0x1] %v5313_v1  ;;  %4160 = vmatprep.subr.bf16.mxu0 %v7017_v0  ;;  %v4188_v59 = vpack.c.bf16 %v752_v57, %v751_v53  ;;  %v771_v53 = vld [vmem:[#allocation7 + $0x1d0] sm:$0xff] }
  0x95   : > { %314 = vst [vmem:[#allocation2 + $0x1a9] sm:$0x1] %v5313_v1  ;;  %322 = vst [vmem:[#allocation3] sm:$0x1] %v5313_v1  ;;  %p5245_p1 = pnand %p5244_p12, %p5238_p3 }
  0x96   : > { %339 = vst [vmem:[#allocation3 + $0x198] sm:$0x1] %v5313_v1  ;;  %340 = vst [vmem:[#allocation3 + $0x11] sm:$0x1] %v5313_v1 }
  0x97   : > { %357 = vst [vmem:[#allocation3 + $0x1a9] sm:$0x1] %v5313_v1  ;;  %391 = vst [vmem:[#allocation2 + $0x19] sm:$0xff] %v5633_v17  ;;  %4162 = vmatpush1.bf16.msra.mxu0 %v4161_v61 }
  0x98   : > { %392 = vst [vmem:[#allocation2 + $0x21] sm:$0xff] %v5637_v18  ;;  %393 = vst [vmem:[#allocation2 + $0x31] sm:$0xff] %v5640_v19  ;;  %4163 = vmatprep.subr.bf16.mxu0 %v7017_v0 }
  0x99   : > { %394 = vst [vmem:[#allocation2 + $0x39] sm:$0xff] %v5645_v20  ;;  %395 = vst [vmem:[#allocation2 + $0x49] sm:$0xff] %v5649_v23 }
  0x9a   : > { %396 = vst [vmem:[#allocation2 + $0x51] sm:$0xff] %v5654_v25  ;;  %397 = vst [vmem:[#allocation2 + $0x61] sm:$0xff] %v5657_v26  ;;  %v424_v31 = vld [vmem:[#allocation2] sm:$0xff] }
  0x9b   : > { %398 = vst [vmem:[#allocation2 + $0x69] sm:$0xff] %v5662_v27  ;;  %399 = vst [vmem:[#allocation2 + $0x79] sm:$0xff] %v5665_v28  ;;  %4165 = vmatpush1.bf16.msra.mxu0 %v4164_v3  ;;  %v756_v3 = vld [vmem:[#allocation7 + $0x158] sm:$0xff] }
  0x9c   : > { %400 = vst [vmem:[#allocation2 + $0x81] sm:$0xff] %v5670_v29  ;;  %401 = vst [vmem:[#allocation2 + $0x91] sm:$0xff] %v5674_v32  ;;  %4166 = vmatprep.subr.bf16.mxu0 %v7017_v0 }
  0x9d   : > { %402 = vst [vmem:[#allocation2 + $0x99] sm:$0xff] %v5679_v34  ;;  %403 = vst [vmem:[#allocation2 + $0xa9] sm:$0xff] %v5682_v35 }
  0x9e   : > { %404 = vst [vmem:[#allocation2 + $0xb1] sm:$0xff] %v5687_v36  ;;  %405 = vst [vmem:[#allocation2 + $0xc1] sm:$0xff] %v5691_v38  ;;  %v5768_v50 = vld [vmem:[#allocation2 + $0x18] sm:$0xff] }
  0x9f   : > { %406 = vst [vmem:[#allocation2 + $0xc9] sm:$0xff] %v5696_v41  ;;  %407 = vst [vmem:[#allocation2 + $0xd9] sm:$0xff] %v5700_v42  ;;  %4168 = vmatpush1.bf16.msra.mxu0 %v4167_v7  ;;  %v5773_v58 = vld [vmem:[#allocation2 + $0x20] sm:$0xff]  ;;  %v5778_v61 = vld [vmem:[#allocation2 + $0x30] sm:$0xff] }
  0xa0   : > { %408 = vst [vmem:[#allocation2 + $0xe1] sm:$0xff] %v5704_v44  ;;  %409 = vst [vmem:[#allocation2 + $0xf1] sm:$0xff] %v5709_v47  ;;  %4169 = vmatprep.subr.bf16.mxu0 %v7017_v0  ;;  %v5780_v63 = vld [vmem:[#allocation2 + $0x32] sm:$0xff]  ;;  %v758_v7 = vld [vmem:[#allocation7 + $0x168] sm:$0xff] }
  0xa1   : > { %410 = vst [vmem:[#allocation2 + $0xf9] sm:$0xff] %v5713_v48  ;;  %411 = vst [vmem:[#allocation2 + $0x109] sm:$0xff] %v5717_v49  ;;  %4002 = vmatprep.mubr.f32.mxu1 %v5780_v63  ;;  %v5786_v4 = vld [vmem:[#allocation2 + $0x38] sm:$0xff]  ;;  %v5791_v8 = vld [vmem:[#allocation2 + $0x48] sm:$0xff]  ;;  %v4197_v9 = vpack.c.bf16 %v758_v7, %v757_v5 }
  0xa2   : > { %412 = vst [vmem:[#allocation2 + $0x111] sm:$0xff] %v5721_v52  ;;  %413 = vst [vmem:[#allocation2 + $0x121] sm:$0xff] %v5726_v54  ;;  %v5796_v12 = vld [vmem:[#allocation2 + $0x50] sm:$0xff]  ;;  %v5801_v16 = vld [vmem:[#allocation2 + $0x60] sm:$0xff] }
  0xa3   : > { %414 = vst [vmem:[#allocation2 + $0x129] sm:$0xff] %v5729_v55  ;;  %415 = vst [vmem:[#allocation2 + $0x139] sm:$0xff] %v5734_v56  ;;  %4171 = vmatpush1.bf16.msra.mxu0 %v4170_v11  ;;  %v759_v11 = vld [vmem:[#allocation7 + $0x170] sm:$0xff]  ;;  %v5806_v24 = vld [vmem:[#allocation2 + $0x68] sm:$0xff] }
  0xa4   : > { %416 = vst [vmem:[#allocation2 + $0x141] sm:$0xff] %v5739_v60  ;;  %417 = vst [vmem:[#allocation2 + $0x151] sm:$0xff] %v5744_v2  ;;  %4172 = vmatprep.subr.bf16.mxu0 %v7017_v0  ;;  %v5816_v40 = vld [vmem:[#allocation2 + $0x80] sm:$0xff]  ;;  %v5821_v46 = vld [vmem:[#allocation2 + $0x90] sm:$0xff] }
  0xa5   : > { %418 = vst [vmem:[#allocation2 + $0x159] sm:$0xff] %v5749_v6  ;;  %419 = vst [vmem:[#allocation2 + $0x169] sm:$0xff] %v5754_v10  ;;  %v5826_v57 = vld [vmem:[#allocation2 + $0x98] sm:$0xff] }
  0xa6   : > { %420 = vst [vmem:[#allocation2 + $0x171] sm:$0xff] %v5759_v14  ;;  %v5850_v5 = vld [vmem:[#allocation2 + $0xd8] sm:$0xff] }
  0xa7   : > { %4174 = vmatpush1.bf16.msra.mxu0 %v4173_v15  ;;  %v761_v15 = vld [vmem:[#allocation7 + $0x180] sm:$0xff]  ;;  %v5858_v7 = vld [vmem:[#allocation2 + $0xf0] sm:$0xff] }
  0xa8   : > { %4175 = vmatprep.subr.bf16.mxu0 %v7017_v0 }
  0xab   : > { %4177 = vmatpush1.bf16.msra.mxu0 %v4176_v22  ;;  %v763_v22 = vld [vmem:[#allocation7 + $0x190] sm:$0xff] }
  0xac   : > { %4178 = vmatprep.subr.bf16.mxu0 %v7017_v0 }
  0xae   : > { %928 = vmatmul.mubr.f32.vlgmr.msra.gmra.mrb[0].mxu0 %v424_v31  ;;  %v765_v31 = vld [vmem:[#allocation7 + $0x1a0] sm:$0xff] }
  0xaf   : > { %4180 = vmatpush1.bf16.msra.mxu0 %v4179_v33  ;;  %932 = vmatprep.mubr.f32.mxu0 %v457_v37  ;;  %v5811_v33 = vld [vmem:[#allocation2 + $0x78] sm:$0xff] }
  0xb0   : > { %4181 = vmatprep.subr.bf16.mxu0 %v7017_v0 }
  0xb2   : > { %933 = vmatmul.mubr.f32.gmra.mrb[2].mxu0 %v5313_v1  ;;  %v753_v1 = vld [vmem:[#allocation7 + $0x140] sm:$0xff] }
  0xb3   : > { %937 = vmatprep.mubr.f32.mxu0 %v5633_v17  ;;  %4183 = vmatpush1.bf16.msra.mxu0 %v4182_v43  ;;  %v754_v17 = vld [vmem:[#allocation7 + $0x148] sm:$0xff] }
  0xb4   : > { %4184 = vmatprep.subr.bf16.mxu0 %v7017_v0  ;;  %v4191_v62 = vpack.c.bf16 %v754_v17, %v753_v1  ;;  %v773_v1 = vld [vmem:[#allocation7 + $0x1e0] sm:$0xff]  ;;  %v5831_v17 = vld [vmem:[#allocation2 + $0xa8] sm:$0xff] }
  0xb6   : > { %938 = vmatmul.mubr.f32.gmra.mrb[4].mxu0 %v5768_v50 }
  0xb7   : > { %942 = vmatprep.mubr.f32.mxu0 %v5637_v18  ;;  %4186 = vmatpush1.bf16.msra.mxu0 %v4185_v51  ;;  %v755_v18 = vld [vmem:[#allocation7 + $0x150] sm:$0xff] }
  0xb8   : > { %4187 = vmatprep.subr.bf16.mxu0 %v7017_v0 }
  0xba   : > { %943 = vmatmul.mubr.f32.gmra.mrb[6].mxu0 %v5773_v58 }
  0xbb   : > { %947 = vmatprep.mubr.f32.mxu0 %v5640_v19  ;;  %4189 = vmatpush1.bf16.msra.mxu0 %v4188_v59  ;;  %v4194_v19 = vpack.c.bf16 %v756_v3, %v755_v18  ;;  %v775_v18 = vld [vmem:[#allocation7 + $0x1f0] sm:$0xff] }
  0xbc   : > { %4190 = vmatprep.subr.bf16.mxu0 %v7017_v0  ;;  %v5836_v3 = vld [vmem:[#allocation2 + $0xb0] sm:$0xff] }
  0xbe   : > { %948 = vmatmul.mubr.f32.gmra.mrb[8].mxu0 %v5778_v61 }
  0xbf   : > { %952 = vmatprep.mubr.f32.mxu0 %v5645_v20  ;;  %4192 = vmatpush1.bf16.msra.mxu0 %v4191_v62  ;;  %v760_v20 = vld [vmem:[#allocation7 + $0x178] sm:$0xff] }
  0xc0   : > { %4193 = vmatprep.subr.bf16.mxu0 %v7017_v0  ;;  %v4200_v13 = vpack.c.bf16 %v760_v20, %v759_v11  ;;  %v777_v11 = vld [vmem:[#allocation7 + $0x200] sm:$0xff] }
  0xc1   : > { %v488_v20 = vld [vmem:[#allocation2 + $0x2] sm:$0xff] }
  0xc2   : > { %953 = vmatmul.mubr.f32.gmra.mrb[10].mxu0 %v5786_v4 }
  0xc3   : > { %957 = vmatprep.mubr.f32.mxu0 %v5649_v23  ;;  %4195 = vmatpush1.bf16.msra.mxu0 %v4194_v19  ;;  %v762_v23 = vld [vmem:[#allocation7 + $0x188] sm:$0xff] }
  0xc4   : > { %4196 = vmatprep.subr.bf16.mxu0 %v7017_v0  ;;  %v4203_v21 = vpack.c.bf16 %v762_v23, %v761_v15  ;;  %v779_v15 = vld [vmem:[#allocation7 + $0x210] sm:$0xff]  ;;  %v780_v23 = vld [vmem:[#allocation7 + $0x218] sm:$0xff] }
  0xc6   : > { %958 = vmatmul.mubr.f32.gmra.mrb[12].mxu0 %v5791_v8 }
  0xc7   : > { %962 = vmatprep.mubr.f32.mxu0 %v5654_v25  ;;  %4198 = vmatpush1.bf16.msra.mxu0 %v4197_v9  ;;  %v764_v25 = vld [vmem:[#allocation7 + $0x198] sm:$0xff] }
  0xc8   : > { %4199 = vmatprep.subr.bf16.mxu0 %v7017_v0  ;;  %v4206_v30 = vpack.c.bf16 %v764_v25, %v763_v22  ;;  %v5901_v9 = vld [vmem:[%s5534_s12 + $0xf8] sm:$0xff]  ;;  %v782_v22 = vld [vmem:[#allocation7 + $0x228] sm:$0xff] }
  0xc9   : > { %422 = vst [vmem:[#allocation2 + $0x189] sm:$0xff] %v5901_v9  ;;  %v5917_v25 = vld [vmem:[#allocation2 + $0x1a] sm:$0xff] }
  0xca   : > { %963 = vmatmul.mubr.f32.gmra.mrb[14].mxu0 %v5796_v12 }
  0xcb   : > { %967 = vmatprep.mubr.f32.mxu0 %v5657_v26  ;;  %4201 = vmatpush1.bf16.msra.mxu0 %v4200_v13  ;;  %v766_v26 = vld [vmem:[#allocation7 + $0x1a8] sm:$0xff] }
  0xcc   : > { %4202 = vmatprep.subr.bf16.mxu0 %v7017_v0  ;;  %v4209_v37 = vpack.c.bf16 %v766_v26, %v765_v31  ;;  %v784_v31 = vld [vmem:[#allocation7 + $0x238] sm:$0xff] }
  0xce   : > { %968 = vmatmul.mubr.f32.gmra.mrb[16].mxu0 %v5801_v16 }
  0xcf   : > { %972 = vmatprep.mubr.f32.mxu0 %v5662_v27  ;;  %4204 = vmatpush1.bf16.msra.mxu0 %v4203_v21  ;;  %v768_v27 = vld [vmem:[#allocation7 + $0x1b8] sm:$0xff]  ;;  %v4230_v21 = vpack.c.bf16 %v780_v23, %v779_v15  ;;  %v799_v15 = vld [vmem:[#allocation7 + $0x2b0] sm:$0xff]  ;;  %v5960_v23 = vld [vmem:[#allocation2 + $0x82] sm:$0xff] }
  0xd0   : > { %4205 = vmatprep.subr.bf16.mxu0 %v7017_v0  ;;  %v4212_v43 = vpack.c.bf16 %v768_v27, %v767_v39  ;;  %v787_v27 = vld [vmem:[#allocation7 + $0x250] sm:$0xff] }
  0xd2   : > { %973 = vmatmul.mubr.f32.gmra.mrb[18].mxu0 %v5806_v24 }
  0xd3   : > { %977 = vmatprep.mubr.f32.mxu0 %v5665_v28  ;;  %4207 = vmatpush1.bf16.msra.mxu0 %v4206_v30  ;;  %v770_v28 = vld [vmem:[#allocation7 + $0x1c8] sm:$0xff]  ;;  %v783_v30 = vld [vmem:[#allocation7 + $0x230] sm:$0xff] }
  0xd4   : > { %4208 = vmatprep.subr.bf16.mxu0 %v7017_v0  ;;  %v4215_v51 = vpack.c.bf16 %v770_v28, %v769_v45  ;;  %v4236_v26 = vpack.c.bf16 %v784_v31, %v783_v30  ;;  %v789_v28 = vld [vmem:[#allocation7 + $0x260] sm:$0xff] }
  0xd5   : > { %v5970_v30 = vld [vmem:[#allocation2 + $0x9a] sm:$0xff] }
  0xd6   : > { %978 = vmatmul.mubr.f32.gmra.mrb[20].mxu0 %v5811_v33 }
  0xd7   : > { %982 = vmatprep.mubr.f32.mxu0 %v5670_v29  ;;  %4210 = vmatpush1.bf16.msra.mxu0 %v4209_v37  ;;  %v772_v29 = vld [vmem:[#allocation7 + $0x1d8] sm:$0xff]  ;;  %v785_v37 = vld [vmem:[#allocation7 + $0x240] sm:$0xff] }
  0xd8   : > { %4211 = vmatprep.subr.bf16.mxu0 %v7017_v0  ;;  %v4218_v59 = vpack.c.bf16 %v772_v29, %v771_v53  ;;  %v791_v29 = vld [vmem:[#allocation7 + $0x270] sm:$0xff] }
  0xda   : > { %983 = vmatmul.mubr.f32.gmra.mrb[22].mxu0 %v5816_v40 }
  0xdb   : > { %987 = vmatprep.mubr.f32.mxu0 %v5674_v32  ;;  %4213 = vmatpush1.bf16.msra.mxu0 %v4212_v43  ;;  %v774_v32 = vld [vmem:[#allocation7 + $0x1e8] sm:$0xff]  ;;  %v788_v43 = vld [vmem:[#allocation7 + $0x258] sm:$0xff] }
  0xdc   : > { %4214 = vmatprep.subr.bf16.mxu0 %v7017_v0  ;;  %v4221_v62 = vpack.c.bf16 %v774_v32, %v773_v1  ;;  %v4242_v45 = vpack.c.bf16 %v788_v43, %v787_v27  ;;  %v793_v32 = vld [vmem:[#allocation7 + $0x280] sm:$0xff]  ;;  %v5980_v27 = vld [vmem:[#allocation2 + $0xb2] sm:$0xff] }
  0xde   : > { %988 = vmatmul.mubr.f32.gmra.mrb[24].mxu0 %v5821_v46 }
  0xdf   : > { %992 = vmatprep.mubr.f32.mxu0 %v5679_v34  ;;  %4216 = vmatpush1.bf16.msra.mxu0 %v4215_v51  ;;  %v776_v34 = vld [vmem:[#allocation7 + $0x1f8] sm:$0xff]  ;;  %v790_v51 = vld [vmem:[#allocation7 + $0x268] sm:$0xff] }
  0xe0   : > { %4217 = vmatprep.subr.bf16.mxu0 %v7017_v0  ;;  %v4224_v19 = vpack.c.bf16 %v776_v34, %v775_v18  ;;  %v4245_v53 = vpack.c.bf16 %v790_v51, %v789_v28  ;;  %v795_v34 = vld [vmem:[#allocation7 + $0x290] sm:$0xff]  ;;  %v842_v51 = vld [vmem:[#allocation7 + $0x408] sm:$0xff] }
  0xe1   : > { %v6002_v28 = vld [vmem:[#allocation2 + $0xf2] sm:$0xff] }
  0xe2   : > { %993 = vmatmul.mubr.f32.gmra.mrb[26].mxu0 %v5826_v57 }
  0xe3   : > { %997 = vmatprep.mubr.f32.mxu0 %v5682_v35  ;;  %4219 = vmatpush1.bf16.msra.mxu0 %v4218_v59  ;;  %v5841_v35 = vld [vmem:[#allocation2 + $0xc0] sm:$0xff]  ;;  %v5940_v59 = vld [vmem:[#allocation2 + $0x52] sm:$0xff] }
  0xe4   : > { %4220 = vmatprep.subr.bf16.mxu0 %v7017_v0 }
  0xe6   : > { %998 = vmatmul.mubr.f32.gmra.mrb[28].mxu0 %v5831_v17 }
  0xe7   : > { %1002 = vmatprep.mubr.f32.mxu0 %v5687_v36  ;;  %4222 = vmatpush1.bf16.msra.mxu0 %v4221_v62  ;;  %v5846_v36 = vld [vmem:[#allocation2 + $0xc8] sm:$0xff] }
  0xe8   : > { %4223 = vmatprep.subr.bf16.mxu0 %v7017_v0  ;;  %v5945_v62 = vld [vmem:[#allocation2 + $0x62] sm:$0xff] }
  0xea   : > { %1003 = vmatmul.mubr.f32.gmra.mrb[30].mxu0 %v5836_v3 }
  0xeb   : > { %1007 = vmatprep.mubr.f32.mxu0 %v5691_v38  ;;  %4225 = vmatpush1.bf16.msra.mxu0 %v4224_v19  ;;  %v5854_v38 = vld [vmem:[#allocation2 + $0xe0] sm:$0xff]  ;;  %v5950_v19 = vld [vmem:[#allocation2 + $0x6a] sm:$0xff] }
  0xec   : > { %4226 = vmatprep.subr.bf16.mxu0 %v7017_v0 }
  0xee   : > { %1008 = vmatmul.mubr.f32.gmra.mrb[32].mxu0 %v5841_v35 }
  0xef   : > { %1012 = vmatprep.mubr.f32.mxu0 %v5696_v41  ;;  %v5862_v41 = vld [vmem:[#allocation2 + $0xf8] sm:$0xff] }
  0xf2   : > { %1013 = vmatmul.mubr.f32.gmra.mrb[34].mxu0 %v5846_v36 }
  0xf3   : > { %1017 = vmatprep.mubr.f32.mxu0 %v5700_v42  ;;  %v5866_v42 = vld [vmem:[#allocation2 + $0x108] sm:$0xff] }
  0xf6   : > { %1018 = vmatmul.mubr.f32.gmra.mrb[36].mxu0 %v5850_v5 }
  0xf7   : > { %1022 = vmatprep.mubr.f32.mxu0 %v5704_v44  ;;  %v5870_v44 = vld [vmem:[#allocation2 + $0x110] sm:$0xff] }
  0xfa   : > { %1023 = vmatmul.mubr.f32.gmra.mrb[38].mxu0 %v5854_v38 }
  0xfb   : > { %1027 = vmatprep.mubr.f32.mxu0 %v5709_v47  ;;  %v5874_v47 = vld [vmem:[#allocation2 + $0x120] sm:$0xff] }
  0xfe   : > { %1028 = vmatmul.mubr.f32.gmra.mrb[40].mxu0 %v5858_v7 }
  0xff   : > { %1032 = vmatprep.mubr.f32.mxu0 %v5713_v48  ;;  %v5878_v48 = vld [vmem:[#allocation2 + $0x128] sm:$0xff] }
 0x102   : > { %1033 = vmatmul.mubr.f32.gmra.mrb[42].mxu0 %v5862_v41 }
 0x103   : > { %1037 = vmatprep.mubr.f32.mxu0 %v5717_v49  ;;  %v5882_v49 = vld [vmem:[#allocation2 + $0x138] sm:$0xff] }
 0x106   : > { %1038 = vmatmul.mubr.f32.gmra.mrb[44].mxu0 %v5866_v42 }
 0x107   : > { %1042 = vmatprep.mubr.f32.mxu0 %v5721_v52  ;;  %v5886_v52 = vld [vmem:[#allocation2 + $0x140] sm:$0xff] }
 0x10a   : > { %1043 = vmatmul.mubr.f32.gmra.mrb[46].mxu0 %v5870_v44 }
 0x10b   : > { %1047 = vmatprep.mubr.f32.mxu0 %v5726_v54  ;;  %v5890_v54 = vld [vmem:[#allocation2 + $0x150] sm:$0xff] }
 0x10e   : > { %1048 = vmatmul.mubr.f32.gmra.mrb[48].mxu0 %v5874_v47 }
 0x10f   : > { %1052 = vmatprep.mubr.f32.mxu0 %v5729_v55  ;;  %v5893_v55 = vld [vmem:[%s5534_s12 + $0xf0] sm:$0xff] }
 0x110   : > { %421 = vst [vmem:[#allocation2 + $0x181] sm:$0xff] %v5893_v55 }
 0x112   : > { %1053 = vmatmul.mubr.f32.gmra.mrb[50].mxu0 %v5878_v48 }
 0x113   : > { %1057 = vmatprep.mubr.f32.mxu0 %v5734_v56  ;;  %v5898_v56 = vld [vmem:[#allocation2 + $0x158] sm:$0xff] }
 0x116   : > { %1058 = vmatmul.mubr.f32.gmra.mrb[52].mxu0 %v5882_v49 }
 0x117   : > { %1062 = vmatprep.mubr.f32.mxu0 %v5739_v60  ;;  %v5906_v60 = vld [vmem:[#allocation2 + $0x168] sm:$0xff] }
 0x11a   : > { %1063 = vmatmul.mubr.f32.gmra.mrb[54].mxu0 %v5886_v52 }
 0x11b   : > { %1067 = vmatprep.mubr.f32.mxu0 %v5744_v2  ;;  %v5910_v2 = vld [vmem:[#allocation2 + $0x170] sm:$0xff] }
 0x11e   : > { %1068 = vmatmul.mubr.f32.gmra.mrb[56].mxu0 %v5890_v54 }
 0x11f   : > { %1072 = vmatprep.mubr.f32.mxu0 %v5749_v6  ;;  %v778_v6 = vld [vmem:[#allocation7 + $0x208] sm:$0xff] }
 0x120   : > { %v4227_v13 = vpack.c.bf16 %v778_v6, %v777_v11  ;;  %v797_v6 = vld [vmem:[#allocation7 + $0x2a0] sm:$0xff] }
 0x122   : > { %1073 = vmatmul.mubr.f32.gmra.mrb[58].mxu0 %v5898_v56 }
 0x123   : > { %1077 = vmatprep.mubr.f32.mxu0 %v5754_v10  ;;  %v489_v10 = vld [vmem:[#allocation2 + $0xa] sm:$0xff] }
 0x126   : > { %1078 = vmatmul.mubr.f32.gmra.mrb[60].mxu0 %v5906_v60 }
 0x127   : > { %1082 = vmatprep.mubr.f32.mxu0 %v5759_v14  ;;  %v781_v14 = vld [vmem:[#allocation7 + $0x220] sm:$0xff] }
 0x12a   : > { %1083 = vmatmul.mubr.f32.gmra.mrb[62].mxu0 %v5910_v2 }
 0x12b   : > { %1152 = vmatprep.mubr.f32.mxu0 %v5768_v50  ;;  %v4233_v50 = vpack.c.bf16 %v782_v22, %v781_v14  ;;  %v5965_v14 = vld [vmem:[#allocation2 + $0x92] sm:$0xff] }
 0x12e   : > { %1153 = vmatmul.mubr.f32.vlgmr.msra.gmra.mrb[0].mxu0 %v488_v20  ;;  %v5955_v20 = vld [vmem:[#allocation2 + $0x7a] sm:$0xff] }
 0x12f   : > { %4228 = vmatpush1.bf16.msra.mxu0 %v4227_v13  ;;  %1157 = vmatprep.mubr.f32.mxu0 %v5773_v58  ;;  %v5922_v58 = vld [vmem:[#allocation2 + $0x22] sm:$0xff] }
 0x130   : > { %4229 = vmatprep.subr.bf16.mxu0 %v7017_v0 }
 0x132   : > { %1158 = vmatmul.mubr.f32.gmra.mrb[2].mxu0 %v489_v10 }
 0x133   : > { %1162 = vmatprep.mubr.f32.mxu0 %v5778_v61  ;;  %4231 = vmatpush1.bf16.msra.mxu0 %v4230_v21  ;;  %v786_v61 = vld [vmem:[#allocation7 + $0x248] sm:$0xff]  ;;  %v801_v21 = vld [vmem:[#allocation7 + $0x2c0] sm:$0xff] }
 0x134   : > { %4232 = vmatprep.subr.bf16.mxu0 %v7017_v0  ;;  %v4239_v39 = vpack.c.bf16 %v786_v61, %v785_v37  ;;  %v5975_v37 = vld [vmem:[#allocation2 + $0xaa] sm:$0xff] }
 0x136   : > { %1163 = vmatmul.mubr.f32.gmra.mrb[4].mxu0 %v5917_v25 }
 0x137   : > { %1167 = vmatprep.mubr.f32.mxu0 %v5786_v4  ;;  %4234 = vmatpush1.bf16.msra.mxu0 %v4233_v50  ;;  %v5930_v4 = vld [vmem:[#allocation2 + $0x3a] sm:$0xff]  ;;  %v803_v50 = vld [vmem:[#allocation7 + $0x2d0] sm:$0xff] }
 0x138   : > { %4235 = vmatprep.subr.bf16.mxu0 %v7017_v0 }
 0x13a   : > { %1168 = vmatmul.mubr.f32.gmra.mrb[6].mxu0 %v5922_v58 }
 0x13b   : > { %1172 = vmatprep.mubr.f32.mxu0 %v5791_v8  ;;  %4237 = vmatpush1.bf16.msra.mxu0 %v4236_v26  ;;  %v5935_v8 = vld [vmem:[#allocation2 + $0x4a] sm:$0xff]  ;;  %v805_v26 = vld [vmem:[#allocation7 + $0x2e0] sm:$0xff] }
 0x13c   : > { %4238 = vmatprep.subr.bf16.mxu0 %v7017_v0 }
 0x13e   : > { %1173 = vmatmul.mubr.f32.gmra.mrb[8].mxu0 %v5780_v63 }
 0x13f   : > { %1177 = vmatprep.mubr.f32.mxu0 %v5796_v12  ;;  %4240 = vmatpush1.bf16.msra.mxu0 %v4239_v39  ;;  %v792_v12 = vld [vmem:[#allocation7 + $0x278] sm:$0xff]  ;;  %v807_v39 = vld [vmem:[#allocation7 + $0x2f0] sm:$0xff] }
 0x140   : > { %4241 = vmatprep.subr.bf16.mxu0 %v7017_v0  ;;  %v4248_v1 = vpack.c.bf16 %v792_v12, %v791_v29  ;;  %v844_v29 = vld [vmem:[#allocation7 + $0x418] sm:$0xff] }
 0x142   : > { %1178 = vmatmul.mubr.f32.gmra.mrb[10].mxu0 %v5930_v4 }
 0x143   : > { %1182 = vmatprep.mubr.f32.mxu0 %v5801_v16  ;;  %4243 = vmatpush1.bf16.msra.mxu0 %v4242_v45  ;;  %v794_v16 = vld [vmem:[#allocation7 + $0x288] sm:$0xff]  ;;  %v5994_v45 = vld [vmem:[#allocation2 + $0xda] sm:$0xff] }
 0x144   : > { %4244 = vmatprep.subr.bf16.mxu0 %v7017_v0  ;;  %v4251_v18 = vpack.c.bf16 %v794_v16, %v793_v32  ;;  %v846_v32 = vld [vmem:[#allocation7 + $0x428] sm:$0xff] }
 0x146   : > { %1183 = vmatmul.mubr.f32.gmra.mrb[12].mxu0 %v5935_v8 }
 0x147   : > { %1187 = vmatprep.mubr.f32.mxu0 %v5806_v24  ;;  %4246 = vmatpush1.bf16.msra.mxu0 %v4245_v53  ;;  %v796_v24 = vld [vmem:[#allocation7 + $0x298] sm:$0xff] }
 0x148   : > { %4247 = vmatprep.subr.bf16.mxu0 %v7017_v0  ;;  %v4254_v11 = vpack.c.bf16 %v796_v24, %v795_v34  ;;  %v848_v34 = vld [vmem:[#allocation7 + $0x438] sm:$0xff] }
 0x14a   : > { %1188 = vmatmul.mubr.f32.gmra.mrb[14].mxu0 %v5940_v59 }
 0x14b   : > { %1192 = vmatprep.mubr.f32.mxu0 %v5811_v33  ;;  %4249 = vmatpush1.bf16.msra.mxu0 %v4248_v1  ;;  %v798_v33 = vld [vmem:[#allocation7 + $0x2a8] sm:$0xff]  ;;  %v845_v1 = vld [vmem:[#allocation7 + $0x420] sm:$0xff] }
 0x14c   : > { %4250 = vmatprep.subr.bf16.mxu0 %v7017_v0  ;;  %v4257_v13 = vpack.c.bf16 %v798_v33, %v797_v6  ;;  %v4330_v16 = vpack.c.bf16 %v846_v32, %v845_v1  ;;  %v850_v6 = vld [vmem:[#allocation7 + $0x448] sm:$0xff]  ;;  %v816_v1 = vld [vmem:[#allocation7 + $0x338] sm:$0xff] }
 0x14e   : > { %1193 = vmatmul.mubr.f32.gmra.mrb[16].mxu0 %v5945_v62 }
 0x14f   : > { %1197 = vmatprep.mubr.f32.mxu0 %v5816_v40  ;;  %4252 = vmatpush1.bf16.msra.mxu0 %v4251_v18  ;;  %v800_v40 = vld [vmem:[#allocation7 + $0x2b8] sm:$0xff]  ;;  %v847_v18 = vld [vmem:[#allocation7 + $0x430] sm:$0xff] }
 0x150   : > { %4253 = vmatprep.subr.bf16.mxu0 %v7017_v0  ;;  %v4260_v10 = vpack.c.bf16 %v800_v40, %v799_v15  ;;  %v4334_v24 = vpack.c.bf16 %v848_v34, %v847_v18  ;;  %v852_v15 = vld [vmem:[#allocation7 + $0x458] sm:$0xff]  ;;  %v6040_v40 = vld [vmem:[#allocation2 + $0x180] sm:$0xff] }
 0x151   : > { %v5118_v18 = vld [vmem:[#allocation2 + $0x39] sm:$0xff] }
 0x152   : > { %1198 = vmatmul.mubr.f32.gmra.mrb[18].mxu0 %v5950_v19 }
 0x153   : > { %1202 = vmatprep.mubr.f32.mxu0 %v5821_v46  ;;  %4255 = vmatpush1.bf16.msra.mxu0 %v4254_v11  ;;  %v802_v46 = vld [vmem:[#allocation7 + $0x2c8] sm:$0xff]  ;;  %v849_v11 = vld [vmem:[#allocation7 + $0x440] sm:$0xff] }
 0x154   : > { %4256 = vmatprep.subr.bf16.mxu0 %v7017_v0  ;;  %v4263_v22 = vpack.c.bf16 %v802_v46, %v801_v21  ;;  %v4338_v33 = vpack.c.bf16 %v850_v6, %v849_v11  ;;  %v853_v21 = vld [vmem:[#allocation7 + $0x460] sm:$0xff]  ;;  %v854_v46 = vld [vmem:[#allocation7 + $0x468] sm:$0xff] }
 0x155   : > { %v5119_v11 = vld [vmem:[#allocation2 + $0x49] sm:$0xff] }
 0x156   : > { %1203 = vmatmul.mubr.f32.gmra.mrb[20].mxu0 %v5955_v20 }
 0x157   : > { %1207 = vmatprep.mubr.f32.mxu0 %v5826_v57  ;;  %4258 = vmatpush1.bf16.msra.mxu0 %v4257_v13  ;;  %v804_v57 = vld [vmem:[#allocation7 + $0x2d8] sm:$0xff]  ;;  %v851_v13 = vld [vmem:[#allocation7 + $0x450] sm:$0xff] }
 0x158   : > { %4259 = vmatprep.subr.bf16.mxu0 %v7017_v0  ;;  %v4266_v31 = vpack.c.bf16 %v804_v57, %v803_v50  ;;  %v6050_v50 = vld [vmem:[#allocation2 + $0x172] sm:$0xff] }
 0x159   : > { %v855_v57 = vld [vmem:[#allocation7 + $0x470] sm:$0xff] }
 0x15a   : > { %1208 = vmatmul.mubr.f32.gmra.mrb[22].mxu0 %v5960_v23 }
 0x15b   : > { %1212 = vmatprep.mubr.f32.mxu0 %v5831_v17  ;;  %4261 = vmatpush1.bf16.msra.mxu0 %v4260_v10  ;;  %v806_v17 = vld [vmem:[#allocation7 + $0x2e8] sm:$0xff]  ;;  %v4342_v10 = vpack.c.bf16 %v852_v15, %v851_v13  ;;  %v5120_v13 = vld [vmem:[#allocation2 + $0x51] sm:$0xff] }
 0x15c   : > { %4262 = vmatprep.subr.bf16.mxu0 %v7017_v0  ;;  %v4269_v61 = vpack.c.bf16 %v806_v17, %v805_v26  ;;  %v809_v26 = vld [vmem:[#allocation7 + $0x300] sm:$0xff]  ;;  %v810_v17 = vld [vmem:[#allocation7 + $0x308] sm:$0xff] }
 0x15e   : > { %1213 = vmatmul.mubr.f32.gmra.mrb[24].mxu0 %v5965_v14 }
 0x15f   : > { %1217 = vmatprep.mubr.f32.mxu0 %v5836_v3  ;;  %4264 = vmatpush1.bf16.msra.mxu0 %v4263_v22  ;;  %v808_v3 = vld [vmem:[#allocation7 + $0x2f8] sm:$0xff]  ;;  %v6046_v22 = vld [vmem:[#allocation2 + $0x188] sm:$0xff] }
 0x160   : > { %4265 = vmatprep.subr.bf16.mxu0 %v7017_v0  ;;  %v4272_v43 = vpack.c.bf16 %v808_v3, %v807_v39  ;;  %v4275_v39 = vpack.c.bf16 %v810_v17, %v809_v26  ;;  %v811_v3 = vld [vmem:[#allocation7 + $0x310] sm:$0xff]  ;;  %v5123_v17 = vld [vmem:[#allocation2 + $0x79] sm:$0xff] }
 0x161   : > { %v827_v26 = vld [vmem:[#allocation7 + $0x390] sm:$0xff] }
 0x162   : > { %1218 = vmatmul.mubr.f32.gmra.mrb[26].mxu0 %v5970_v30 }
 0x163   : > { %1222 = vmatprep.mubr.f32.mxu0 %v5841_v35  ;;  %4267 = vmatpush1.bf16.msra.mxu0 %v4266_v31  ;;  %v5985_v35 = vld [vmem:[#allocation2 + $0xc2] sm:$0xff]  ;;  %v856_v31 = vld [vmem:[#allocation7 + $0x478] sm:$0xff] }
 0x164   : > { %4268 = vmatprep.subr.bf16.mxu0 %v7017_v0 }
 0x166   : > { %1223 = vmatmul.mubr.f32.gmra.mrb[28].mxu0 %v5975_v37 }
 0x167   : > { %1227 = vmatprep.mubr.f32.mxu0 %v5846_v36  ;;  %4270 = vmatpush1.bf16.msra.mxu0 %v4269_v61  ;;  %v5990_v36 = vld [vmem:[#allocation2 + $0xca] sm:$0xff]  ;;  %v4350_v61 = vpack.c.bf16 %v856_v31, %v855_v57 }
 0x168   : > { %4271 = vmatprep.subr.bf16.mxu0 %v7017_v0  ;;  %v5122_v57 = vld [vmem:[#allocation2 + $0x69] sm:$0xff] }
 0x16a   : > { %1228 = vmatmul.mubr.f32.gmra.mrb[30].mxu0 %v5980_v27 }
 0x16b   : > { %1232 = vmatprep.mubr.f32.mxu0 %v5850_v5  ;;  %4273 = vmatpush1.bf16.msra.mxu0 %v4272_v43  ;;  %v5998_v5 = vld [vmem:[#allocation2 + $0xe2] sm:$0xff]  ;;  %v812_v43 = vld [vmem:[#allocation7 + $0x318] sm:$0xff] }
 0x16c   : > { %4274 = vmatprep.subr.bf16.mxu0 %v7017_v0 }
 0x16e   : > { %1233 = vmatmul.mubr.f32.gmra.mrb[32].mxu0 %v5985_v35 }
 0x16f   : > { %1237 = vmatprep.mubr.f32.mxu0 %v5854_v38  ;;  %v6006_v38 = vld [vmem:[#allocation2 + $0xfa] sm:$0xff] }
 0x172   : > { %1238 = vmatmul.mubr.f32.gmra.mrb[34].mxu0 %v5990_v36 }
 0x173   : > { %1242 = vmatprep.mubr.f32.mxu0 %v5858_v7  ;;  %v6010_v7 = vld [vmem:[#allocation2 + $0x10a] sm:$0xff] }
 0x176   : > { %1243 = vmatmul.mubr.f32.gmra.mrb[36].mxu0 %v5994_v45 }
 0x177   : > { %1247 = vmatprep.mubr.f32.mxu0 %v5862_v41  ;;  %v6014_v41 = vld [vmem:[#allocation2 + $0x112] sm:$0xff] }
 0x17a   : > { %1248 = vmatmul.mubr.f32.gmra.mrb[38].mxu0 %v5998_v5 }
 0x17b   : > { %1252 = vmatprep.mubr.f32.mxu0 %v5866_v42  ;;  %v6018_v42 = vld [vmem:[#allocation2 + $0x122] sm:$0xff] }
 0x17e   : > { %1253 = vmatmul.mubr.f32.gmra.mrb[40].mxu0 %v6002_v28 }
 0x17f   : > { %1257 = vmatprep.mubr.f32.mxu0 %v5870_v44  ;;  %v841_v44 = vld [vmem:[#allocation7 + $0x400] sm:$0xff] }
 0x180   : > { %v4322_v53 = vpack.c.bf16 %v842_v51, %v841_v44  ;;  %v5115_v44 = vld [vmem:[#allocation2 + $0x19] sm:$0xff]  ;;  %v4278_v51 = vpack.c.bf16 %v812_v43, %v811_v3  ;;  %v5124_v3 = vld [vmem:[#allocation2 + $0x81] sm:$0xff] }
 0x182   : > { %1258 = vmatmul.mubr.f32.gmra.mrb[42].mxu0 %v6006_v38  ;;  %4323 = vmatprep.subr.bf16.mxu1 %v4322_v53 }
 0x183   : > { %1262 = vmatprep.mubr.f32.mxu0 %v5874_v47  ;;  %v6022_v47 = vld [vmem:[#allocation2 + $0x12a] sm:$0xff]  ;;  %4325 = vmatpush3.bf16.msra.mxu1 %v4322_v53  ;;  %v813_v53 = vld [vmem:[#allocation7 + $0x320] sm:$0xff] }
 0x186   : > { %1263 = vmatmul.mubr.f32.gmra.mrb[44].mxu0 %v6010_v7 }
 0x187   : > { %1267 = vmatprep.mubr.f32.mxu0 %v5878_v48  ;;  %v843_v48 = vld [vmem:[#allocation7 + $0x410] sm:$0xff] }
 0x188   : > { %v4326_v12 = vpack.c.bf16 %v844_v29, %v843_v48  ;;  %v814_v48 = vld [vmem:[#allocation7 + $0x328] sm:$0xff] }
 0x189   : > { %v4281_v29 = vpack.c.bf16 %v814_v48, %v813_v53  ;;  %v833_v48 = vld [vmem:[#allocation7 + $0x3c0] sm:$0xff] }
 0x18a   : > { %1268 = vmatmul.mubr.f32.gmra.mrb[46].mxu0 %v6014_v41  ;;  %4327 = vmatprep.subr.bf16.mxu1 %v4326_v12 }
 0x18b   : > { %1272 = vmatprep.mubr.f32.mxu0 %v5882_v49  ;;  %v6026_v49 = vld [vmem:[#allocation2 + $0x13a] sm:$0xff]  ;;  %4329 = vmatpush3.bf16.msra.mxu1 %v4326_v12  ;;  %v815_v12 = vld [vmem:[#allocation7 + $0x330] sm:$0xff] }
 0x18c   : > { %4331 = vmatprep.subr.bf16.mxu1 %v4330_v16  ;;  %v4284_v32 = vpack.c.bf16 %v816_v1, %v815_v12  ;;  %v835_v12 = vld [vmem:[#allocation7 + $0x3d0] sm:$0xff] }
 0x18d   : > { %v5127_v1 = vld [vmem:[#allocation2 + $0xa9] sm:$0xff] }
 0x18e   : > { %1273 = vmatmul.mubr.f32.gmra.mrb[48].mxu0 %v6018_v42 }
 0x18f   : > { %1277 = vmatprep.mubr.f32.mxu0 %v5886_v52  ;;  %v6030_v52 = vld [vmem:[#allocation2 + $0x142] sm:$0xff]  ;;  %4333 = vmatpush3.bf16.msra.mxu1 %v4330_v16 }
 0x190   : > { %4335 = vmatprep.subr.bf16.mxu1 %v4334_v24  ;;  %v817_v16 = vld [vmem:[#allocation7 + $0x340] sm:$0xff] }
 0x192   : > { %1278 = vmatmul.mubr.f32.gmra.mrb[50].mxu0 %v6022_v47 }
 0x193   : > { %1282 = vmatprep.mubr.f32.mxu0 %v5890_v54  ;;  %v6034_v54 = vld [vmem:[#allocation2 + $0x152] sm:$0xff]  ;;  %4337 = vmatpush3.bf16.msra.mxu1 %v4334_v24 }
 0x194   : > { %4339 = vmatprep.subr.bf16.mxu1 %v4338_v33  ;;  %v819_v24 = vld [vmem:[#allocation7 + $0x350] sm:$0xff] }
 0x196   : > { %1283 = vmatmul.mubr.f32.gmra.mrb[52].mxu0 %v6026_v49 }
 0x197   : > { %1287 = vmatprep.mubr.f32.mxu0 %v5898_v56  ;;  %v6038_v56 = vld [vmem:[#allocation2 + $0x15a] sm:$0xff]  ;;  %4341 = vmatpush3.bf16.msra.mxu1 %v4338_v33 }
 0x198   : > { %4343 = vmatprep.subr.bf16.mxu1 %v4342_v10  ;;  %v821_v33 = vld [vmem:[#allocation7 + $0x360] sm:$0xff] }
 0x19a   : > { %1288 = vmatmul.mubr.f32.gmra.mrb[54].mxu0 %v6030_v52 }
 0x19b   : > { %1292 = vmatprep.mubr.f32.mxu0 %v5906_v60  ;;  %v6044_v60 = vld [vmem:[#allocation2 + $0x16a] sm:$0xff]  ;;  %4345 = vmatpush3.bf16.msra.mxu1 %v4342_v10 }
 0x19c   : > { %v823_v10 = vld [vmem:[#allocation7 + $0x370] sm:$0xff] }
 0x19e   : > { %1293 = vmatmul.mubr.f32.gmra.mrb[56].mxu0 %v6034_v54 }
 0x19f   : > { %1297 = vmatprep.mubr.f32.mxu0 %v5910_v2  ;;  %v4346_v2 = vpack.c.bf16 %v854_v46, %v853_v21  ;;  %v5121_v21 = vld [vmem:[#allocation2 + $0x61] sm:$0xff] }
 0x1a1   : > { %4347 = vmatprep.subr.bf16.mxu1 %v4346_v2 }
 0x1a2   : > { %1298 = vmatmul.mubr.f32.gmra.mrb[58].mxu0 %v6038_v56  ;;  %4349 = vmatpush3.bf16.msra.mxu1 %v4346_v2  ;;  %v825_v2 = vld [vmem:[#allocation7 + $0x380] sm:$0xff] }
 0x1a3   : > { %1302 = vmatprep.mubr.f32.mxu0 %v6040_v40  ;;  %4351 = vmatprep.subr.bf16.mxu1 %v4350_v61 }
 0x1a6   : > { %1303 = vmatmul.mubr.f32.gmra.mrb[60].mxu0 %v6044_v60  ;;  %4353 = vmatpush3.bf16.msra.mxu1 %v4350_v61 }
 0x1a7   : > { %1307 = vmatprep.mubr.f32.mxu0 %v6046_v22  ;;  %4354 = vmatprep.subr.bf16.mxu1 %v7017_v0 }
 0x1a9   : > { %4003 = vmatmul.mubr.f32.vlgmr.msra.gmra.mrb[0].mxu1 %v5930_v4 }
 0x1aa   : > { %1308 = vmatmul.mubr.f32.gmra.mrb[62].mxu0 %v6050_v50  ;;  %4005 = vmatprep.mubr.f32.mxu1 %v5935_v8 }
 0x1ab   : > { %1377 = vmatprep.mubr.f32.mxu0 %v5917_v25  ;;  %v5116_v25 = vld [vmem:[#allocation2 + $0x21] sm:$0xff] }
 0x1ad   : > { %4006 = vmatmul.mubr.f32.gmra.mrb[2].mxu1 %v5940_v59 }
 0x1ae   : > { %1378 = vmatmul.mubr.f32.vlgmr.msra.gmra.mrb[0].mxu0 %v5115_v44  ;;  %4008 = vmatprep.mubr.f32.mxu1 %v5945_v62  ;;  %v831_v44 = vld [vmem:[#allocation7 + $0x3b0] sm:$0xff] }
 0x1af   : > { %4276 = vmatpush1.bf16.msra.mxu0 %v4275_v39  ;;  %1382 = vmatprep.mubr.f32.mxu0 %v5922_v58  ;;  %v5117_v58 = vld [vmem:[#allocation2 + $0x31] sm:$0xff]  ;;  %v829_v39 = vld [vmem:[#allocation7 + $0x3a0] sm:$0xff] }
 0x1b0   : > { %4277 = vmatprep.subr.bf16.mxu0 %v7017_v0 }
 0x1b1   : > { %4009 = vmatmul.mubr.f32.gmra.mrb[4].mxu1 %v5950_v19 }
 0x1b2   : > { %1383 = vmatmul.mubr.f32.gmra.mrb[2].mxu0 %v5116_v25  ;;  %4011 = vmatprep.mubr.f32.mxu1 %v5955_v20  ;;  %v5126_v25 = vld [vmem:[#allocation2 + $0x99] sm:$0xff] }
 0x1b3   : > { %1387 = vmatprep.mubr.f32.mxu0 %v5780_v63  ;;  %4279 = vmatpush1.bf16.msra.mxu0 %v4278_v51  ;;  %v818_v63 = vld [vmem:[#allocation7 + $0x348] sm:$0xff]  ;;  %v5125_v51 = vld [vmem:[#allocation2 + $0x91] sm:$0xff] }
 0x1b4   : > { %4280 = vmatprep.subr.bf16.mxu0 %v7017_v0  ;;  %v4287_v34 = vpack.c.bf16 %v818_v63, %v817_v16  ;;  %v5128_v16 = vld [vmem:[#allocation2 + $0xb1] sm:$0xff] }
 0x1b5   : > { %4012 = vmatmul.mubr.f32.gmra.mrb[6].mxu1 %v5960_v23 }
 0x1b6   : > { %1388 = vmatmul.mubr.f32.gmra.mrb[4].mxu0 %v5117_v58  ;;  %4014 = vmatprep.mubr.f32.mxu1 %v5965_v14 }
 0x1b7   : > { %1392 = vmatprep.mubr.f32.mxu0 %v5930_v4  ;;  %4282 = vmatpush1.bf16.msra.mxu0 %v4281_v29  ;;  %v820_v4 = vld [vmem:[#allocation7 + $0x358] sm:$0xff] }
 0x1b8   : > { %4283 = vmatprep.subr.bf16.mxu0 %v7017_v0  ;;  %v4290_v6 = vpack.c.bf16 %v820_v4, %v819_v24  ;;  %v615_v24 = vld [vmem:[#allocation2 + $0x18a] sm:$0xff]  ;;  %v5129_v4 = vld [vmem:[#allocation2 + $0xc1] sm:$0xff] }
 0x1b9   : > { %4015 = vmatmul.mubr.f32.gmra.mrb[8].mxu1 %v5970_v30 }
 0x1ba   : > { %1393 = vmatmul.mubr.f32.gmra.mrb[6].mxu0 %v5118_v18  ;;  %4017 = vmatprep.mubr.f32.mxu1 %v5975_v37  ;;  %v614_v18 = vld [vmem:[#allocation2 + $0x182] sm:$0xff] }
 0x1bb   : > { %1397 = vmatprep.mubr.f32.mxu0 %v5935_v8  ;;  %4285 = vmatpush1.bf16.msra.mxu0 %v4284_v32  ;;  %v822_v8 = vld [vmem:[#allocation7 + $0x368] sm:$0xff]  ;;  %v837_v32 = vld [vmem:[#allocation7 + $0x3e0] sm:$0xff] }
 0x1bc   : > { %4286 = vmatprep.subr.bf16.mxu0 %v7017_v0  ;;  %v4293_v15 = vpack.c.bf16 %v822_v8, %v821_v33  ;;  %v5132_v33 = vld [vmem:[#allocation2 + $0xe1] sm:$0xff]  ;;  %v5133_v8 = vld [vmem:[#allocation2 + $0xf1] sm:$0xff] }
 0x1bd   : > { %4018 = vmatmul.mubr.f32.gmra.mrb[10].mxu1 %v5980_v27 }
 0x1be   : > { %1398 = vmatmul.mubr.f32.gmra.mrb[8].mxu0 %v5119_v11  ;;  %4020 = vmatprep.mubr.f32.mxu1 %v5985_v35 }
 0x1bf   : > { %1402 = vmatprep.mubr.f32.mxu0 %v5940_v59  ;;  %4288 = vmatpush1.bf16.msra.mxu0 %v4287_v34  ;;  %v824_v59 = vld [vmem:[#allocation7 + $0x378] sm:$0xff] }
 0x1c0   : > { %4289 = vmatprep.subr.bf16.mxu0 %v7017_v0  ;;  %v4296_v46 = vpack.c.bf16 %v824_v59, %v823_v10  ;;  %v840_v34 = vld [vmem:[#allocation7 + $0x3f8] sm:$0xff]  ;;  %v2344_v10 = vld [vmem:[#allocation9 + $0x8] sm:$0xff]  ;;  %v617_v59 = vld [vmem:[#allocation2 + $0x30] sm:$0xff] }
 0x1c1   : > { %4021 = vmatmul.mubr.f32.gmra.mrb[12].mxu1 %v5990_v36 }
 0x1c2   : > { %1403 = vmatmul.mubr.f32.gmra.mrb[10].mxu0 %v5120_v13  ;;  %4023 = vmatprep.mubr.f32.mxu1 %v5994_v45  ;;  %v5135_v13 = vld [vmem:[#allocation2 + $0x109] sm:$0xff] }
 0x1c3   : > { %1407 = vmatprep.mubr.f32.mxu0 %v5945_v62  ;;  %4291 = vmatpush1.bf16.msra.mxu0 %v4290_v6  ;;  %v826_v62 = vld [vmem:[#allocation7 + $0x388] sm:$0xff] }
 0x1c4   : > { %4292 = vmatprep.subr.bf16.mxu0 %v7017_v0  ;;  %v4299_v31 = vpack.c.bf16 %v826_v62, %v825_v2  ;;  %v5130_v6 = vld [vmem:[#allocation2 + $0xc9] sm:$0xff] }
 0x1c5   : > { %4024 = vmatmul.mubr.f32.gmra.mrb[14].mxu1 %v5998_v5  ;;  %v2348_v62 = vld [vmem:[#allocation9 + $0x28] sm:$0xff] }
 0x1c6   : > { %1408 = vmatmul.mubr.f32.gmra.mrb[12].mxu0 %v5121_v21  ;;  %4026 = vmatprep.mubr.f32.mxu1 %v6002_v28 }
 0x1c7   : > { %1412 = vmatprep.mubr.f32.mxu0 %v5950_v19  ;;  %4294 = vmatpush1.bf16.msra.mxu0 %v4293_v15  ;;  %v828_v19 = vld [vmem:[#allocation7 + $0x398] sm:$0xff] }
 0x1c8   : > { %4295 = vmatprep.subr.bf16.mxu0 %v7017_v0  ;;  %v4302_v61 = vpack.c.bf16 %v828_v19, %v827_v26  ;;  %v649_v15 = vld [vmem:[#allocation2 + $0x31] sm:$0xff] }
 0x1c9   : > { %4027 = vmatmul.mubr.f32.gmra.mrb[16].mxu1 %v6006_v38  ;;  %v2349_v26 = vld [vmem:[#allocation9 + $0x30] sm:$0xff]  ;;  %v2350_v19 = vld [vmem:[#allocation9 + $0x38] sm:$0xff] }
 0x1ca   : > { %1413 = vmatmul.mubr.f32.gmra.mrb[14].mxu0 %v5122_v57  ;;  %4029 = vmatprep.mubr.f32.mxu1 %v6010_v7  ;;  %v618_v57 = vld [vmem:[#allocation2 + $0x38] sm:$0xff] }
 0x1cb   : > { %1417 = vmatprep.mubr.f32.mxu0 %v5955_v20  ;;  %4297 = vmatpush1.bf16.msra.mxu0 %v4296_v46  ;;  %v830_v20 = vld [vmem:[#allocation7 + $0x3a8] sm:$0xff]  ;;  %v650_v46 = vld [vmem:[#allocation2 + $0x39] sm:$0xff] }
 0x1cc   : > { %4298 = vmatprep.subr.bf16.mxu0 %v7017_v0  ;;  %v4305_v43 = vpack.c.bf16 %v830_v20, %v829_v39  ;;  %v2472_v39 = vld [vmem:[#allocation9 + $0x408] sm:$0xff]  ;;  %v652_v20 = vld [vmem:[#allocation2 + $0x51] sm:$0xff] }
 0x1cd   : > { %4030 = vmatmul.mubr.f32.gmra.mrb[18].mxu1 %v6014_v41 }
 0x1ce   : > { %1418 = vmatmul.mubr.f32.gmra.mrb[16].mxu0 %v5123_v17  ;;  %4032 = vmatprep.mubr.f32.mxu1 %v6018_v42  ;;  %v2471_v17 = vld [vmem:[#allocation9 + $0x400] sm:$0xff] }
 0x1cf   : > { %1422 = vmatprep.mubr.f32.mxu0 %v5960_v23  ;;  %4300 = vmatpush1.bf16.msra.mxu0 %v4299_v31  ;;  %v832_v23 = vld [vmem:[#allocation7 + $0x3b8] sm:$0xff]  ;;  %v651_v31 = vld [vmem:[#allocation2 + $0x49] sm:$0xff] }
 0x1d0   : > { %4301 = vmatprep.subr.bf16.mxu0 %v7017_v0  ;;  %v4308_v53 = vpack.c.bf16 %v832_v23, %v831_v44  ;;  %v2351_v44 = vld [vmem:[#allocation9 + $0x40] sm:$0xff]  ;;  %v2352_v23 = vld [vmem:[#allocation9 + $0x48] sm:$0xff] }
 0x1d1   : > { %4033 = vmatmul.mubr.f32.gmra.mrb[20].mxu1 %v6022_v47 }
 0x1d2   : > { %1423 = vmatmul.mubr.f32.gmra.mrb[18].mxu0 %v5124_v3  ;;  %4035 = vmatprep.mubr.f32.mxu1 %v6026_v49  ;;  %v6130_v3 = vpack.c.bf16 %v2472_v39, %v2471_v17  ;;  %v665_v17 = vld [vmem:[#allocation2 + $0xf1] sm:$0xff]  ;;  %v666_v39 = vld [vmem:[#allocation2 + $0xf9] sm:$0xff] }
 0x1d3   : > { %1427 = vmatprep.mubr.f32.mxu0 %v5965_v14  ;;  %4303 = vmatpush1.bf16.msra.mxu0 %v4302_v61  ;;  %v834_v14 = vld [vmem:[#allocation7 + $0x3c8] sm:$0xff] }
 0x1d4   : > { %4304 = vmatprep.subr.bf16.mxu0 %v7017_v0  ;;  %v4311_v29 = vpack.c.bf16 %v834_v14, %v833_v48  ;;  %v619_v61 = vld [vmem:[#allocation2 + $0x48] sm:$0xff]  ;;  %7059 = vst [vmem:[#allocation14_spill] sm:$0xff] %v6130_v3  ;;  %v4367_v48 = vpack.c.bf16 %v2352_v23, %v2351_v44  ;;  %v2353_v14 = vld [vmem:[#allocation9 + $0x50] sm:$0xff] }
 0x1d5   : > { %4036 = vmatmul.mubr.f32.gmra.mrb[22].mxu1 %v6030_v52  ;;  %v635_v44 = vld [vmem:[#allocation2 + $0x108] sm:$0xff]  ;;  %v668_v23 = vld [vmem:[#allocation2 + $0x111] sm:$0xff] }
 0x1d6   : > { %1428 = vmatmul.mubr.f32.gmra.mrb[20].mxu0 %v5125_v51  ;;  %4038 = vmatprep.mubr.f32.mxu1 %v6034_v54  ;;  %v620_v51 = vld [vmem:[#allocation2 + $0x50] sm:$0xff] }
 0x1d7   : > { %1432 = vmatprep.mubr.f32.mxu0 %v5970_v30  ;;  %4306 = vmatpush1.bf16.msra.mxu0 %v4305_v43  ;;  %v836_v30 = vld [vmem:[#allocation7 + $0x3d8] sm:$0xff]  ;;  %v4364_v43 = vpack.c.bf16 %v2350_v19, %v2349_v26  ;;  %v664_v26 = vld [vmem:[#allocation2 + $0xe1] sm:$0xff] }
 0x1d8   : > { %4307 = vmatprep.subr.bf16.mxu0 %v7017_v0  ;;  %v4314_v58 = vpack.c.bf16 %v836_v30, %v835_v12  ;;  %v654_v12 = vld [vmem:[#allocation2 + $0x69] sm:$0xff]  ;;  %v632_v19 = vld [vmem:[#allocation2 + $0xe0] sm:$0xff] }
 0x1d9   : > { %4039 = vmatmul.mubr.f32.gmra.mrb[24].mxu1 %v6038_v56 }
 0x1da   : > { %1433 = vmatmul.mubr.f32.gmra.mrb[22].mxu0 %v5126_v25  ;;  %4041 = vmatprep.mubr.f32.mxu1 %v6044_v60  ;;  %v2354_v25 = vld [vmem:[#allocation9 + $0x58] sm:$0xff] }
 0x1db   : > { %1437 = vmatprep.mubr.f32.mxu0 %v5975_v37  ;;  %4309 = vmatpush1.bf16.msra.mxu0 %v4308_v53  ;;  %v838_v37 = vld [vmem:[#allocation7 + $0x3e8] sm:$0xff]  ;;  %v4370_v30 = vpack.c.bf16 %v2354_v25, %v2353_v14 }
 0x1dc   : > { %4310 = vmatprep.subr.bf16.mxu0 %v7017_v0  ;;  %v4317_v63 = vpack.c.bf16 %v838_v37, %v837_v32  ;;  %v653_v53 = vld [vmem:[#allocation2 + $0x61] sm:$0xff]  ;;  %v655_v37 = vld [vmem:[#allocation2 + $0x79] sm:$0xff] }
 0x1dd   : > { %4042 = vmatmul.mubr.f32.gmra.mrb[26].mxu1 %v6050_v50  ;;  %v622_v32 = vld [vmem:[#allocation2 + $0x68] sm:$0xff] }
 0x1de   : > { %1438 = vmatmul.mubr.f32.gmra.mrb[24].mxu0 %v5127_v1  ;;  %4044 = vmatprep.mubr.f32.mxu1 %v614_v18  ;;  %v2355_v1 = vld [vmem:[#allocation9 + $0x60] sm:$0xff]  ;;  %v2372_v14 = vld [vmem:[#allocation9 + $0xe8] sm:$0xff] }
 0x1df   : > { %1442 = vmatprep.mubr.f32.mxu0 %v5980_v27  ;;  %4312 = vmatpush1.bf16.msra.mxu0 %v4311_v29  ;;  %v839_v27 = vld [vmem:[#allocation7 + $0x3f0] sm:$0xff]  ;;  %v621_v29 = vld [vmem:[#allocation2 + $0x60] sm:$0xff] }
 0x1e0   : > { %4313 = vmatprep.subr.bf16.mxu0 %v7017_v0  ;;  %v4320_v11 = vpack.c.bf16 %v840_v34, %v839_v27  ;;  %v623_v27 = vld [vmem:[#allocation2 + $0x78] sm:$0xff]  ;;  %v656_v34 = vld [vmem:[#allocation2 + $0x81] sm:$0xff] }
 0x1e1   : > { %4045 = vmatmul.mubr.f32.gmra.mrb[28].mxu1 %v615_v24 }
 0x1e2   : > { %1443 = vmatmul.mubr.f32.gmra.mrb[26].mxu0 %v5128_v16 }
 0x1e3   : > { %1447 = vmatprep.mubr.f32.mxu0 %v5985_v35  ;;  %4315 = vmatpush1.bf16.msra.mxu0 %v4314_v58  ;;  %v5131_v35 = vld [vmem:[#allocation2 + $0xd9] sm:$0xff]  ;;  %v2356_v58 = vld [vmem:[#allocation9 + $0x68] sm:$0xff] }
 0x1e4   : > { %4316 = vmatprep.subr.bf16.mxu0 %v7017_v0  ;;  %v4373_v16 = vpack.c.bf16 %v2356_v58, %v2355_v1  ;;  %v2374_v1 = vld [vmem:[#allocation9 + $0xf8] sm:$0xff]  ;;  %v2473_v58 = vld [vmem:[#allocation9 + $0x410] sm:$0xff] }
 0x1e6   : > { %1448 = vmatmul.mubr.f32.gmra.mrb[28].mxu0 %v5129_v4  ;;  %v2359_v4 = vld [vmem:[#allocation9 + $0x80] sm:$0xff] }
 0x1e7   : > { %1452 = vmatprep.mubr.f32.mxu0 %v5990_v36  ;;  %4318 = vmatpush1.bf16.msra.mxu0 %v4317_v63  ;;  %v5134_v36 = vld [vmem:[#allocation2 + $0xf9] sm:$0xff]  ;;  %v2357_v63 = vld [vmem:[#allocation9 + $0x70] sm:$0xff] }
 0x1e8   : > { %4319 = vmatprep.subr.bf16.mxu0 %v7017_v0 }
 0x1ea   : > { %1453 = vmatmul.mubr.f32.gmra.mrb[30].mxu0 %v5130_v6  ;;  %v624_v6 = vld [vmem:[#allocation2 + $0x80] sm:$0xff] }
 0x1eb   : > { %1457 = vmatprep.mubr.f32.mxu0 %v5994_v45  ;;  %4321 = vmatpush1.bf16.msra.mxu0 %v4320_v11  ;;  %v5136_v45 = vld [vmem:[#allocation2 + $0x111] sm:$0xff]  ;;  %v2360_v11 = vld [vmem:[#allocation9 + $0x88] sm:$0xff] }
 0x1ec   : > { %4547 = vmatprep.subr.bf16.mxu0 %v6130_v3 }
 0x1ee   : > { %1458 = vmatmul.mubr.f32.gmra.mrb[32].mxu0 %v5131_v35  ;;  %v657_v35 = vld [vmem:[#allocation2 + $0x91] sm:$0xff] }
 0x1ef   : > { %1462 = vmatprep.mubr.f32.mxu0 %v5998_v5  ;;  %v5137_v5 = vld [vmem:[#allocation2 + $0x121] sm:$0xff] }
 0x1f2   : > { %1463 = vmatmul.mubr.f32.gmra.mrb[34].mxu0 %v5132_v33  ;;  %v4379_v33 = vpack.c.bf16 %v2360_v11, %v2359_v4  ;;  %v2475_v4 = vld [vmem:[#allocation9 + $0x420] sm:$0xff]  ;;  %v2476_v11 = vld [vmem:[#allocation9 + $0x428] sm:$0xff] }
 0x1f3   : > { %1467 = vmatprep.mubr.f32.mxu0 %v6002_v28  ;;  %v5138_v28 = vld [vmem:[#allocation2 + $0x129] sm:$0xff] }
 0x1f6   : > { %1468 = vmatmul.mubr.f32.gmra.mrb[36].mxu0 %v5133_v8  ;;  %v2361_v8 = vld [vmem:[#allocation9 + $0x90] sm:$0xff] }
 0x1f7   : > { %1472 = vmatprep.mubr.f32.mxu0 %v6006_v38  ;;  %v5139_v38 = vld [vmem:[#allocation2 + $0x139] sm:$0xff] }
 0x1fa   : > { %1473 = vmatmul.mubr.f32.gmra.mrb[38].mxu0 %v5134_v36  ;;  %v2362_v36 = vld [vmem:[#allocation9 + $0x98] sm:$0xff] }
 0x1fb   : > { %1477 = vmatprep.mubr.f32.mxu0 %v6010_v7  ;;  %v5140_v7 = vld [vmem:[#allocation2 + $0x141] sm:$0xff] }
 0x1fe   : > { %1478 = vmatmul.mubr.f32.gmra.mrb[40].mxu0 %v5135_v13  ;;  %v625_v13 = vld [vmem:[#allocation2 + $0x90] sm:$0xff] }
 0x1ff   : > { %1482 = vmatprep.mubr.f32.mxu0 %v6014_v41  ;;  %v5141_v41 = vld [vmem:[#allocation2 + $0x151] sm:$0xff] }
 0x202   : > { %1483 = vmatmul.mubr.f32.gmra.mrb[42].mxu0 %v5136_v45  ;;  %v658_v45 = vld [vmem:[#allocation2 + $0x99] sm:$0xff] }
 0x203   : > { %1487 = vmatprep.mubr.f32.mxu0 %v6018_v42  ;;  %v5142_v42 = vld [vmem:[#allocation2 + $0x159] sm:$0xff] }
 0x206   : > { %1488 = vmatmul.mubr.f32.gmra.mrb[44].mxu0 %v5137_v5  ;;  %v4382_v5 = vpack.c.bf16 %v2362_v36, %v2361_v8  ;;  %v672_v8 = vld [vmem:[#allocation2 + $0x141] sm:$0xff]  ;;  %v2087_v36 = vld [vmem:[#allocation3 + $0x9] sm:$0xff] }
 0x207   : > { %1492 = vmatprep.mubr.f32.mxu0 %v6022_v47  ;;  %v5143_v47 = vld [vmem:[#allocation2 + $0x169] sm:$0xff] }
 0x20a   : > { %1493 = vmatmul.mubr.f32.gmra.mrb[46].mxu0 %v5138_v28  ;;  %v2363_v28 = vld [vmem:[#allocation9 + $0xa0] sm:$0xff] }
 0x20b   : > { %1497 = vmatprep.mubr.f32.mxu0 %v6026_v49  ;;  %v5144_v49 = vld [vmem:[#allocation2 + $0x171] sm:$0xff] }
 0x20e   : > { %1498 = vmatmul.mubr.f32.gmra.mrb[48].mxu0 %v5139_v38  ;;  %v2364_v38 = vld [vmem:[#allocation9 + $0xa8] sm:$0xff] }
 0x20f   : > { %1502 = vmatprep.mubr.f32.mxu0 %v6030_v52  ;;  %v711_v52 = vld [vmem:[#allocation2 + $0x19a] sm:$0xff] }
 0x210   : > { %4047 = vmatprep.mubr.f32.mxu1 %v711_v52  ;;  %v627_v52 = vld [vmem:[#allocation2 + $0xa8] sm:$0xff] }
 0x212   : > { %1503 = vmatmul.mubr.f32.gmra.mrb[50].mxu0 %v5140_v7  ;;  %v626_v7 = vld [vmem:[#allocation2 + $0x98] sm:$0xff] }
 0x213   : > { %1507 = vmatprep.mubr.f32.mxu0 %v6034_v54  ;;  %v712_v54 = vld [vmem:[#allocation2 + $0x1a2] sm:$0xff] }
 0x214   : > { %4048 = vmatmul.mubr.f32.gmra.mrb[30].mxu1 %v712_v54  ;;  %v660_v54 = vld [vmem:[#allocation2 + $0xb1] sm:$0xff] }
 0x216   : > { %1508 = vmatmul.mubr.f32.gmra.mrb[52].mxu0 %v5141_v41  ;;  %v659_v41 = vld [vmem:[#allocation2 + $0xa9] sm:$0xff] }
 0x217   : > { %1512 = vmatprep.mubr.f32.mxu0 %v6038_v56  ;;  %v2343_v56 = vld [vmem:[#allocation9] sm:$0xff] }
 0x218   : > { %v4355_v21 = vpack.c.bf16 %v2344_v10, %v2343_v56  ;;  %v2367_v56 = vld [vmem:[#allocation9 + $0xc0] sm:$0xff]  ;;  %v2368_v10 = vld [vmem:[#allocation9 + $0xc8] sm:$0xff] }
 0x21a   : > { %1513 = vmatmul.mubr.f32.gmra.mrb[54].mxu0 %v5142_v42  ;;  %4356 = vmatpush1.bf16.msra.mxu1 %v4355_v21  ;;  %v4385_v42 = vpack.c.bf16 %v2364_v38, %v2363_v28  ;;  %v4391_v21 = vpack.c.bf16 %v2368_v10, %v2367_v56  ;;  %v673_v38 = vld [vmem:[#allocation2 + $0x151] sm:$0xff]  ;;  %v2375_v56 = vld [vmem:[#allocation9 + $0x100] sm:$0xff]  ;;  %v2376_v10 = vld [vmem:[#allocation9 + $0x108] sm:$0xff] }
 0x21b   : > { %1517 = vmatprep.mubr.f32.mxu0 %v6044_v60  ;;  %v2345_v60 = vld [vmem:[#allocation9 + $0x10] sm:$0xff]  ;;  %4357 = vmatprep.subr.bf16.mxu1 %v7017_v0 }
 0x21e   : > { %1518 = vmatmul.mubr.f32.gmra.mrb[56].mxu0 %v5143_v47  ;;  %v2365_v47 = vld [vmem:[#allocation9 + $0xb0] sm:$0xff] }
 0x21f   : > { %1522 = vmatprep.mubr.f32.mxu0 %v6050_v50  ;;  %v2346_v50 = vld [vmem:[#allocation9 + $0x18] sm:$0xff] }
 0x220   : > { %v4358_v2 = vpack.c.bf16 %v2346_v50, %v2345_v60  ;;  %v628_v60 = vld [vmem:[#allocation2 + $0xb0] sm:$0xff] }
 0x221   : > { %v2369_v50 = vld [vmem:[#allocation9 + $0xd0] sm:$0xff] }
 0x222   : > { %1523 = vmatmul.mubr.f32.gmra.mrb[58].mxu0 %v5144_v49  ;;  %4359 = vmatpush1.bf16.msra.mxu1 %v4358_v2  ;;  %v2366_v49 = vld [vmem:[#allocation9 + $0xb8] sm:$0xff]  ;;  %v629_v2 = vld [vmem:[#allocation2 + $0xc0] sm:$0xff] }
 0x223   : > { %1527 = vmatprep.mubr.f32.mxu0 %v614_v18  ;;  %4360 = vmatprep.subr.bf16.mxu1 %v7017_v0  ;;  %v2358_v18 = vld [vmem:[#allocation9 + $0x78] sm:$0xff] }
 0x226   : > { %1528 = vmatmul.mubr.f32.gmra.mrb[60].mxu0 %v5893_v55  ;;  %v2347_v55 = vld [vmem:[#allocation9 + $0x20] sm:$0xff] }
 0x227   : > { %1532 = vmatprep.mubr.f32.mxu0 %v615_v24  ;;  %v4376_v24 = vpack.c.bf16 %v2358_v18, %v2357_v63  ;;  %v671_v18 = vld [vmem:[#allocation2 + $0x139] sm:$0xff] }
 0x22a   : > { %1533 = vmatmul.mubr.f32.gmra.mrb[62].mxu0 %v5901_v9  ;;  %v4361_v9 = vpack.c.bf16 %v2348_v62, %v2347_v55  ;;  %v662_v55 = vld [vmem:[#allocation2 + $0xc9] sm:$0xff] }
 0x22b   : > { %1602 = vmatprep.mubr.f32.mxu0 %v649_v15  ;;  %v4388_v15 = vpack.c.bf16 %v2366_v49, %v2365_v47  ;;  %v2479_v47 = vld [vmem:[#allocation9 + $0x440] sm:$0xff]  ;;  %v2480_v49 = vld [vmem:[#allocation9 + $0x448] sm:$0xff] }
 0x22c   : > { %4362 = vmatpush1.bf16.msra.mxu1 %v4361_v9  ;;  %v631_v9 = vld [vmem:[#allocation2 + $0xd8] sm:$0xff] }
 0x22d   : > { %4363 = vmatprep.subr.bf16.mxu1 %v7017_v0 }
 0x22e   : > { %1603 = vmatmul.mubr.f32.vlgmr.msra.gmra.mrb[0].mxu0 %v617_v59  ;;  %v661_v59 = vld [vmem:[#allocation2 + $0xc1] sm:$0xff] }
 0x22f   : > { %1607 = vmatprep.mubr.f32.mxu0 %v650_v46  ;;  %4549 = vmatpush3.bf16.msra.mxu0 %v6130_v3  ;;  %v2370_v46 = vld [vmem:[#allocation9 + $0xd8] sm:$0xff] }
 0x230   : > { %4365 = vmatpush1.bf16.msra.mxu1 %v4364_v43  ;;  %v4394_v62 = vpack.c.bf16 %v2370_v46, %v2369_v50  ;;  %v667_v43 = vld [vmem:[#allocation2 + $0x109] sm:$0xff]  ;;  %v642_v50 = vld [vmem:[#allocation2 + $0x158] sm:$0xff] }
 0x231   : > { %4366 = vmatprep.subr.bf16.mxu1 %v7017_v0 }
 0x232   : > { %1608 = vmatmul.mubr.f32.gmra.mrb[2].mxu0 %v618_v57  ;;  %v630_v57 = vld [vmem:[#allocation2 + $0xc8] sm:$0xff] }
 0x233   : > { %1612 = vmatprep.mubr.f32.mxu0 %v651_v31  ;;  %v663_v31 = vld [vmem:[#allocation2 + $0xd9] sm:$0xff] }
 0x234   : > { %4368 = vmatpush1.bf16.msra.mxu1 %v4367_v48  ;;  %v2371_v48 = vld [vmem:[#allocation9 + $0xe0] sm:$0xff] }
 0x235   : > { %4369 = vmatprep.subr.bf16.mxu1 %v7017_v0  ;;  %v4397_v25 = vpack.c.bf16 %v2372_v14, %v2371_v48  ;;  %v5146_v48 = vld [vmem:[#allocation2 + $0x181] sm:$0xff] }
 0x236   : > { %1613 = vmatmul.mubr.f32.gmra.mrb[4].mxu0 %v619_v61  ;;  %v633_v61 = vld [vmem:[#allocation2 + $0xf0] sm:$0xff]  ;;  %v2379_v14 = vld [vmem:[#allocation9 + $0x120] sm:$0xff] }
 0x237   : > { %1617 = vmatprep.mubr.f32.mxu0 %v652_v20  ;;  %v634_v20 = vld [vmem:[#allocation2 + $0xf8] sm:$0xff] }
 0x238   : > { %4371 = vmatpush1.bf16.msra.mxu1 %v4370_v30  ;;  %v2373_v30 = vld [vmem:[#allocation9 + $0xf0] sm:$0xff] }
 0x239   : > { %4372 = vmatprep.subr.bf16.mxu1 %v7017_v0 }
 0x23a   : > { %1618 = vmatmul.mubr.f32.gmra.mrb[6].mxu0 %v620_v51  ;;  %v636_v51 = vld [vmem:[#allocation2 + $0x110] sm:$0xff] }
 0x23b   : > { %1622 = vmatprep.mubr.f32.mxu0 %v653_v53  ;;  %v669_v53 = vld [vmem:[#allocation2 + $0x121] sm:$0xff] }
 0x23c   : > { %4374 = vmatpush1.bf16.msra.mxu1 %v4373_v16  ;;  %v638_v16 = vld [vmem:[#allocation2 + $0x128] sm:$0xff] }
 0x23d   : > { %4375 = vmatprep.subr.bf16.mxu1 %v7017_v0 }
 0x23e   : > { %1623 = vmatmul.mubr.f32.gmra.mrb[8].mxu0 %v621_v29  ;;  %v637_v29 = vld [vmem:[#allocation2 + $0x120] sm:$0xff] }
 0x23f   : > { %1627 = vmatprep.mubr.f32.mxu0 %v654_v12  ;;  %v670_v12 = vld [vmem:[#allocation2 + $0x129] sm:$0xff] }
 0x240   : > { %4377 = vmatpush1.bf16.msra.mxu1 %v4376_v24 }
 0x241   : > { %4378 = vmatprep.subr.bf16.mxu1 %v7017_v0 }
 0x242   : > { %1628 = vmatmul.mubr.f32.gmra.mrb[10].mxu0 %v622_v32  ;;  %v2474_v32 = vld [vmem:[#allocation9 + $0x418] sm:$0xff] }
 0x243   : > { %1632 = vmatprep.mubr.f32.mxu0 %v655_v37  ;;  %v4400_v37 = vpack.c.bf16 %v2374_v1, %v2373_v30  ;;  %v6147_v63 = vpack.c.bf16 %v2474_v32, %v2473_v58  ;;  %v679_v30 = vld [vmem:[#allocation2 + $0x199] sm:$0xff] }
 0x244   : > { %4380 = vmatpush1.bf16.msra.mxu1 %v4379_v33  ;;  %v6156_v33 = vpack.c.bf16 %v2476_v11, %v2475_v4  ;;  %v647_v32 = vld [vmem:[#allocation2 + $0x198] sm:$0xff]  ;;  %v2384_v11 = vld [vmem:[#allocation9 + $0x148] sm:$0xff] }
 0x245   : > { %4381 = vmatprep.subr.bf16.mxu1 %v7017_v0  ;;  %7060 = vst [vmem:[#allocation15_spill] sm:$0xff] %v6147_v63  ;;  %4551 = vmatprep.subr.bf16.mxu0 %v6147_v63 }
 0x246   : > { %1633 = vmatmul.mubr.f32.gmra.mrb[12].mxu0 %v623_v27  ;;  %7061 = vst [vmem:[#allocation16_spill] sm:$0xff] %v6156_v33 }
 0x247   : > { %1637 = vmatprep.mubr.f32.mxu0 %v656_v34  ;;  %v2086_v34 = vld [vmem:[#allocation3 + $0x1] sm:$0xff]  ;;  %4553 = vmatpush3.bf16.msra.mxu0 %v6147_v63 }
 0x248   : > { %4383 = vmatpush1.bf16.msra.mxu1 %v4382_v5  ;;  %2557 = vmatprep.mubr.f32.mxu1 %v2086_v34  ;;  %v640_v5 = vld [vmem:[#allocation2 + $0x140] sm:$0xff] }
 0x249   : > { %4384 = vmatprep.subr.bf16.mxu1 %v7017_v0  ;;  %4555 = vmatprep.subr.bf16.mxu0 %v6156_v33 }
 0x24a   : > { %1638 = vmatmul.mubr.f32.gmra.mrb[14].mxu0 %v624_v6  ;;  %v2054_v6 = vld [vmem:[#allocation3] sm:$0xff] }
 0x24b   : > { %1642 = vmatprep.mubr.f32.mxu0 %v657_v35  ;;  %v639_v35 = vld [vmem:[#allocation2 + $0x138] sm:$0xff]  ;;  %4557 = vmatpush3.bf16.msra.mxu0 %v6156_v33 }
 0x24c   : > { %4386 = vmatpush1.bf16.msra.mxu1 %v4385_v42 }
 0x24d   : > { %4387 = vmatprep.subr.bf16.mxu1 %v7017_v0 }
 0x24e   : > { %1643 = vmatmul.mubr.f32.gmra.mrb[16].mxu0 %v625_v13  ;;  %v2477_v13 = vld [vmem:[#allocation9 + $0x430] sm:$0xff] }
 0x24f   : > { %1647 = vmatprep.mubr.f32.mxu0 %v658_v45  ;;  %v2478_v45 = vld [vmem:[#allocation9 + $0x438] sm:$0xff] }
 0x250   : > { %4389 = vmatpush1.bf16.msra.mxu1 %v4388_v15  ;;  %v6160_v28 = vpack.c.bf16 %v2478_v45, %v2477_v13  ;;  %v674_v15 = vld [vmem:[#allocation2 + $0x159] sm:$0xff] }
 0x251   : > { %4390 = vmatprep.subr.bf16.mxu1 %v7017_v0  ;;  %v2386_v13 = vld [vmem:[#allocation9 + $0x158] sm:$0xff] }
 0x252   : > { %1648 = vmatmul.mubr.f32.gmra.mrb[18].mxu0 %v626_v7  ;;  %7062 = vst [vmem:[#allocation17_spill] sm:$0xff] %v6160_v28  ;;  %v6162_v7 = vld [vmem:[#allocation2 + $0x8] sm:$0xff]  ;;  %4559 = vmatprep.subr.bf16.mxu0 %v6160_v28 }
 0x253   : > { %1652 = vmatprep.mubr.f32.mxu0 %v659_v41  ;;  %4561 = vmatpush3.bf16.msra.mxu0 %v6160_v28 }
 0x254   : > { %4392 = vmatpush1.bf16.msra.mxu1 %v4391_v21  ;;  %v2482_v21 = vld [vmem:[#allocation9 + $0x458] sm:$0xff] }
 0x255   : > { %4393 = vmatprep.subr.bf16.mxu1 %v7017_v0 }
 0x256   : > { %1653 = vmatmul.mubr.f32.gmra.mrb[20].mxu0 %v627_v52  ;;  %v641_v52 = vld [vmem:[#allocation2 + $0x150] sm:$0xff] }
 0x257   : > { %1657 = vmatprep.mubr.f32.mxu0 %v660_v54  ;;  %v6171_v54 = vpack.c.bf16 %v2480_v49, %v2479_v47  ;;  %v2388_v47 = vld [vmem:[#allocation9 + $0x168] sm:$0xff] }
 0x258   : > { %4395 = vmatpush1.bf16.msra.mxu1 %v4394_v62 }
 0x259   : > { %4396 = vmatprep.subr.bf16.mxu1 %v7017_v0  ;;  %7063 = vst [vmem:[#allocation18_spill] sm:$0xff] %v6171_v54  ;;  %4563 = vmatprep.subr.bf16.mxu0 %v6171_v54 }
 0x25a   : > { %1658 = vmatmul.mubr.f32.gmra.mrb[22].mxu0 %v628_v60  ;;  %v4403_v60 = vpack.c.bf16 %v2376_v10, %v2375_v56  ;;  %v2389_v56 = vld [vmem:[#allocation9 + $0x170] sm:$0xff]  ;;  %v2390_v10 = vld [vmem:[#allocation9 + $0x178] sm:$0xff] }
 0x25b   : > { %1662 = vmatprep.mubr.f32.mxu0 %v661_v59  ;;  %v2481_v59 = vld [vmem:[#allocation9 + $0x450] sm:$0xff]  ;;  %4565 = vmatpush3.bf16.msra.mxu0 %v6171_v54 }
 0x25c   : > { %4398 = vmatpush1.bf16.msra.mxu1 %v4397_v25  ;;  %v6174_v46 = vpack.c.bf16 %v2482_v21, %v2481_v59  ;;  %v2380_v25 = vld [vmem:[#allocation9 + $0x128] sm:$0xff] }
 0x25d   : > { %4399 = vmatprep.subr.bf16.mxu1 %v7017_v0 }
 0x25e   : > { %1663 = vmatmul.mubr.f32.gmra.mrb[24].mxu0 %v629_v2  ;;  %7064 = vst [vmem:[#allocation19_spill] sm:$0xff] %v6174_v46  ;;  %v675_v2 = vld [vmem:[#allocation2 + $0x169] sm:$0xff]  ;;  %4567 = vmatprep.subr.bf16.mxu0 %v6174_v46 }
 0x25f   : > { %1667 = vmatprep.mubr.f32.mxu0 %v662_v55  ;;  %4569 = vmatpush3.bf16.msra.mxu0 %v6174_v46 }
 0x260   : > { %4401 = vmatpush1.bf16.msra.mxu1 %v4400_v37  ;;  %v680_v37 = vld [vmem:[#allocation2 + $0x1a1] sm:$0xff] }
 0x261   : > { %4402 = vmatprep.subr.bf16.mxu1 %v7017_v0 }
 0x262   : > { %1668 = vmatmul.mubr.f32.gmra.mrb[26].mxu0 %v630_v57  ;;  %v2483_v57 = vld [vmem:[#allocation9 + $0x460] sm:$0xff] }
 0x263   : > { %1672 = vmatprep.mubr.f32.mxu0 %v663_v31  ;;  %2558 = vmatmul.mubr.f32.vlgmr.msra.gmra.mrb[32].mxu1 %v2054_v6  ;;  %v2484_v31 = vld [vmem:[#allocation9 + $0x468] sm:$0xff] }
 0x264   : > { %2562 = vmatprep.mubr.f32.mxu1 %v2087_v36  ;;  %4404 = vmatpush1.bf16.msra.mxu1 %v4403_v60  ;;  %v2385_v36 = vld [vmem:[#allocation9 + $0x150] sm:$0xff]  ;;  %v4424_v60 = vpack.c.bf16 %v2390_v10, %v2389_v56  ;;  %v6263_v10 = vld [vmem:[%s7011_s3] ss:$0 sm:$0xff] }
 0x265   : > { %4405 = vmatprep.subr.bf16.mxu1 %v7017_v0  ;;  %v4418_v45 = vpack.c.bf16 %v2386_v13, %v2385_v36  ;;  %v2402_v36 = vld [vmem:[#allocation9 + $0x1d8] sm:$0xff] }
 0x266   : > { %1673 = vmatmul.mubr.f32.gmra.mrb[28].mxu0 %v631_v9  ;;  %v643_v9 = vld [vmem:[#allocation2 + $0x168] sm:$0xff] }
 0x267   : > { %1677 = vmatprep.mubr.f32.mxu0 %v664_v26  ;;  %2563 = vmatmul.mubr.f32.gmra.mrb[34].mxu1 %v6162_v7  ;;  %v6183_v26 = vpack.c.bf16 %v2484_v31, %v2483_v57 }
 0x269   : > { %7065 = vst [vmem:[#allocation20_spill] sm:$0xff] %v6183_v26  ;;  %4571 = vmatprep.subr.bf16.mxu0 %v6183_v26 }
 0x26a   : > { %1678 = vmatmul.mubr.f32.gmra.mrb[30].mxu0 %v632_v19  ;;  %v676_v19 = vld [vmem:[#allocation2 + $0x171] sm:$0xff] }
 0x26b   : > { %1682 = vmatprep.mubr.f32.mxu0 %v665_v17  ;;  %v2377_v17 = vld [vmem:[#allocation9 + $0x110] sm:$0xff]  ;;  %4573 = vmatpush3.bf16.msra.mxu0 %v6183_v26 }
 0x26e   : > { %1683 = vmatmul.mubr.f32.gmra.mrb[32].mxu0 %v633_v61  ;;  %v2378_v61 = vld [vmem:[#allocation9 + $0x118] sm:$0xff] }
 0x26f   : > { %1687 = vmatprep.mubr.f32.mxu0 %v666_v39  ;;  %v4406_v39 = vpack.c.bf16 %v2378_v61, %v2377_v17  ;;  %v2394_v17 = vld [vmem:[#allocation9 + $0x198] sm:$0xff] }
 0x271   : > { %4407 = vmatpush1.bf16.msra.mxu1 %v4406_v39 }
 0x272   : > { %1688 = vmatmul.mubr.f32.gmra.mrb[34].mxu0 %v634_v20  ;;  %v2485_v20 = vld [vmem:[#allocation9 + $0x470] sm:$0xff]  ;;  %4408 = vmatprep.subr.bf16.mxu1 %v7017_v0 }
 0x273   : > { %1692 = vmatprep.mubr.f32.mxu0 %v667_v43  ;;  %v2486_v43 = vld [vmem:[#allocation9 + $0x478] sm:$0xff] }
 0x276   : > { %1693 = vmatmul.mubr.f32.gmra.mrb[36].mxu0 %v635_v44  ;;  %v644_v44 = vld [vmem:[#allocation2 + $0x170] sm:$0xff] }
 0x277   : > { %1697 = vmatprep.mubr.f32.mxu0 %v668_v23  ;;  %v6187_v23 = vpack.c.bf16 %v2486_v43, %v2485_v20  ;;  %v2395_v43 = vld [vmem:[#allocation9 + $0x1a0] sm:$0xff] }
 0x279   : > { %7066 = vst [vmem:[#allocation21_spill] sm:$0xff] %v6187_v23  ;;  %4575 = vmatprep.subr.bf16.mxu0 %v6187_v23 }
 0x27a   : > { %1698 = vmatmul.mubr.f32.gmra.mrb[38].mxu0 %v636_v51 }
 0x27b   : > { %1702 = vmatprep.mubr.f32.mxu0 %v669_v53  ;;  %4577 = vmatpush3.bf16.msra.mxu0 %v6187_v23 }
 0x27c   : > { %v6150_v27 = vpop.f32.mrb[0].mxu1 }
 0x27d   : > { %v6153_v24 = vpop.f32.mrb[1].mxu1 }
 0x27e   : > { %1703 = vmatmul.mubr.f32.gmra.mrb[40].mxu0 %v637_v29  ;;  %v4409_v29 = vpack.c.bf16 %v2380_v25, %v2379_v14 }
 0x27f   : > { %1707 = vmatprep.mubr.f32.mxu0 %v670_v12  ;;  %v5147_v12 = vld [vmem:[#allocation2 + $0x189] sm:$0xff] }
 0x280   : > { %v6166_v41 = vpop.f32.mrb[2].mxu1  ;;  %4410 = vmatpush1.bf16.msra.mxu1 %v4409_v29  ;;  %v2397_v29 = vld [vmem:[#allocation9 + $0x1b0] sm:$0xff] }
 0x281   : > { %v6168_v42 = vpop.f32.mrb[3].mxu1  ;;  %4411 = vmatprep.subr.bf16.mxu1 %v7017_v0 }
 0x282   : > { %1708 = vmatmul.mubr.f32.gmra.mrb[42].mxu0 %v638_v16  ;;  %v2381_v16 = vld [vmem:[#allocation9 + $0x130] sm:$0xff] }
 0x283   : > { %1712 = vmatprep.mubr.f32.mxu0 %v671_v18  ;;  %v2382_v18 = vld [vmem:[#allocation9 + $0x138] sm:$0xff] }
 0x284   : > { %v6179_v55 = vpop.f32.mrb[4].mxu1  ;;  %v4412_v34 = vpack.c.bf16 %v2382_v18, %v2381_v16  ;;  %v2399_v16 = vld [vmem:[#allocation9 + $0x1c0] sm:$0xff]  ;;  %v2400_v18 = vld [vmem:[#allocation9 + $0x1c8] sm:$0xff] }
 0x285   : > { %v6181_v62 = vpop.f32.mrb[5].mxu1 }
 0x286   : > { %1713 = vmatmul.mubr.f32.gmra.mrb[44].mxu0 %v639_v35  ;;  %4413 = vmatpush1.bf16.msra.mxu1 %v4412_v34  ;;  %v4439_v34 = vpack.c.bf16 %v2400_v18, %v2399_v16 }
 0x287   : > { %1717 = vmatprep.mubr.f32.mxu0 %v672_v8  ;;  %4414 = vmatprep.subr.bf16.mxu1 %v7017_v0 }
 0x288   : > { %v6192_v51 = vpop.f32.mrb[6].mxu1 }
 0x289   : > { %v6194_v53 = vpop.f32.mrb[7].mxu1 }
 0x28a   : > { %1718 = vmatmul.mubr.f32.gmra.mrb[46].mxu0 %v640_v5 }
 0x28b   : > { %1722 = vmatprep.mubr.f32.mxu0 %v673_v38 }
 0x28c   : > { %v6199_v1 = vpop.f32.mrb[8].mxu1 }
 0x28d   : > { %v6202_v58 = vpop.f32.mrb[9].mxu1 }
 0x28e   : > { %1723 = vmatmul.mubr.f32.gmra.mrb[48].mxu0 %v641_v52 }
 0x28f   : > { %1727 = vmatprep.mubr.f32.mxu0 %v674_v15 }
 0x292   : > { %1728 = vmatmul.mubr.f32.gmra.mrb[50].mxu0 %v642_v50  ;;  %v2391_v50 = vld [vmem:[#allocation9 + $0x180] sm:$0xff] }
 0x293   : > { %1732 = vmatprep.mubr.f32.mxu0 %v675_v2  ;;  %v2392_v2 = vld [vmem:[#allocation9 + $0x188] sm:$0xff] }
 0x294   : > { %v4427_v57 = vpack.c.bf16 %v2392_v2, %v2391_v50 }
 0x296   : > { %1733 = vmatmul.mubr.f32.gmra.mrb[52].mxu0 %v643_v9 }
 0x297   : > { %1737 = vmatprep.mubr.f32.mxu0 %v676_v19  ;;  %v2393_v19 = vld [vmem:[#allocation9 + $0x190] sm:$0xff] }
 0x298   : > { %v4430_v61 = vpack.c.bf16 %v2394_v17, %v2393_v19  ;;  %v2406_v19 = vld [vmem:[#allocation9 + $0x1f8] sm:$0xff] }
 0x29a   : > { %1738 = vmatmul.mubr.f32.gmra.mrb[54].mxu0 %v644_v44  ;;  %v2396_v44 = vld [vmem:[#allocation9 + $0x1a8] sm:$0xff] }
 0x29b   : > { %1742 = vmatprep.mubr.f32.mxu0 %v5146_v48  ;;  %v4433_v48 = vpack.c.bf16 %v2396_v44, %v2395_v43 }
 0x29e   : > { %1743 = vmatmul.mubr.f32.gmra.mrb[56].mxu0 %v6040_v40  ;;  %v6205_v40 = vpop.f32.mrb[10].mxu1 }
 0x29f   : > { %1747 = vmatprep.mubr.f32.mxu0 %v5147_v12  ;;  %v6208_v4 = vpop.f32.mrb[11].mxu1  ;;  %v2398_v12 = vld [vmem:[#allocation9 + $0x1b8] sm:$0xff] }
 0x2a0   : > { %v6211_v35 = vpop.f32.mrb[12].mxu1 }
 0x2a1   : > { %v6213_v8 = vpop.f32.mrb[13].mxu1 }
 0x2a2   : > { %1748 = vmatmul.mubr.f32.gmra.mrb[58].mxu0 %v6046_v22  ;;  %v2383_v22 = vld [vmem:[#allocation9 + $0x140] sm:$0xff]  ;;  %v6216_v5 = vpop.f32.mrb[14].mxu1 }
 0x2a3   : > { %1752 = vmatprep.mubr.f32.mxu0 %v679_v30  ;;  %v4415_v6 = vpack.c.bf16 %v2384_v11, %v2383_v22  ;;  %v6218_v38 = vpop.f32.mrb[15].mxu1  ;;  %v4436_v30 = vpack.c.bf16 %v2398_v12, %v2397_v29 }
 0x2a4   : > { %v6221_v52 = vpop.f32.mrb[16].mxu1 }
 0x2a5   : > { %4416 = vmatpush1.bf16.msra.mxu1 %v4415_v6  ;;  %v6223_v15 = vpop.f32.mrb[17].mxu1  ;;  %v2401_v6 = vld [vmem:[#allocation9 + $0x1d0] sm:$0xff] }
 0x2a6   : > { %1753 = vmatmul.mubr.f32.gmra.mrb[60].mxu0 %v647_v32  ;;  %4417 = vmatprep.subr.bf16.mxu1 %v7017_v0  ;;  %v6226_v59 = vpop.f32.mrb[18].mxu1  ;;  %v4442_v13 = vpack.c.bf16 %v2402_v36, %v2401_v6 }
 0x2a7   : > { %1757 = vmatprep.mubr.f32.mxu0 %v680_v37  ;;  %v6228_v21 = vpop.f32.mrb[19].mxu1 }
 0x2a8   : > { %v6231_v31 = vpop.f32.mrb[20].mxu1 }
 0x2a9   : > { %4419 = vmatpush1.bf16.msra.mxu1 %v4418_v45  ;;  %v6233_v9 = vpop.f32.mrb[21].mxu1 }
 0x2aa   : > { %1758 = vmatmul.mubr.f32.gmra.mrb[62].mxu0 %v6162_v7  ;;  %4420 = vmatprep.subr.bf16.mxu1 %v7017_v0  ;;  %v2387_v7 = vld [vmem:[#allocation9 + $0x160] sm:$0xff]  ;;  %v6236_v39 = vpop.f32.mrb[22].mxu1 }
 0x2ab   : > { %v4421_v49 = vpack.c.bf16 %v2388_v47, %v2387_v7  ;;  %v6238_v20 = vpop.f32.mrb[23].mxu1  ;;  %v2403_v47 = vld [vmem:[#allocation9 + $0x1e0] sm:$0xff] }
 0x2ac   : > { %v6241_v14 = vpop.f32.mrb[24].mxu1 }
 0x2ad   : > { %4422 = vmatpush1.bf16.msra.mxu1 %v4421_v49  ;;  %v6243_v25 = vpop.f32.mrb[25].mxu1  ;;  %v2404_v49 = vld [vmem:[#allocation9 + $0x1e8] sm:$0xff] }
 0x2ae   : > { %4423 = vmatprep.subr.bf16.mxu1 %v7017_v0  ;;  %v4445_v56 = vpack.c.bf16 %v2404_v49, %v2403_v47 }
 0x2b0   : > { %v6246_v32 = vpop.f32.mrb[26].mxu1 }
 0x2b1   : > { %4425 = vmatpush1.bf16.msra.mxu1 %v4424_v60  ;;  %v6248_v37 = vpop.f32.mrb[27].mxu1 }
 0x2b2   : > { %4426 = vmatprep.subr.bf16.mxu1 %v7017_v0 }
 0x2b4   : > { %v6251_v22 = vpop.f32.mrb[28].mxu1 }
 0x2b5   : > { %4428 = vmatpush1.bf16.msra.mxu1 %v4427_v57  ;;  %v6253_v11 = vpop.f32.mrb[29].mxu1  ;;  %v2405_v57 = vld [vmem:[#allocation9 + $0x1f0] sm:$0xff] }
 0x2b6   : > { %4429 = vmatprep.subr.bf16.mxu1 %v7017_v0  ;;  %v4448_v17 = vpack.c.bf16 %v2406_v19, %v2405_v57 }
 0x2b9   : > { %4431 = vmatpush1.bf16.msra.mxu1 %v4430_v61 }
 0x2ba   : > { %4432 = vmatprep.subr.bf16.mxu1 %v7017_v0 }
 0x2bd   : > { %4434 = vmatpush1.bf16.msra.mxu1 %v4433_v48 }
 0x2be   : > { %4435 = vmatprep.subr.bf16.mxu1 %v7017_v0 }
 0x2c1   : > { %4437 = vmatpush1.bf16.msra.mxu1 %v4436_v30 }
 0x2c2   : > { %4438 = vmatprep.subr.bf16.mxu1 %v7017_v0 }
 0x2c5   : > { %4440 = vmatpush1.bf16.msra.mxu1 %v4439_v34 }
 0x2c6   : > { %4441 = vmatprep.subr.bf16.mxu1 %v7017_v0 }
 0x2c9   : > { %4443 = vmatpush1.bf16.msra.mxu1 %v4442_v13 }
 0x2ca   : > { %4444 = vmatprep.subr.bf16.mxu1 %v7017_v0 }
 0x2cd   : > { %4446 = vmatpush1.bf16.msra.mxu1 %v4445_v56 }
 0x2ce   : > { %4447 = vmatprep.subr.bf16.mxu1 %v7017_v0 }
 0x2d1   : > { %4449 = vmatpush1.bf16.msra.mxu1 %v4448_v17 }
 0x2d2   : > { %4450 = vmatprep.subr.bf16.mxu1 %v7017_v0 }
 0x2e7   : > { %v6256_v45 = vpop.f32.mrb[30].mxu1 }
 0x2e8   : > { %v6258_v7 = vpop.f32.mrb[31].mxu1 }
 0x301   : > { %v1604_v60 = vpop.f32.mrb[0].mxu0 }
 0x302   : > { %v4594_v50 = vadd.f32 %v6263_v10, %v1604_v60  ;;  %v1606_v2 = vpop.f32.mrb[1].mxu0 }
 0x304   : > { %v1830_v61 = vadd.f32 %v4594_v50, %v6153_v24 }
 0x305   : > { %v1609_v43 = vpop.f32.mrb[2].mxu0 }
 0x306   : > { %v1988_v44 = vmax.f32 %v1830_v61, 0.0  ;;  %v4595_v48 = vadd.f32 %v6263_v10, %v1609_v43  ;;  %v1611_v29 = vpop.f32.mrb[3].mxu0 }
 0x308   : > { %2021 = vst [vmem:[#allocation3 + $0x19] sm:$0xff] %v1988_v44  ;;  %v1835_v12 = vadd.f32 %v4595_v48, %v6150_v27  ;;  %2567 = vmatprep.mubr.f32.mxu1 %v1988_v44 }
 0x309   : > { %v1614_v30 = vpop.f32.mrb[4].mxu0 }
 0x30a   : > { %v1989_v16 = vmax.f32 %v1835_v12, 0.0  ;;  %v4596_v18 = vadd.f32 %v6263_v10, %v1614_v30  ;;  %v1616_v34 = vpop.f32.mrb[5].mxu0 }
 0x30c   : > { %2022 = vst [vmem:[#allocation3 + $0x21] sm:$0xff] %v1989_v16  ;;  %v1840_v24 = vadd.f32 %v4596_v18, %v6168_v42 }
 0x30d   : > { %v1619_v6 = vpop.f32.mrb[6].mxu0 }
 0x30e   : > { %v1990_v36 = vmax.f32 %v1840_v24, 0.0  ;;  %v4597_v13 = vadd.f32 %v6263_v10, %v1619_v6  ;;  %v1621_v47 = vpop.f32.mrb[7].mxu0 }
 0x30f   : > { %v6274_v49 = vld [vmem:[#allocation3 + $0x18] sm:$0xff] }
 0x310   : > { %2023 = vst [vmem:[#allocation3 + $0x31] sm:$0xff] %v1990_v36  ;;  %v1845_v56 = vadd.f32 %v4597_v13, %v6166_v41  ;;  %2568 = vmatmul.mubr.f32.gmra.mrb[36].mxu1 %v6274_v49 }
 0x311   : > { %v1624_v27 = vpop.f32.mrb[8].mxu0  ;;  %2572 = vmatprep.mubr.f32.mxu1 %v1989_v16 }
 0x312   : > { %v1991_v60 = vmax.f32 %v1845_v56, 0.0  ;;  %v4598_v50 = vadd.f32 %v6263_v10, %v1624_v27  ;;  %v1626_v2 = vpop.f32.mrb[9].mxu0 }
 0x313   : > { %v6279_v57 = vld [vmem:[#allocation3 + $0x20] sm:$0xff] }
 0x314   : > { %2024 = vst [vmem:[#allocation3 + $0x39] sm:$0xff] %v1991_v60  ;;  %v1850_v42 = vadd.f32 %v4598_v50, %v6181_v62  ;;  %2573 = vmatmul.mubr.f32.gmra.mrb[38].mxu1 %v6279_v57 }
 0x315   : > { %v1629_v19 = vpop.f32.mrb[10].mxu0  ;;  %2577 = vmatprep.mubr.f32.mxu1 %v1990_v36 }
 0x316   : > { %v1992_v17 = vmax.f32 %v1850_v42, 0.0  ;;  %v4599_v41 = vadd.f32 %v6263_v10, %v1629_v19  ;;  %v1631_v61 = vpop.f32.mrb[11].mxu0 }
 0x317   : > { %v6284_v43 = vld [vmem:[#allocation3 + $0x30] sm:$0xff] }
 0x318   : > { %2025 = vst [vmem:[#allocation3 + $0x49] sm:$0xff] %v1992_v17  ;;  %v1855_v44 = vadd.f32 %v4599_v41, %v6179_v55  ;;  %2578 = vmatmul.mubr.f32.gmra.mrb[40].mxu1 %v6284_v43 }
 0x319   : > { %v1634_v48 = vpop.f32.mrb[12].mxu0  ;;  %2582 = vmatprep.mubr.f32.mxu1 %v1991_v60 }
 0x31a   : > { %v1993_v29 = vmax.f32 %v1855_v44, 0.0  ;;  %v4600_v62 = vadd.f32 %v6263_v10, %v1634_v48  ;;  %v1636_v12 = vpop.f32.mrb[13].mxu0 }
 0x31b   : > { %v6289_v30 = vld [vmem:[#allocation3 + $0x32] sm:$0xff]  ;;  %v6293_v18 = vld [vmem:[#allocation3 + $0x3a] sm:$0xff] }
 0x31c   : > { %v6291_v16 = vld [vmem:[#allocation3 + $0x38] sm:$0xff]  ;;  %2026 = vst [vmem:[#allocation3 + $0x51] sm:$0xff] %v1993_v29  ;;  %v1860_v34 = vadd.f32 %v4600_v62, %v6194_v53  ;;  %4082 = vmatprep.mubr.f32.mxu0 %v6289_v30 }
 0x31d   : > { %2583 = vmatmul.mubr.f32.gmra.mrb[42].mxu1 %v6291_v16  ;;  %v1639_v55 = vpop.f32.mrb[14].mxu0  ;;  %4083 = vmatmul.mubr.f32.vlgmr.msra.gmra.mrb[64].mxu0 %v6293_v18 }
 0x31e   : > { %2587 = vmatprep.mubr.f32.mxu1 %v1992_v17  ;;  %v1994_v24 = vmax.f32 %v1860_v34, 0.0  ;;  %v4601_v6 = vadd.f32 %v6263_v10, %v1639_v55  ;;  %v1641_v36 = vpop.f32.mrb[15].mxu0 }
 0x31f   : > { %v6300_v13 = vld [vmem:[#allocation3 + $0x48] sm:$0xff] }
 0x320   : > { %2027 = vst [vmem:[#allocation3 + $0x61] sm:$0xff] %v1994_v24  ;;  %v1865_v47 = vadd.f32 %v4601_v6, %v6192_v51 }
 0x321   : > { %2588 = vmatmul.mubr.f32.gmra.mrb[44].mxu1 %v6300_v13  ;;  %v1644_v53 = vpop.f32.mrb[16].mxu0 }
 0x322   : > { %2592 = vmatprep.mubr.f32.mxu1 %v1993_v29  ;;  %v1995_v56 = vmax.f32 %v1865_v47, 0.0  ;;  %v4602_v27 = vadd.f32 %v6263_v10, %v1644_v53  ;;  %v1646_v60 = vpop.f32.mrb[17].mxu0 }
 0x323   : > { %v6305_v50 = vld [vmem:[#allocation3 + $0x4a] sm:$0xff]  ;;  %v6309_v42 = vld [vmem:[#allocation3 + $0x52] sm:$0xff] }
 0x324   : > { %v6307_v2 = vld [vmem:[#allocation3 + $0x50] sm:$0xff]  ;;  %2028 = vst [vmem:[#allocation3 + $0x69] sm:$0xff] %v1995_v56  ;;  %v1870_v19 = vadd.f32 %v4602_v27, %v6202_v58  ;;  %4085 = vmatprep.mubr.f32.mxu0 %v6305_v50 }
 0x325   : > { %2593 = vmatmul.mubr.f32.gmra.mrb[46].mxu1 %v6307_v2  ;;  %v1649_v51 = vpop.f32.mrb[18].mxu0  ;;  %4086 = vmatmul.mubr.f32.gmra.mrb[66].mxu0 %v6309_v42 }
 0x326   : > { %2597 = vmatprep.mubr.f32.mxu1 %v1994_v24  ;;  %v1996_v17 = vmax.f32 %v1870_v19, 0.0  ;;  %v4603_v41 = vadd.f32 %v6263_v10, %v1649_v51  ;;  %v1651_v61 = vpop.f32.mrb[19].mxu0 }
 0x327   : > { %v6316_v44 = vld [vmem:[#allocation3 + $0x60] sm:$0xff] }
 0x328   : > { %2029 = vst [vmem:[#allocation3 + $0x79] sm:$0xff] %v1996_v17  ;;  %v1875_v48 = vadd.f32 %v4603_v41, %v6199_v1 }
 0x329   : > { %2598 = vmatmul.mubr.f32.gmra.mrb[48].mxu1 %v6316_v44  ;;  %v1654_v58 = vpop.f32.mrb[20].mxu0 }
 0x32a   : > { %2602 = vmatprep.mubr.f32.mxu1 %v1995_v56  ;;  %v1997_v29 = vmax.f32 %v1875_v48, 0.0  ;;  %v4604_v62 = vadd.f32 %v6263_v10, %v1654_v58  ;;  %v1656_v12 = vpop.f32.mrb[21].mxu0 }
 0x32b   : > { %v6321_v34 = vld [vmem:[#allocation3 + $0x62] sm:$0xff]  ;;  %v6325_v24 = vld [vmem:[#allocation3 + $0x6a] sm:$0xff] }
 0x32c   : > { %v6323_v55 = vld [vmem:[#allocation3 + $0x68] sm:$0xff]  ;;  %2030 = vst [vmem:[#allocation3 + $0x81] sm:$0xff] %v1997_v29  ;;  %v1880_v6 = vadd.f32 %v4604_v62, %v6208_v4  ;;  %4088 = vmatprep.mubr.f32.mxu0 %v6321_v34 }
 0x32d   : > { %2603 = vmatmul.mubr.f32.gmra.mrb[50].mxu1 %v6323_v55  ;;  %v1659_v1 = vpop.f32.mrb[22].mxu0  ;;  %4089 = vmatmul.mubr.f32.gmra.mrb[68].mxu0 %v6325_v24 }
 0x32e   : > { %2607 = vmatprep.mubr.f32.mxu1 %v1996_v17  ;;  %v1998_v36 = vmax.f32 %v1880_v6, 0.0  ;;  %v4605_v47 = vadd.f32 %v6263_v10, %v1659_v1  ;;  %v1661_v53 = vpop.f32.mrb[23].mxu0 }
 0x32f   : > { %v6332_v56 = vld [vmem:[#allocation3 + $0x78] sm:$0xff] }
 0x330   : > { %2031 = vst [vmem:[#allocation3 + $0x91] sm:$0xff] %v1998_v36  ;;  %v1885_v27 = vadd.f32 %v4605_v47, %v6205_v40 }
 0x331   : > { %2608 = vmatmul.mubr.f32.gmra.mrb[52].mxu1 %v6332_v56  ;;  %v1664_v4 = vpop.f32.mrb[24].mxu0 }
 0x332   : > { %2612 = vmatprep.mubr.f32.mxu1 %v1997_v29  ;;  %v1999_v60 = vmax.f32 %v1885_v27, 0.0  ;;  %v4606_v19 = vadd.f32 %v6263_v10, %v1664_v4  ;;  %v1666_v51 = vpop.f32.mrb[25].mxu0 }
 0x333   : > { %v6337_v41 = vld [vmem:[#allocation3 + $0x7a] sm:$0xff]  ;;  %v6341_v61 = vld [vmem:[#allocation3 + $0x82] sm:$0xff] }
 0x334   : > { %v6339_v17 = vld [vmem:[#allocation3 + $0x80] sm:$0xff]  ;;  %2032 = vst [vmem:[#allocation3 + $0x99] sm:$0xff] %v1999_v60  ;;  %v1890_v48 = vadd.f32 %v4606_v19, %v6213_v8  ;;  %4091 = vmatprep.mubr.f32.mxu0 %v6337_v41 }
 0x335   : > { %2613 = vmatmul.mubr.f32.gmra.mrb[54].mxu1 %v6339_v17  ;;  %v1669_v40 = vpop.f32.mrb[26].mxu0  ;;  %4092 = vmatmul.mubr.f32.gmra.mrb[70].mxu0 %v6341_v61 }
 0x336   : > { %2617 = vmatprep.mubr.f32.mxu1 %v1998_v36  ;;  %v2000_v58 = vmax.f32 %v1890_v48, 0.0  ;;  %v4607_v29 = vadd.f32 %v6263_v10, %v1669_v40  ;;  %v1671_v62 = vpop.f32.mrb[27].mxu0 }
 0x337   : > { %v6348_v12 = vld [vmem:[#allocation3 + $0x90] sm:$0xff] }
 0x338   : > { %2033 = vst [vmem:[#allocation3 + $0xa9] sm:$0xff] %v2000_v58  ;;  %v1895_v6 = vadd.f32 %v4607_v29, %v6211_v35 }
 0x339   : > { %2618 = vmatmul.mubr.f32.gmra.mrb[56].mxu1 %v6348_v12  ;;  %v1674_v8 = vpop.f32.mrb[28].mxu0 }
 0x33a   : > { %2622 = vmatprep.mubr.f32.mxu1 %v1999_v60  ;;  %v2001_v1 = vmax.f32 %v1895_v6, 0.0  ;;  %v4608_v47 = vadd.f32 %v6263_v10, %v1674_v8  ;;  %v1676_v53 = vpop.f32.mrb[29].mxu0 }
 0x33b   : > { %v6353_v27 = vld [vmem:[#allocation3 + $0x92] sm:$0xff]  ;;  %v6357_v4 = vld [vmem:[#allocation3 + $0x9a] sm:$0xff] }
 0x33c   : > { %v6355_v36 = vld [vmem:[#allocation3 + $0x98] sm:$0xff]  ;;  %2034 = vst [vmem:[#allocation3 + $0xb1] sm:$0xff] %v2001_v1  ;;  %v1900_v19 = vadd.f32 %v4608_v47, %v6218_v38  ;;  %4094 = vmatprep.mubr.f32.mxu0 %v6353_v27 }
 0x33d   : > { %2623 = vmatmul.mubr.f32.gmra.mrb[58].mxu1 %v6355_v36  ;;  %v1679_v35 = vpop.f32.mrb[30].mxu0  ;;  %4095 = vmatmul.mubr.f32.gmra.mrb[72].mxu0 %v6357_v4 }
 0x33e   : > { %2627 = vmatprep.mubr.f32.mxu1 %v2000_v58  ;;  %v2002_v60 = vmax.f32 %v1900_v19, 0.0  ;;  %v4609_v51 = vadd.f32 %v6263_v10, %v1679_v35  ;;  %v1681_v48 = vpop.f32.mrb[31].mxu0 }
 0x33f   : > { %v6364_v40 = vld [vmem:[#allocation3 + $0xa8] sm:$0xff] }
 0x340   : > { %2035 = vst [vmem:[#allocation3 + $0xc1] sm:$0xff] %v2002_v60  ;;  %v1905_v29 = vadd.f32 %v4609_v51, %v6216_v5 }
 0x341   : > { %2628 = vmatmul.mubr.f32.gmra.mrb[60].mxu1 %v6364_v40  ;;  %v1684_v38 = vpop.f32.mrb[32].mxu0 }
 0x342   : > { %2632 = vmatprep.mubr.f32.mxu1 %v2001_v1  ;;  %v2003_v62 = vmax.f32 %v1905_v29, 0.0  ;;  %v4610_v6 = vadd.f32 %v6263_v10, %v1684_v38  ;;  %v1686_v8 = vpop.f32.mrb[33].mxu0 }
 0x343   : > { %v6369_v47 = vld [vmem:[#allocation3 + $0xaa] sm:$0xff]  ;;  %v6373_v53 = vld [vmem:[#allocation3 + $0xb2] sm:$0xff] }
 0x344   : > { %v6371_v58 = vld [vmem:[#allocation3 + $0xb0] sm:$0xff]  ;;  %2036 = vst [vmem:[#allocation3 + $0xc9] sm:$0xff] %v2003_v62  ;;  %v1910_v19 = vadd.f32 %v4610_v6, %v6223_v15  ;;  %4097 = vmatprep.mubr.f32.mxu0 %v6369_v47 }
 0x345   : > { %2633 = vmatmul.mubr.f32.gmra.mrb[62].mxu1 %v6371_v58  ;;  %v1689_v5 = vpop.f32.mrb[34].mxu0  ;;  %4098 = vmatmul.mubr.f32.gmra.mrb[74].mxu0 %v6373_v53 }
 0x346   : > { %2637 = vmatprep.mubr.f32.mxu1 %v2002_v60  ;;  %v2004_v1 = vmax.f32 %v1910_v19, 0.0  ;;  %v4611_v35 = vadd.f32 %v6263_v10, %v1689_v5  ;;  %v1691_v51 = vpop.f32.mrb[35].mxu0 }
 0x347   : > { %v6380_v48 = vld [vmem:[#allocation3 + $0xc0] sm:$0xff] }
 0x348   : > { %2037 = vst [vmem:[#allocation3 + $0xd9] sm:$0xff] %v2004_v1  ;;  %v1915_v29 = vadd.f32 %v4611_v35, %v6221_v52 }
 0x349   : > { %2638 = vmatmul.mubr.f32.gmra.mrb[64].mxu1 %v6380_v48  ;;  %v1694_v15 = vpop.f32.mrb[36].mxu0 }
 0x34a   : > { %2642 = vmatprep.mubr.f32.mxu1 %v2003_v62  ;;  %v2005_v38 = vmax.f32 %v1915_v29, 0.0  ;;  %v4612_v6 = vadd.f32 %v6263_v10, %v1694_v15  ;;  %v1696_v8 = vpop.f32.mrb[37].mxu0 }
 0x34b   : > { %v6385_v0 = vld [vmem:[#allocation3 + $0xc2] sm:$0xff]  ;;  %v6389_v19 = vld [vmem:[#allocation3 + $0xca] sm:$0xff] }
 0x34c   : > { %v6387_v60 = vld [vmem:[#allocation3 + $0xc8] sm:$0xff]  ;;  %2038 = vst [vmem:[#allocation3 + $0xe1] sm:$0xff] %v2005_v38  ;;  %v1920_v5 = vadd.f32 %v4612_v6, %v6228_v21  ;;  %4100 = vmatprep.mubr.f32.mxu0 %v6385_v0 }
 0x34d   : > { %2643 = vmatmul.mubr.f32.gmra.mrb[66].mxu1 %v6387_v60  ;;  %v1699_v52 = vpop.f32.mrb[38].mxu0  ;;  %4101 = vmatmul.mubr.f32.gmra.mrb[76].mxu0 %v6389_v19 }
 0x34e   : > { %2647 = vmatprep.mubr.f32.mxu1 %v2004_v1  ;;  %v2006_v62 = vmax.f32 %v1920_v5, 0.0  ;;  %v4613_v35 = vadd.f32 %v6263_v10, %v1699_v52  ;;  %v1701_v51 = vpop.f32.mrb[39].mxu0 }
 0x34f   : > { %v6396_v29 = vld [vmem:[#allocation3 + $0xd8] sm:$0xff] }
 0x350   : > { %2039 = vst [vmem:[#allocation3 + $0xf1] sm:$0xff] %v2006_v62  ;;  %v1925_v15 = vadd.f32 %v4613_v35, %v6226_v59 }
 0x351   : > { %2648 = vmatmul.mubr.f32.gmra.mrb[68].mxu1 %v6396_v29  ;;  %v1704_v21 = vpop.f32.mrb[40].mxu0 }
 0x352   : > { %2652 = vmatprep.mubr.f32.mxu1 %v2005_v38  ;;  %v2007_v6 = vmax.f32 %v1925_v15, 0.0  ;;  %v4614_v8 = vadd.f32 %v6263_v10, %v1704_v21  ;;  %v1706_v23 = vpop.f32.mrb[41].mxu0 }
 0x353   : > { %v6401_v26 = vld [vmem:[#allocation3 + $0xda] sm:$0xff]  ;;  %v6405_v5 = vld [vmem:[#allocation3 + $0xe2] sm:$0xff] }
 0x354   : > { %v6403_v1 = vld [vmem:[#allocation3 + $0xe0] sm:$0xff]  ;;  %2040 = vst [vmem:[#allocation3 + $0xf9] sm:$0xff] %v2007_v6  ;;  %v1930_v52 = vadd.f32 %v4614_v8, %v6233_v9  ;;  %4103 = vmatprep.mubr.f32.mxu0 %v6401_v26 }
 0x355   : > { %2653 = vmatmul.mubr.f32.gmra.mrb[70].mxu1 %v6403_v1  ;;  %v1709_v59 = vpop.f32.mrb[42].mxu0  ;;  %4104 = vmatmul.mubr.f32.gmra.mrb[78].mxu0 %v6405_v5 }
 0x356   : > { %2657 = vmatprep.mubr.f32.mxu1 %v2006_v62  ;;  %v2008_v38 = vmax.f32 %v1930_v52, 0.0  ;;  %v4615_v23 = vadd.f32 %v6263_v10, %v1709_v59  ;;  %v1711_v35 = vpop.f32.mrb[43].mxu0 }
 0x357   : > { %v6412_v51 = vld [vmem:[#allocation3 + $0xf0] sm:$0xff] }
 0x358   : > { %2041 = vst [vmem:[#allocation3 + $0x109] sm:$0xff] %v2008_v38  ;;  %v1935_v15 = vadd.f32 %v4615_v23, %v6231_v31 }
 0x359   : > { %2658 = vmatmul.mubr.f32.gmra.mrb[72].mxu1 %v6412_v51  ;;  %v1714_v9 = vpop.f32.mrb[44].mxu0 }
 0x35a   : > { %2662 = vmatprep.mubr.f32.mxu1 %v2007_v6  ;;  %v2009_v21 = vmax.f32 %v1935_v15, 0.0  ;;  %v4616_v8 = vadd.f32 %v6263_v10, %v1714_v9  ;;  %v1716_v46 = vpop.f32.mrb[45].mxu0 }
 0x35b   : > { %v6417_v54 = vld [vmem:[#allocation3 + $0xf2] sm:$0xff]  ;;  %v6421_v52 = vld [vmem:[#allocation3 + $0xfa] sm:$0xff] }
 0x35c   : > { %v6419_v62 = vld [vmem:[#allocation3 + $0xf8] sm:$0xff]  ;;  %2042 = vst [vmem:[#allocation3 + $0x111] sm:$0xff] %v2009_v21  ;;  %v1940_v59 = vadd.f32 %v4616_v8, %v6238_v20  ;;  %4106 = vmatprep.mubr.f32.mxu0 %v6417_v54 }
 0x35d   : > { %2663 = vmatmul.mubr.f32.gmra.mrb[74].mxu1 %v6419_v62  ;;  %v1719_v31 = vpop.f32.mrb[46].mxu0  ;;  %4107 = vmatmul.mubr.f32.gmra.mrb[80].mxu0 %v6421_v52 }
 0x35e   : > { %2667 = vmatprep.mubr.f32.mxu1 %v2008_v38  ;;  %v2010_v6 = vmax.f32 %v1940_v59, 0.0  ;;  %v4617_v46 = vadd.f32 %v6263_v10, %v1719_v31  ;;  %v1721_v23 = vpop.f32.mrb[47].mxu0 }
 0x35f   : > { %v6428_v35 = vld [vmem:[#allocation3 + $0x108] sm:$0xff] }
 0x360   : > { %2043 = vst [vmem:[#allocation3 + $0x121] sm:$0xff] %v2010_v6  ;;  %v1945_v15 = vadd.f32 %v4617_v46, %v6236_v39 }
 0x361   : > { %2668 = vmatmul.mubr.f32.gmra.mrb[76].mxu1 %v6428_v35  ;;  %v1724_v20 = vpop.f32.mrb[48].mxu0 }
 0x362   : > { %2672 = vmatprep.mubr.f32.mxu1 %v2009_v21  ;;  %v2011_v9 = vmax.f32 %v1945_v15, 0.0  ;;  %v4618_v8 = vadd.f32 %v6263_v10, %v1724_v20  ;;  %v1726_v28 = vpop.f32.mrb[49].mxu0 }
 0x363   : > { %v6433_v33 = vld [vmem:[#allocation3 + $0x10a] sm:$0xff]  ;;  %v6437_v59 = vld [vmem:[#allocation3 + $0x112] sm:$0xff] }
 0x364   : > { %v6435_v38 = vld [vmem:[#allocation3 + $0x110] sm:$0xff]  ;;  %2044 = vst [vmem:[#allocation3 + $0x129] sm:$0xff] %v2011_v9  ;;  %v1950_v31 = vadd.f32 %v4618_v8, %v6243_v25  ;;  %4109 = vmatprep.mubr.f32.mxu0 %v6433_v33 }
 0x365   : > { %2673 = vmatmul.mubr.f32.gmra.mrb[78].mxu1 %v6435_v38  ;;  %v1729_v39 = vpop.f32.mrb[50].mxu0  ;;  %4110 = vmatmul.mubr.f32.gmra.mrb[82].mxu0 %v6437_v59 }
 0x366   : > { %2677 = vmatprep.mubr.f32.mxu1 %v2010_v6  ;;  %v6443_v21 = vmax.f32 %v1950_v31, 0.0  ;;  %v4619_v28 = vadd.f32 %v6263_v10, %v1729_v39  ;;  %v1731_v46 = vpop.f32.mrb[51].mxu0 }
 0x367   : > { %v6446_v23 = vld [vmem:[#allocation3 + $0x120] sm:$0xff] }
 0x368   : > { %7067 = vst [vmem:[#allocation22_spill] sm:$0xff] %v6443_v21  ;;  %2045 = vst [vmem:[#allocation3 + $0x139] sm:$0xff] %v6443_v21  ;;  %v1955_v15 = vadd.f32 %v4619_v28, %v6241_v14 }
 0x369   : > { %2678 = vmatmul.mubr.f32.gmra.mrb[80].mxu1 %v6446_v23  ;;  %v1734_v25 = vpop.f32.mrb[52].mxu0 }
 0x36a   : > { %2682 = vmatprep.mubr.f32.mxu1 %v2011_v9  ;;  %v6451_v20 = vmax.f32 %v1955_v15, 0.0  ;;  %v4620_v8 = vadd.f32 %v6263_v10, %v1734_v25  ;;  %v1736_v6 = vpop.f32.mrb[53].mxu0 }
 0x36b   : > { %v6454_v31 = vld [vmem:[#allocation3 + $0x122] sm:$0xff]  ;;  %v6458_v39 = vld [vmem:[#allocation3 + $0x12a] sm:$0xff] }
 0x36c   : > { %7068 = vst [vmem:[#allocation23_spill] sm:$0xff] %v6451_v20  ;;  %v6456_v63 = vld [vmem:[#allocation3 + $0x128] sm:$0xff]  ;;  %2046 = vst [vmem:[#allocation3 + $0x141] sm:$0xff] %v6451_v20  ;;  %v1960_v46 = vadd.f32 %v4620_v8, %v6248_v37  ;;  %4112 = vmatprep.mubr.f32.mxu0 %v6454_v31 }
 0x36d   : > { %2683 = vmatmul.mubr.f32.gmra.mrb[82].mxu1 %v6456_v63  ;;  %v1739_v14 = vpop.f32.mrb[54].mxu0  ;;  %4113 = vmatmul.mubr.f32.gmra.mrb[84].mxu0 %v6458_v39 }
 0x36e   : > { %2687 = vmatprep.mubr.f32.mxu1 %v6443_v21  ;;  %v6466_v9 = vmax.f32 %v1960_v46, 0.0  ;;  %v4621_v28 = vadd.f32 %v6263_v10, %v1739_v14  ;;  %v1741_v15 = vpop.f32.mrb[55].mxu0 }
 0x36f   : > { %v6469_v25 = vld [vmem:[#allocation3 + $0x138] sm:$0xff] }
 0x370   : > { %7069 = vst [vmem:[#allocation24_spill] sm:$0xff] %v6466_v9  ;;  %2047 = vst [vmem:[#allocation3 + $0x151] sm:$0xff] %v6466_v9  ;;  %v1965_v37 = vadd.f32 %v4621_v28, %v6246_v32 }
 0x371   : > { %2688 = vmatmul.mubr.f32.gmra.mrb[84].mxu1 %v6469_v25  ;;  %v1744_v8 = vpop.f32.mrb[56].mxu0 }
 0x372   : > { %2692 = vmatprep.mubr.f32.mxu1 %v6451_v20  ;;  %v6475_v6 = vmax.f32 %v1965_v37, 0.0  ;;  %v4622_v21 = vadd.f32 %v6263_v10, %v1744_v8  ;;  %v1746_v46 = vpop.f32.mrb[57].mxu0 }
 0x373   : > { %v6478_v3 = vld [vmem:[#allocation3 + $0x13a] sm:$0xff]  ;;  %v6482_v15 = vld [vmem:[#allocation3 + $0x142] sm:$0xff] }
 0x374   : > { %7070 = vst [vmem:[#allocation25_spill] sm:$0xff] %v6475_v6  ;;  %7071 = vst [vmem:[#allocation26_spill] sm:$0xff] %v6478_v3  ;;  %v6480_v14 = vld [vmem:[#allocation3 + $0x140] sm:$0xff]  ;;  %v1970_v32 = vadd.f32 %v4622_v21, %v6253_v11  ;;  %4115 = vmatprep.mubr.f32.mxu0 %v6478_v3 }
 0x375   : > { %7072 = vst [vmem:[#allocation27_spill] sm:$0xff] %v6482_v15  ;;  %2048 = vst [vmem:[#allocation3 + $0x159] sm:$0xff] %v6475_v6  ;;  %2693 = vmatmul.mubr.f32.gmra.mrb[86].mxu1 %v6480_v14  ;;  %v1749_v28 = vpop.f32.mrb[58].mxu0  ;;  %4116 = vmatmul.mubr.f32.gmra.mrb[86].mxu0 %v6482_v15 }
 0x376   : > { %2697 = vmatprep.mubr.f32.mxu1 %v6466_v9  ;;  %v6490_v37 = vmax.f32 %v1970_v32, 0.0  ;;  %v4623_v8 = vadd.f32 %v6263_v10, %v1749_v28  ;;  %v1751_v46 = vpop.f32.mrb[59].mxu0 }
 0x377   : > { %v6493_v20 = vld [vmem:[#allocation3 + $0x150] sm:$0xff] }
 0x378   : > { %7073 = vst [vmem:[#allocation28_spill] sm:$0xff] %v6490_v37  ;;  %2049 = vst [vmem:[#allocation3 + $0x169] sm:$0xff] %v6490_v37  ;;  %v1975_v11 = vadd.f32 %v4623_v8, %v6251_v22 }
 0x379   : > { %2698 = vmatmul.mubr.f32.gmra.mrb[88].mxu1 %v6493_v20  ;;  %v1754_v21 = vpop.f32.mrb[60].mxu0 }
 0x37a   : > { %2702 = vmatprep.mubr.f32.mxu1 %v6475_v6  ;;  %v6499_v3 = vmax.f32 %v1975_v11, 0.0  ;;  %v4624_v9 = vadd.f32 %v6263_v10, %v1754_v21  ;;  %v1756_v32 = vpop.f32.mrb[61].mxu0 }
 0x37b   : > { %v2408_v32 = vld [vmem:[#allocation9 + $0x208] sm:$0xff] }
 0x37c   : > { %7074 = vst [vmem:[#allocation29_spill] sm:$0xff] %v6499_v3  ;;  %v6502_v15 = vld [vmem:[#allocation3 + $0x158] sm:$0xff]  ;;  %2050 = vst [vmem:[#allocation3 + $0x171] sm:$0xff] %v6499_v3  ;;  %v6506_v28 = vadd.f32 %v4624_v9, %v6258_v7  ;;  %v2407_v9 = vld [vmem:[#allocation9 + $0x200] sm:$0xff] }
 0x37d   : > { %2703 = vmatmul.mubr.f32.gmra.mrb[90].mxu1 %v6502_v15  ;;  %v1759_v22 = vpop.f32.mrb[62].mxu0 }
 0x37e   : > { %7075 = vst [vmem:[#allocation30_spill] sm:$0xff] %v6506_v28  ;;  %2707 = vmatprep.mubr.f32.mxu1 %v6490_v37  ;;  %v7044_v8 = vmax.f32 %v6506_v28, 0.0  ;;  %v4625_v46 = vadd.f32 %v6263_v10, %v1759_v22  ;;  %v1761_v11 = vpop.f32.mrb[63].mxu0  ;;  %v2118_v10 = vld [vmem:[#allocation3 + $0x2] sm:$0xff]  ;;  %v7077_v28 = vmov 0.0|0.0  }
 0x37f   : > { %v6512_v6 = vld [vmem:[#allocation3 + $0x168] sm:$0xff]  ;;  %v2409_v22 = vld [vmem:[#allocation9 + $0x210] sm:$0xff] }
 0x380   : > { %7076 = vst [vmem:[#allocation31_spill] sm:$0xff] %v6512_v6  ;;  %2051 = vst [vmem:[#allocation3 + $0x181] sm:$0xff] %v7044_v8  ;;  %v6517_v21 = vadd.f32 %v4625_v46, %v6256_v45  ;;  %v4451_v45 = vpack.c.bf16 %v2408_v32, %v2407_v9  ;;  %v2410_v46 = vld [vmem:[#allocation9 + $0x218] sm:$0xff]  ;;  %v6532_v32 = vld [vmem:[#allocation3 + $0x1a] sm:$0xff] }
 0x381   : > { %2708 = vmatmul.mubr.f32.gmra.mrb[92].mxu1 %v6512_v6  ;;  %v2119_v11 = vld [vmem:[#allocation3 + $0xa] sm:$0xff]  ;;  %v4454_v8 = vpack.c.bf16 %v2410_v46, %v2409_v22  ;;  %v2412_v6 = vld [vmem:[#allocation9 + $0x228] sm:$0xff]  ;;  %v6537_v22 = vld [vmem:[#allocation3 + $0x22] sm:$0xff] }
 0x382   : > { %2712 = vmatprep.mubr.f32.mxu1 %v6499_v3  ;;  %v7048_v7 = vmax.f32 %v6517_v21, 0.0  ;;  %v2411_v3 = vld [vmem:[#allocation9 + $0x220] sm:$0xff]  ;;  %v2414_v9 = vld [vmem:[#allocation9 + $0x238] sm:$0xff]  ;;  %v2421_v46 = vld [vmem:[#allocation9 + $0x270] sm:$0xff] }
 0x383   : > { %v6522_v37 = vld [vmem:[#allocation3 + $0x170] sm:$0xff] }
 0x384   : > { %2052 = vst [vmem:[#allocation3 + $0x189] sm:$0xff] %v7048_v7  ;;  %v4457_v7 = vpack.c.bf16 %v2412_v6, %v2411_v3  ;;  %v2418_v6 = vld [vmem:[#allocation9 + $0x258] sm:$0xff] }
 0x385   : > { %2713 = vmatmul.mubr.f32.gmra.mrb[94].mxu1 %v6522_v37 }
 0x386   : > { %2782 = vmatprep.mubr.f32.mxu1 %v6274_v49  ;;  %v2413_v49 = vld [vmem:[#allocation9 + $0x230] sm:$0xff] }
 0x389   : > { %2783 = vmatmul.mubr.f32.vlgmr.msra.gmra.mrb[32].mxu1 %v2118_v10  ;;  %v2415_v10 = vld [vmem:[#allocation9 + $0x240] sm:$0xff] }
 0x38a   : > { %2787 = vmatprep.mubr.f32.mxu1 %v6279_v57  ;;  %4452 = vmatpush1.bf16.msra.mxu1 %v4451_v45  ;;  %v4460_v57 = vpack.c.bf16 %v2414_v9, %v2413_v49  ;;  %v2416_v45 = vld [vmem:[#allocation9 + $0x248] sm:$0xff]  ;;  %v2426_v9 = vld [vmem:[#allocation9 + $0x298] sm:$0xff] }
 0x38b   : > { %4453 = vmatprep.subr.bf16.mxu1 %v7077_v28  ;;  %v4463_v3 = vpack.c.bf16 %v2416_v45, %v2415_v10  ;;  %v2424_v49 = vld [vmem:[#allocation9 + $0x288] sm:$0xff]  ;;  %v2430_v10 = vld [vmem:[#allocation9 + $0x2b8] sm:$0xff] }
 0x38c   : > { %v2432_v45 = vld [vmem:[#allocation9 + $0x2c8] sm:$0xff] }
 0x38d   : > { %2788 = vmatmul.mubr.f32.gmra.mrb[34].mxu1 %v2119_v11  ;;  %v2422_v11 = vld [vmem:[#allocation9 + $0x278] sm:$0xff] }
 0x38e   : > { %2792 = vmatprep.mubr.f32.mxu1 %v6284_v43  ;;  %4455 = vmatpush1.bf16.msra.mxu1 %v4454_v8  ;;  %v2417_v43 = vld [vmem:[#allocation9 + $0x250] sm:$0xff]  ;;  %v2419_v8 = vld [vmem:[#allocation9 + $0x260] sm:$0xff] }
 0x38f   : > { %4456 = vmatprep.subr.bf16.mxu1 %v7077_v28 }
 0x391   : > { %2793 = vmatmul.mubr.f32.gmra.mrb[36].mxu1 %v6532_v32 }
 0x392   : > { %2797 = vmatprep.mubr.f32.mxu1 %v6291_v16  ;;  %4458 = vmatpush1.bf16.msra.mxu1 %v4457_v7  ;;  %v4466_v16 = vpack.c.bf16 %v2418_v6, %v2417_v43  ;;  %v2420_v7 = vld [vmem:[#allocation9 + $0x268] sm:$0xff]  ;;  %v2438_v6 = vld [vmem:[#allocation9 + $0x2f8] sm:$0xff] }
 0x393   : > { %4459 = vmatprep.subr.bf16.mxu1 %v7077_v28  ;;  %v2436_v43 = vld [vmem:[#allocation9 + $0x2e8] sm:$0xff] }
 0x395   : > { %2798 = vmatmul.mubr.f32.gmra.mrb[38].mxu1 %v6537_v22 }
 0x396   : > { %2802 = vmatprep.mubr.f32.mxu1 %v6300_v13  ;;  %4461 = vmatpush1.bf16.msra.mxu1 %v4460_v57  ;;  %v4469_v13 = vpack.c.bf16 %v2420_v7, %v2419_v8  ;;  %v2428_v57 = vld [vmem:[#allocation9 + $0x2a8] sm:$0xff] }
 0x397   : > { %4462 = vmatprep.subr.bf16.mxu1 %v7077_v28 }
 0x399   : > { %2803 = vmatmul.mubr.f32.gmra.mrb[40].mxu1 %v6289_v30  ;;  %v4472_v30 = vpack.c.bf16 %v2422_v11, %v2421_v46  ;;  %v2444_v46 = vld [vmem:[#allocation9 + $0x328] sm:$0xff]  ;;  %v2183_v11 = vld [vmem:[#allocation3 + $0x21] sm:$0xff] }
 0x39a   : > { %2807 = vmatprep.mubr.f32.mxu1 %v6307_v2  ;;  %4464 = vmatpush1.bf16.msra.mxu1 %v4463_v3  ;;  %v2423_v2 = vld [vmem:[#allocation9 + $0x280] sm:$0xff]  ;;  %v2434_v3 = vld [vmem:[#allocation9 + $0x2d8] sm:$0xff] }
 0x39b   : > { %4465 = vmatprep.subr.bf16.mxu1 %v7077_v28 }
 0x39d   : > { %2808 = vmatmul.mubr.f32.gmra.mrb[42].mxu1 %v6293_v18  ;;  %v4475_v18 = vpack.c.bf16 %v2424_v49, %v2423_v2  ;;  %v2445_v2 = vld [vmem:[#allocation9 + $0x330] sm:$0xff]  ;;  %v2446_v49 = vld [vmem:[#allocation9 + $0x338] sm:$0xff] }
 0x39e   : > { %2812 = vmatprep.mubr.f32.mxu1 %v6316_v44  ;;  %4467 = vmatpush1.bf16.msra.mxu1 %v4466_v16  ;;  %v2425_v44 = vld [vmem:[#allocation9 + $0x290] sm:$0xff] }
 0x39f   : > { %4468 = vmatprep.subr.bf16.mxu1 %v7077_v28 }
 0x3a1   : > { %2813 = vmatmul.mubr.f32.gmra.mrb[44].mxu1 %v6305_v50  ;;  %v4478_v50 = vpack.c.bf16 %v2426_v9, %v2425_v44 }
 0x3a2   : > { %2817 = vmatprep.mubr.f32.mxu1 %v6323_v55  ;;  %4470 = vmatpush1.bf16.msra.mxu1 %v4469_v13  ;;  %v2427_v55 = vld [vmem:[#allocation9 + $0x2a0] sm:$0xff] }
 0x3a3   : > { %4471 = vmatprep.subr.bf16.mxu1 %v7077_v28  ;;  %v2443_v13 = vld [vmem:[#allocation9 + $0x320] sm:$0xff] }
 0x3a5   : > { %2818 = vmatmul.mubr.f32.gmra.mrb[46].mxu1 %v6309_v42  ;;  %v4481_v42 = vpack.c.bf16 %v2428_v57, %v2427_v55  ;;  %v2447_v55 = vld [vmem:[#allocation9 + $0x340] sm:$0xff]  ;;  %v2448_v57 = vld [vmem:[#allocation9 + $0x348] sm:$0xff] }
 0x3a6   : > { %2822 = vmatprep.mubr.f32.mxu1 %v6332_v56  ;;  %4473 = vmatpush1.bf16.msra.mxu1 %v4472_v30  ;;  %v2429_v56 = vld [vmem:[#allocation9 + $0x2b0] sm:$0xff]  ;;  %v4505_v30 = vpack.c.bf16 %v2444_v46, %v2443_v13  ;;  %v6673_v13 = vld [vmem:[#allocation3 + $0x69] sm:$0xff] }
 0x3a7   : > { %4474 = vmatprep.subr.bf16.mxu1 %v7077_v28  ;;  %v2222_v46 = vld [vmem:[#allocation3 + $0x7a] sm:$0xff] }
 0x3a9   : > { %2823 = vmatmul.mubr.f32.gmra.mrb[48].mxu1 %v6321_v34  ;;  %v4484_v34 = vpack.c.bf16 %v2430_v10, %v2429_v56  ;;  %v2218_v56 = vld [vmem:[#allocation3 + $0x4a] sm:$0xff]  ;;  %v4511_v10 = vpack.c.bf16 %v2448_v57, %v2447_v55 }
 0x3aa   : > { %2827 = vmatprep.mubr.f32.mxu1 %v6339_v17  ;;  %4476 = vmatpush1.bf16.msra.mxu1 %v4475_v18  ;;  %v2431_v17 = vld [vmem:[#allocation9 + $0x2c0] sm:$0xff] }
 0x3ab   : > { %4477 = vmatprep.subr.bf16.mxu1 %v7077_v28  ;;  %v6641_v18 = vld [vmem:[#allocation3 + $0x31] sm:$0xff] }
 0x3ac   : > { %v2459_v57 = vld [vmem:[#allocation9 + $0x3a0] sm:$0xff] }
 0x3ad   : > { %2828 = vmatmul.mubr.f32.gmra.mrb[50].mxu1 %v6325_v24  ;;  %v4487_v24 = vpack.c.bf16 %v2432_v45, %v2431_v17  ;;  %v2450_v17 = vld [vmem:[#allocation9 + $0x358] sm:$0xff] }
 0x3ae   : > { %2832 = vmatprep.mubr.f32.mxu1 %v6348_v12  ;;  %4479 = vmatpush1.bf16.msra.mxu1 %v4478_v50  ;;  %v2433_v12 = vld [vmem:[#allocation9 + $0x2d0] sm:$0xff]  ;;  %v4508_v50 = vpack.c.bf16 %v2446_v49, %v2445_v2  ;;  %v6653_v45 = vld [vmem:[#allocation3 + $0x49] sm:$0xff] }
 0x3af   : > { %4480 = vmatprep.subr.bf16.mxu1 %v7077_v28  ;;  %v6677_v2 = vld [vmem:[#allocation3 + $0x79] sm:$0xff] }
 0x3b1   : > { %2833 = vmatmul.mubr.f32.gmra.mrb[52].mxu1 %v6337_v41  ;;  %v4490_v41 = vpack.c.bf16 %v2434_v3, %v2433_v12  ;;  %v2219_v12 = vld [vmem:[#allocation3 + $0x52] sm:$0xff] }
 0x3b2   : > { %2837 = vmatprep.mubr.f32.mxu1 %v6355_v36  ;;  %4482 = vmatpush1.bf16.msra.mxu1 %v4481_v42  ;;  %v2435_v36 = vld [vmem:[#allocation9 + $0x2e0] sm:$0xff]  ;;  %v6649_v42 = vld [vmem:[#allocation3 + $0x39] sm:$0xff] }
 0x3b3   : > { %4483 = vmatprep.subr.bf16.mxu1 %v7077_v28 }
 0x3b5   : > { %2838 = vmatmul.mubr.f32.gmra.mrb[54].mxu1 %v6341_v61  ;;  %v4493_v61 = vpack.c.bf16 %v2436_v43, %v2435_v36  ;;  %v2451_v36 = vld [vmem:[#allocation9 + $0x360] sm:$0xff]  ;;  %v2452_v43 = vld [vmem:[#allocation9 + $0x368] sm:$0xff] }
 0x3b6   : > { %2842 = vmatprep.mubr.f32.mxu1 %v6364_v40  ;;  %4485 = vmatpush1.bf16.msra.mxu1 %v4484_v34  ;;  %v2437_v40 = vld [vmem:[#allocation9 + $0x2f0] sm:$0xff] }
 0x3b7   : > { %4486 = vmatprep.subr.bf16.mxu1 %v7077_v28  ;;  %v2449_v34 = vld [vmem:[#allocation9 + $0x350] sm:$0xff] }
 0x3b9   : > { %2843 = vmatmul.mubr.f32.gmra.mrb[56].mxu1 %v6353_v27  ;;  %v4496_v27 = vpack.c.bf16 %v2438_v6, %v2437_v40  ;;  %v2220_v40 = vld [vmem:[#allocation3 + $0x62] sm:$0xff]  ;;  %v4517_v6 = vpack.c.bf16 %v2452_v43, %v2451_v36  ;;  %v6689_v36 = vld [vmem:[#allocation3 + $0x91] sm:$0xff] }
 0x3ba   : > { %2847 = vmatprep.mubr.f32.mxu1 %v6371_v58  ;;  %4488 = vmatpush1.bf16.msra.mxu1 %v4487_v24  ;;  %v7080_v58 = vld [vmem:[#allocation31_spill] sm:$0xff] }
 0x3bb   : > { %4489 = vmatprep.subr.bf16.mxu1 %v7077_v28 }
 0x3bd   : > { %2848 = vmatmul.mubr.f32.gmra.mrb[58].mxu1 %v6357_v4  ;;  %v7078_v4 = vld [vmem:[#allocation26_spill] sm:$0xff] }
 0x3be   : > { %2852 = vmatprep.mubr.f32.mxu1 %v6380_v48  ;;  %4491 = vmatpush1.bf16.msra.mxu1 %v4490_v41  ;;  %v4514_v41 = vpack.c.bf16 %v2450_v17, %v2449_v34  ;;  %v2224_v34 = vld [vmem:[#allocation3 + $0x92] sm:$0xff] }
 0x3bf   : > { %4492 = vmatprep.subr.bf16.mxu1 %v7077_v28 }
 0x3c1   : > { %2853 = vmatmul.mubr.f32.gmra.mrb[60].mxu1 %v6369_v47 }
 0x3c2   : > { %2857 = vmatprep.mubr.f32.mxu1 %v6387_v60  ;;  %4494 = vmatpush1.bf16.msra.mxu1 %v4493_v61  ;;  %v6661_v61 = vld [vmem:[#allocation3 + $0x51] sm:$0xff] }
 0x3c3   : > { %4495 = vmatprep.subr.bf16.mxu1 %v7077_v28 }
 0x3c5   : > { %2858 = vmatmul.mubr.f32.gmra.mrb[62].mxu1 %v6373_v53  ;;  %v6606_v53 = vld [vmem:[#allocation3 + $0x152] sm:$0xff] }
 0x3c6   : > { %2862 = vmatprep.mubr.f32.mxu1 %v6396_v29  ;;  %4497 = vmatpush1.bf16.msra.mxu1 %v4496_v27  ;;  %v6617_v29 = vld [vmem:[#allocation3 + $0x180] sm:$0xff] }
 0x3c7   : > { %4498 = vmatprep.subr.bf16.mxu1 %v7077_v28  ;;  %v2453_v27 = vld [vmem:[#allocation9 + $0x370] sm:$0xff] }
 0x3c9   : > { %2863 = vmatmul.mubr.f32.gmra.mrb[64].mxu1 %v6385_v0 }
 0x3ca   : > { %2867 = vmatprep.mubr.f32.mxu1 %v6403_v1  ;;  %v6620_v1 = vld [vmem:[#allocation3 + $0x16a] sm:$0xff] }
 0x3cd   : > { %2868 = vmatmul.mubr.f32.gmra.mrb[66].mxu1 %v6389_v19  ;;  %v6614_v19 = vld [vmem:[#allocation3 + $0x15a] sm:$0xff] }
 0x3ce   : > { %2872 = vmatprep.mubr.f32.mxu1 %v6412_v51 }
 0x3d1   : > { %2873 = vmatmul.mubr.f32.gmra.mrb[68].mxu1 %v6401_v26 }
 0x3d2   : > { %2877 = vmatprep.mubr.f32.mxu1 %v6419_v62  ;;  %v6625_v62 = vld [vmem:[#allocation3 + $0x188] sm:$0xff] }
 0x3d5   : > { %2878 = vmatmul.mubr.f32.gmra.mrb[70].mxu1 %v6405_v5 }
 0x3d6   : > { %2882 = vmatprep.mubr.f32.mxu1 %v6428_v35 }
 0x3d9   : > { %2883 = vmatmul.mubr.f32.gmra.mrb[72].mxu1 %v6417_v54 }
 0x3da   : > { %2887 = vmatprep.mubr.f32.mxu1 %v6435_v38  ;;  %v2439_v38 = vld [vmem:[#allocation9 + $0x300] sm:$0xff] }
 0x3dd   : > { %2888 = vmatmul.mubr.f32.gmra.mrb[74].mxu1 %v6421_v52 }
 0x3de   : > { %2892 = vmatprep.mubr.f32.mxu1 %v6446_v23  ;;  %v2440_v23 = vld [vmem:[#allocation9 + $0x308] sm:$0xff] }
 0x3e1   : > { %2893 = vmatmul.mubr.f32.gmra.mrb[76].mxu1 %v6433_v33 }
 0x3e2   : > { %2897 = vmatprep.mubr.f32.mxu1 %v6456_v63  ;;  %v7079_v63 = vld [vmem:[#allocation27_spill] sm:$0xff] }
 0x3e5   : > { %2898 = vmatmul.mubr.f32.gmra.mrb[78].mxu1 %v6437_v59 }
 0x3e6   : > { %2902 = vmatprep.mubr.f32.mxu1 %v6469_v25  ;;  %v4499_v25 = vpack.c.bf16 %v2440_v23, %v2439_v38  ;;  %v6665_v38 = vld [vmem:[#allocation3 + $0x61] sm:$0xff] }
 0x3e9   : > { %2903 = vmatmul.mubr.f32.gmra.mrb[80].mxu1 %v6454_v31 }
 0x3ea   : > { %2907 = vmatprep.mubr.f32.mxu1 %v6480_v14  ;;  %v2441_v14 = vld [vmem:[#allocation9 + $0x310] sm:$0xff] }
 0x3ed   : > { %2908 = vmatmul.mubr.f32.gmra.mrb[82].mxu1 %v6458_v39 }
 0x3ee   : > { %2912 = vmatprep.mubr.f32.mxu1 %v6493_v20  ;;  %v6630_v20 = vld [vmem:[#allocation3 + $0x172] sm:$0xff] }
 0x3f0   : > { %v6598_v0 = vpop.f32.mrb[64].mxu0 }
 0x3f1   : > { %2913 = vmatmul.mubr.f32.gmra.mrb[84].mxu1 %v7078_v4  ;;  %v6601_v47 = vpop.f32.mrb[65].mxu0 }
 0x3f2   : > { %2917 = vmatprep.mubr.f32.mxu1 %v6502_v15  ;;  %v2442_v15 = vld [vmem:[#allocation9 + $0x318] sm:$0xff] }
 0x3f3   : > { %v4502_v7 = vpack.c.bf16 %v2442_v15, %v2441_v14 }
 0x3f5   : > { %2918 = vmatmul.mubr.f32.gmra.mrb[86].mxu1 %v7079_v63 }
 0x3f6   : > { %2922 = vmatprep.mubr.f32.mxu1 %v7080_v58  ;;  %v2454_v58 = vld [vmem:[#allocation9 + $0x378] sm:$0xff] }
 0x3f7   : > { %v4520_v15 = vpack.c.bf16 %v2454_v58, %v2453_v27  ;;  %v2463_v58 = vld [vmem:[#allocation9 + $0x3c0] sm:$0xff] }
 0x3f8   : > { %v6608_v48 = vpop.f32.mrb[66].mxu0 }
 0x3f9   : > { %2923 = vmatmul.mubr.f32.gmra.mrb[88].mxu1 %v6606_v53  ;;  %v6611_v60 = vpop.f32.mrb[67].mxu0 }
 0x3fa   : > { %2927 = vmatprep.mubr.f32.mxu1 %v6522_v37  ;;  %v2182_v37 = vld [vmem:[#allocation3 + $0x19] sm:$0xff] }
 0x3fd   : > { %2928 = vmatmul.mubr.f32.gmra.mrb[90].mxu1 %v6614_v19 }
 0x3fe   : > { %2932 = vmatprep.mubr.f32.mxu1 %v6617_v29 }
 0x400   : > { %v6622_v51 = vpop.f32.mrb[68].mxu0 }
 0x401   : > { %2933 = vmatmul.mubr.f32.gmra.mrb[92].mxu1 %v6620_v1  ;;  %v6627_v35 = vpop.f32.mrb[69].mxu0 }
 0x402   : > { %2937 = vmatprep.mubr.f32.mxu1 %v6625_v62 }
 0x405   : > { %2938 = vmatmul.mubr.f32.gmra.mrb[94].mxu1 %v6630_v20 }
 0x406   : > { %3007 = vmatprep.mubr.f32.mxu1 %v6532_v32  ;;  %v2216_v32 = vld [vmem:[#allocation3 + $0x32] sm:$0xff] }
 0x408   : > { %v6634_v16 = vpop.f32.mrb[70].mxu0 }
 0x409   : > { %3008 = vmatmul.mubr.f32.vlgmr.msra.gmra.mrb[32].mxu1 %v2182_v37  ;;  %v6636_v8 = vpop.f32.mrb[71].mxu0  ;;  %v2455_v37 = vld [vmem:[#allocation9 + $0x380] sm:$0xff] }
 0x40a   : > { %3012 = vmatprep.mubr.f32.mxu1 %v6537_v22  ;;  %4500 = vmatpush1.bf16.msra.mxu1 %v4499_v25  ;;  %v2217_v22 = vld [vmem:[#allocation3 + $0x3a] sm:$0xff]  ;;  %v2221_v25 = vld [vmem:[#allocation3 + $0x6a] sm:$0xff] }
 0x40b   : > { %4501 = vmatprep.subr.bf16.mxu1 %v7077_v28 }
 0x40d   : > { %3013 = vmatmul.mubr.f32.gmra.mrb[34].mxu1 %v2183_v11 }
 0x40e   : > { %3017 = vmatprep.mubr.f32.mxu1 %v2216_v32  ;;  %4503 = vmatpush1.bf16.msra.mxu1 %v4502_v7  ;;  %v2456_v7 = vld [vmem:[#allocation9 + $0x388] sm:$0xff]  ;;  %v2457_v32 = vld [vmem:[#allocation9 + $0x390] sm:$0xff] }
 0x40f   : > { %4504 = vmatprep.subr.bf16.mxu1 %v7077_v28  ;;  %v4523_v11 = vpack.c.bf16 %v2456_v7, %v2455_v37  ;;  %v2226_v37 = vld [vmem:[#allocation3 + $0xaa] sm:$0xff] }
 0x410   : > { %v6643_v44 = vpop.f32.mrb[72].mxu0 }
 0x411   : > { %3018 = vmatmul.mubr.f32.gmra.mrb[36].mxu1 %v6641_v18  ;;  %v6646_v9 = vpop.f32.mrb[73].mxu0 }
 0x412   : > { %3022 = vmatprep.mubr.f32.mxu1 %v2217_v22  ;;  %4506 = vmatpush1.bf16.msra.mxu1 %v4505_v30  ;;  %v2458_v30 = vld [vmem:[#allocation9 + $0x398] sm:$0xff] }
 0x413   : > { %4507 = vmatprep.subr.bf16.mxu1 %v7077_v28  ;;  %v2223_v22 = vld [vmem:[#allocation3 + $0x82] sm:$0xff]  ;;  %v4526_v55 = vpack.c.bf16 %v2458_v30, %v2457_v32 }
 0x414   : > { %v6701_v32 = vld [vmem:[#allocation3 + $0xa9] sm:$0xff] }
 0x415   : > { %3023 = vmatmul.mubr.f32.gmra.mrb[38].mxu1 %v6649_v42 }
 0x416   : > { %3027 = vmatprep.mubr.f32.mxu1 %v2218_v56  ;;  %4509 = vmatpush1.bf16.msra.mxu1 %v4508_v50  ;;  %v2460_v56 = vld [vmem:[#allocation9 + $0x3a8] sm:$0xff] }
 0x417   : > { %4510 = vmatprep.subr.bf16.mxu1 %v7077_v28  ;;  %v4529_v17 = vpack.c.bf16 %v2460_v56, %v2459_v57  ;;  %v2467_v56 = vld [vmem:[#allocation9 + $0x3e0] sm:$0xff] }
 0x418   : > { %v6655_v24 = vpop.f32.mrb[74].mxu0 }
 0x419   : > { %3028 = vmatmul.mubr.f32.gmra.mrb[40].mxu1 %v6653_v45  ;;  %v6658_v3 = vpop.f32.mrb[75].mxu0 }
 0x41a   : > { %3032 = vmatprep.mubr.f32.mxu1 %v2219_v12  ;;  %4512 = vmatpush1.bf16.msra.mxu1 %v4511_v10  ;;  %v6685_v10 = vld [vmem:[#allocation3 + $0x81] sm:$0xff] }
 0x41b   : > { %4513 = vmatprep.subr.bf16.mxu1 %v7077_v28  ;;  %v2461_v12 = vld [vmem:[#allocation9 + $0x3b0] sm:$0xff] }
 0x41d   : > { %3033 = vmatmul.mubr.f32.gmra.mrb[42].mxu1 %v6661_v61 }
 0x41e   : > { %3037 = vmatprep.mubr.f32.mxu1 %v2220_v40  ;;  %4515 = vmatpush1.bf16.msra.mxu1 %v4514_v41  ;;  %v2462_v41 = vld [vmem:[#allocation9 + $0x3b8] sm:$0xff]  ;;  %v2225_v40 = vld [vmem:[#allocation3 + $0x9a] sm:$0xff] }
 0x41f   : > { %4516 = vmatprep.subr.bf16.mxu1 %v7077_v28  ;;  %v4532_v27 = vpack.c.bf16 %v2462_v41, %v2461_v12  ;;  %v2228_v12 = vld [vmem:[#allocation3 + $0xc2] sm:$0xff] }
 0x420   : > { %v6667_v23 = vpop.f32.mrb[76].mxu0 }
 0x421   : > { %3038 = vmatmul.mubr.f32.gmra.mrb[44].mxu1 %v6665_v38  ;;  %v6670_v14 = vpop.f32.mrb[77].mxu0 }
 0x422   : > { %3042 = vmatprep.mubr.f32.mxu1 %v2221_v25  ;;  %4518 = vmatpush1.bf16.msra.mxu1 %v4517_v6  ;;  %v2464_v25 = vld [vmem:[#allocation9 + $0x3c8] sm:$0xff] }
 0x423   : > { %4519 = vmatprep.subr.bf16.mxu1 %v7077_v28  ;;  %v4535_v7 = vpack.c.bf16 %v2464_v25, %v2463_v58  ;;  %v6713_v58 = vld [vmem:[#allocation3 + $0xc1] sm:$0xff] }
 0x425   : > { %3043 = vmatmul.mubr.f32.gmra.mrb[46].mxu1 %v6673_v13 }
 0x426   : > { %3047 = vmatprep.mubr.f32.mxu1 %v2222_v46  ;;  %4521 = vmatpush1.bf16.msra.mxu1 %v4520_v15  ;;  %v6697_v15 = vld [vmem:[#allocation3 + $0x99] sm:$0xff] }
 0x427   : > { %4522 = vmatprep.subr.bf16.mxu1 %v7077_v28  ;;  %v2465_v46 = vld [vmem:[#allocation9 + $0x3d0] sm:$0xff] }
 0x428   : > { %v6679_v49 = vpop.f32.mrb[78].mxu0 }
 0x429   : > { %3048 = vmatmul.mubr.f32.gmra.mrb[48].mxu1 %v6677_v2  ;;  %v6682_v50 = vpop.f32.mrb[79].mxu0 }
 0x42a   : > { %3052 = vmatprep.mubr.f32.mxu1 %v2223_v22  ;;  %4524 = vmatpush1.bf16.msra.mxu1 %v4523_v11  ;;  %v2466_v11 = vld [vmem:[#allocation9 + $0x3d8] sm:$0xff]  ;;  %v2227_v22 = vld [vmem:[#allocation3 + $0xb2] sm:$0xff] }
 0x42b   : > { %4525 = vmatprep.subr.bf16.mxu1 %v7077_v28  ;;  %v4538_v57 = vpack.c.bf16 %v2466_v11, %v2465_v46  ;;  %v6721_v11 = vld [vmem:[#allocation3 + $0xc9] sm:$0xff] }
 0x42d   : > { %3053 = vmatmul.mubr.f32.gmra.mrb[50].mxu1 %v6685_v10 }
 0x42e   : > { %3057 = vmatprep.mubr.f32.mxu1 %v2224_v34  ;;  %4527 = vmatpush1.bf16.msra.mxu1 %v4526_v55  ;;  %v2468_v34 = vld [vmem:[#allocation9 + $0x3e8] sm:$0xff] }
 0x42f   : > { %4528 = vmatprep.subr.bf16.mxu1 %v7077_v28  ;;  %v4541_v41 = vpack.c.bf16 %v2468_v34, %v2467_v56 }
 0x430   : > { %v6691_v43 = vpop.f32.mrb[80].mxu0 }
 0x431   : > { %3058 = vmatmul.mubr.f32.gmra.mrb[52].mxu1 %v6689_v36  ;;  %v6694_v6 = vpop.f32.mrb[81].mxu0 }
 0x432   : > { %3062 = vmatprep.mubr.f32.mxu1 %v2225_v40  ;;  %4530 = vmatpush1.bf16.msra.mxu1 %v4529_v17  ;;  %v6709_v17 = vld [vmem:[#allocation3 + $0xb1] sm:$0xff]  ;;  %v2469_v40 = vld [vmem:[#allocation9 + $0x3f0] sm:$0xff] }
 0x433   : > { %4531 = vmatprep.subr.bf16.mxu1 %v7077_v28 }
 0x435   : > { %3063 = vmatmul.mubr.f32.gmra.mrb[54].mxu1 %v6697_v15 }
 0x436   : > { %3067 = vmatprep.mubr.f32.mxu1 %v2226_v37  ;;  %4533 = vmatpush1.bf16.msra.mxu1 %v4532_v27  ;;  %v2470_v27 = vld [vmem:[#allocation9 + $0x3f8] sm:$0xff] }
 0x437   : > { %4534 = vmatprep.subr.bf16.mxu1 %v7077_v28  ;;  %v2229_v37 = vld [vmem:[#allocation3 + $0xca] sm:$0xff]  ;;  %v4544_v46 = vpack.c.bf16 %v2470_v27, %v2469_v40  ;;  %v6773_v27 = vld [vmem:[#allocation3 + $0x182] sm:$0xff] }
 0x438   : > { %v6703_v30 = vpop.f32.mrb[82].mxu0  ;;  %v7085_v40 = vld [vmem:[#allocation25_spill] sm:$0xff] }
 0x439   : > { %3068 = vmatmul.mubr.f32.gmra.mrb[56].mxu1 %v6701_v32  ;;  %v6706_v55 = vpop.f32.mrb[83].mxu0 }
 0x43a   : > { %3072 = vmatprep.mubr.f32.mxu1 %v2227_v22  ;;  %4536 = vmatpush1.bf16.msra.mxu1 %v4535_v7  ;;  %v7081_v22 = vld [vmem:[#allocation14_spill] sm:$0xff] }
 0x43b   : > { %4537 = vmatprep.subr.bf16.mxu1 %v7077_v28 }
 0x43d   : > { %3073 = vmatmul.mubr.f32.gmra.mrb[58].mxu1 %v6709_v17 }
 0x43e   : > { %3077 = vmatprep.mubr.f32.mxu1 %v2228_v12  ;;  %4539 = vmatpush1.bf16.msra.mxu1 %v4538_v57  ;;  %v6726_v57 = vld [vmem:[#allocation3 + $0xd9] sm:$0xff] }
 0x43f   : > { %4540 = vmatprep.subr.bf16.mxu1 %v7077_v28  ;;  %v6742_v12 = vld [vmem:[#allocation3 + $0xf9] sm:$0xff] }
 0x440   : > { %v6715_v25 = vpop.f32.mrb[84].mxu0 }
 0x441   : > { %3078 = vmatmul.mubr.f32.gmra.mrb[60].mxu1 %v6713_v58  ;;  %v6718_v7 = vpop.f32.mrb[85].mxu0 }
 0x442   : > { %3082 = vmatprep.mubr.f32.mxu1 %v2229_v37  ;;  %4542 = vmatpush1.bf16.msra.mxu1 %v4541_v41  ;;  %v6746_v41 = vld [vmem:[#allocation3 + $0x109] sm:$0xff] }
 0x443   : > { %4543 = vmatprep.subr.bf16.mxu1 %v7077_v28  ;;  %v6734_v28 = vld [vmem:[#allocation3 + $0xe1] sm:$0xff] }
 0x445   : > { %3083 = vmatmul.mubr.f32.gmra.mrb[62].mxu1 %v6721_v11 }
 0x446   : > { %3087 = vmatprep.mubr.f32.mxu1 %v6401_v26  ;;  %4545 = vmatpush1.bf16.msra.mxu1 %v4544_v46  ;;  %v6738_v26 = vld [vmem:[#allocation3 + $0xf1] sm:$0xff] }
 0x447   : > { %4578 = vmatprep.subr.bf16.mxu1 %v7081_v22  ;;  %v6778_v46 = vld [vmem:[#allocation3 + $0x18a] sm:$0xff] }
 0x448   : > { %v6728_v56 = vpop.f32.mrb[86].mxu0 }
 0x449   : > { %3088 = vmatmul.mubr.f32.gmra.mrb[64].mxu1 %v6726_v57  ;;  %v6731_v34 = vpop.f32.mrb[87].mxu0 }
 0x44a   : > { %3092 = vmatprep.mubr.f32.mxu1 %v6405_v5  ;;  %v6750_v5 = vld [vmem:[#allocation3 + $0x111] sm:$0xff] }
 0x44d   : > { %3093 = vmatmul.mubr.f32.gmra.mrb[66].mxu1 %v6734_v28 }
 0x44e   : > { %3097 = vmatprep.mubr.f32.mxu1 %v6417_v54  ;;  %v6754_v54 = vld [vmem:[#allocation3 + $0x121] sm:$0xff] }
 0x451   : > { %3098 = vmatmul.mubr.f32.gmra.mrb[68].mxu1 %v6738_v26 }
 0x452   : > { %3102 = vmatprep.mubr.f32.mxu1 %v6421_v52  ;;  %v6758_v52 = vld [vmem:[#allocation3 + $0x129] sm:$0xff] }
 0x455   : > { %3103 = vmatmul.mubr.f32.gmra.mrb[70].mxu1 %v6742_v12 }
 0x456   : > { %3107 = vmatprep.mubr.f32.mxu1 %v6433_v33  ;;  %v7082_v33 = vld [vmem:[#allocation22_spill] sm:$0xff] }
 0x459   : > { %3108 = vmatmul.mubr.f32.gmra.mrb[72].mxu1 %v6746_v41 }
 0x45a   : > { %3112 = vmatprep.mubr.f32.mxu1 %v6437_v59  ;;  %v7083_v59 = vld [vmem:[#allocation23_spill] sm:$0xff] }
 0x45d   : > { %3113 = vmatmul.mubr.f32.gmra.mrb[74].mxu1 %v6750_v5 }
 0x45e   : > { %3117 = vmatprep.mubr.f32.mxu1 %v6454_v31  ;;  %v7084_v31 = vld [vmem:[#allocation24_spill] sm:$0xff] }
 0x461   : > { %3118 = vmatmul.mubr.f32.gmra.mrb[76].mxu1 %v6754_v54 }
 0x462   : > { %3122 = vmatprep.mubr.f32.mxu1 %v6458_v39  ;;  %v7086_v39 = vld [vmem:[#allocation28_spill] sm:$0xff] }
 0x465   : > { %3123 = vmatmul.mubr.f32.gmra.mrb[78].mxu1 %v6758_v52 }
 0x466   : > { %3127 = vmatprep.mubr.f32.mxu1 %v7078_v4  ;;  %v7087_v4 = vld [vmem:[#allocation29_spill] sm:$0xff] }
 0x469   : > { %3128 = vmatmul.mubr.f32.gmra.mrb[80].mxu1 %v7082_v33  ;;  %v7090_v33 = vmax.f32 %v6517_v21, 0.0  ;;  %v2249_v21 = vld [vmem:[#allocation3 + $0x48] sm:$0xff] }
 0x46a   : > { %3132 = vmatprep.mubr.f32.mxu1 %v7079_v63  ;;  %v7088_v63 = vld [vmem:[#allocation30_spill] sm:$0xff] }
 0x46b   : > { %v7089_v37 = vmax.f32 %v7088_v63, 0.0  ;;  %v7096_v63 = vld [vmem:[#allocation20_spill] sm:$0xff] }
 0x46d   : > { %3133 = vmatmul.mubr.f32.gmra.mrb[82].mxu1 %v7083_v59  ;;  %v2247_v59 = vld [vmem:[#allocation3 + $0x30] sm:$0xff] }
 0x46e   : > { %3137 = vmatprep.mubr.f32.mxu1 %v6606_v53 }
 0x471   : > { %3138 = vmatmul.mubr.f32.gmra.mrb[84].mxu1 %v7084_v31  ;;  %v7091_v31 = vld [vmem:[#allocation15_spill] sm:$0xff] }
 0x472   : > { %3142 = vmatprep.mubr.f32.mxu1 %v6614_v19 }
 0x475   : > { %3143 = vmatmul.mubr.f32.gmra.mrb[86].mxu1 %v7085_v40  ;;  %v2248_v40 = vld [vmem:[#allocation3 + $0x38] sm:$0xff] }
 0x476   : > { %3147 = vmatprep.mubr.f32.mxu1 %v6620_v1 }
 0x479   : > { %3148 = vmatmul.mubr.f32.gmra.mrb[88].mxu1 %v7086_v39  ;;  %v7092_v39 = vld [vmem:[#allocation16_spill] sm:$0xff] }
 0x47a   : > { %3152 = vmatprep.mubr.f32.mxu1 %v6630_v20 }
 0x47d   : > { %3153 = vmatmul.mubr.f32.gmra.mrb[90].mxu1 %v7087_v4  ;;  %v7095_v4 = vld [vmem:[#allocation19_spill] sm:$0xff] }
 0x47e   : > { %3157 = vmatprep.mubr.f32.mxu1 %v6773_v27 }
 0x481   : > { %3158 = vmatmul.mubr.f32.gmra.mrb[92].mxu1 %v7089_v37  ;;  %v7097_v37 = vld [vmem:[#allocation21_spill] sm:$0xff] }
 0x482   : > { %3162 = vmatprep.mubr.f32.mxu1 %v6778_v46 }
 0x485   : > { %3163 = vmatmul.mubr.f32.gmra.mrb[94].mxu1 %v7090_v33  ;;  %v2255_v33 = vld [vmem:[#allocation3 + $0x90] sm:$0xff] }
 0x486   : > { %3232 = vmatprep.mubr.f32.mxu1 %v6641_v18  ;;  %v7093_v18 = vld [vmem:[#allocation17_spill] sm:$0xff] }
 0x489   : > { %3233 = vmatmul.mubr.f32.vlgmr.msra.gmra.mrb[32].mxu1 %v2247_v59  ;;  %v2257_v59 = vld [vmem:[#allocation3 + $0xa8] sm:$0xff] }
 0x48a   : > { %3237 = vmatprep.mubr.f32.mxu1 %v6649_v42  ;;  %4586 = vmatpush3.bf16.msra.mxu1 %v7081_v22  ;;  %v2250_v42 = vld [vmem:[#allocation3 + $0x50] sm:$0xff] }
 0x48b   : > { %4579 = vmatprep.subr.bf16.mxu1 %v7091_v31  ;;  %v7094_v22 = vld [vmem:[#allocation18_spill] sm:$0xff] }
 0x48d   : > { %3238 = vmatmul.mubr.f32.gmra.mrb[34].mxu1 %v2248_v40  ;;  %v2301_v40 = vld [vmem:[#allocation3 + $0x139] sm:$0xff] }
 0x48e   : > { %3242 = vmatprep.mubr.f32.mxu1 %v6653_v45  ;;  %4587 = vmatpush3.bf16.msra.mxu1 %v7091_v31  ;;  %v2251_v45 = vld [vmem:[#allocation3 + $0x60] sm:$0xff] }
 0x48f   : > { %4580 = vmatprep.subr.bf16.mxu1 %v7092_v39  ;;  %v2259_v31 = vld [vmem:[#allocation3 + $0xc0] sm:$0xff] }
 0x491   : > { %3243 = vmatmul.mubr.f32.gmra.mrb[36].mxu1 %v2249_v21  ;;  %v2303_v21 = vld [vmem:[#allocation3 + $0x151] sm:$0xff] }
 0x492   : > { %3247 = vmatprep.mubr.f32.mxu1 %v6661_v61  ;;  %4588 = vmatpush3.bf16.msra.mxu1 %v7092_v39  ;;  %v2252_v61 = vld [vmem:[#allocation3 + $0x68] sm:$0xff] }
 0x493   : > { %4581 = vmatprep.subr.bf16.mxu1 %v7093_v18  ;;  %v2302_v39 = vld [vmem:[#allocation3 + $0x141] sm:$0xff] }
 0x495   : > { %3248 = vmatmul.mubr.f32.gmra.mrb[38].mxu1 %v2250_v42  ;;  %v2305_v42 = vld [vmem:[#allocation3 + $0x169] sm:$0xff] }
 0x496   : > { %3252 = vmatprep.mubr.f32.mxu1 %v6665_v38  ;;  %4589 = vmatpush3.bf16.msra.mxu1 %v7093_v18  ;;  %v2253_v38 = vld [vmem:[#allocation3 + $0x78] sm:$0xff] }
 0x497   : > { %4582 = vmatprep.subr.bf16.mxu1 %v7094_v22  ;;  %v2304_v18 = vld [vmem:[#allocation3 + $0x159] sm:$0xff] }
 0x499   : > { %3253 = vmatmul.mubr.f32.gmra.mrb[40].mxu1 %v2251_v45  ;;  %v2274_v45 = vld [vmem:[#allocation3 + $0x170] sm:$0xff] }
 0x49a   : > { %3257 = vmatprep.mubr.f32.mxu1 %v6673_v13  ;;  %4590 = vmatpush3.bf16.msra.mxu1 %v7094_v22  ;;  %v2254_v13 = vld [vmem:[#allocation3 + $0x80] sm:$0xff]  ;;  %v2306_v22 = vld [vmem:[#allocation3 + $0x171] sm:$0xff] }
 0x49b   : > { %4583 = vmatprep.subr.bf16.mxu1 %v7095_v4 }
 0x49d   : > { %3258 = vmatmul.mubr.f32.gmra.mrb[42].mxu1 %v2252_v61  ;;  %v2308_v61 = vld [vmem:[#allocation3 + $0x189] sm:$0xff] }
 0x49e   : > { %3262 = vmatprep.mubr.f32.mxu1 %v6677_v2  ;;  %4591 = vmatpush3.bf16.msra.mxu1 %v7095_v4  ;;  %v2256_v2 = vld [vmem:[#allocation3 + $0x98] sm:$0xff]  ;;  %v2307_v4 = vld [vmem:[#allocation3 + $0x181] sm:$0xff] }
 0x49f   : > { %4584 = vmatprep.subr.bf16.mxu1 %v7096_v63 }
 0x4a1   : > { %3263 = vmatmul.mubr.f32.gmra.mrb[44].mxu1 %v2253_v38  ;;  %v2277_v38 = vld [vmem:[#allocation3 + $0x198] sm:$0xff] }
 0x4a2   : > { %3267 = vmatprep.mubr.f32.mxu1 %v6685_v10  ;;  %4592 = vmatpush3.bf16.msra.mxu1 %v7096_v63  ;;  %v2258_v10 = vld [vmem:[#allocation3 + $0xb0] sm:$0xff]  ;;  %v2309_v63 = vld [vmem:[#allocation3 + $0x199] sm:$0xff] }
 0x4a3   : > { %4585 = vmatprep.subr.bf16.mxu1 %v7097_v37 }
 0x4a5   : > { %3268 = vmatmul.mubr.f32.gmra.mrb[46].mxu1 %v2254_v13  ;;  %v5148_v13 = vld [vmem:[#allocation2 + $0x8] sm:$0xff] }
 0x4a6   : > { %3272 = vmatprep.mubr.f32.mxu1 %v6689_v36  ;;  %4593 = vmatpush3.bf16.msra.mxu1 %v7097_v37  ;;  %v2260_v36 = vld [vmem:[#allocation3 + $0xc8] sm:$0xff] }
 0x4a7   : > { %v2310_v37 = vld [vmem:[#allocation3 + $0x1a1] sm:$0xff] }
 0x4a9   : > { %3273 = vmatmul.mubr.f32.gmra.mrb[48].mxu1 %v2255_v33 }
 0x4aa   : > { %3277 = vmatprep.mubr.f32.mxu1 %v6697_v15  ;;  %v2261_v15 = vld [vmem:[#allocation3 + $0xd8] sm:$0xff] }
 0x4ad   : > { %3278 = vmatmul.mubr.f32.gmra.mrb[50].mxu1 %v2256_v2 }
 0x4ae   : > { %3282 = vmatprep.mubr.f32.mxu1 %v6701_v32  ;;  %v2262_v32 = vld [vmem:[#allocation3 + $0xe0] sm:$0xff] }
 0x4b1   : > { %3283 = vmatmul.mubr.f32.gmra.mrb[52].mxu1 %v2257_v59 }
 0x4b2   : > { %3287 = vmatprep.mubr.f32.mxu1 %v6709_v17  ;;  %v2263_v17 = vld [vmem:[#allocation3 + $0xf0] sm:$0xff] }
 0x4b5   : > { %3288 = vmatmul.mubr.f32.gmra.mrb[54].mxu1 %v2258_v10 }
 0x4b6   : > { %3292 = vmatprep.mubr.f32.mxu1 %v6713_v58  ;;  %v2264_v58 = vld [vmem:[#allocation3 + $0xf8] sm:$0xff] }
 0x4b9   : > { %3293 = vmatmul.mubr.f32.gmra.mrb[56].mxu1 %v2259_v31  ;;  %v3619_v31 = vld [vmem:[%s5534_s12 + $0x8] sm:$0xff] }
 0x4ba   : > { %3297 = vmatprep.mubr.f32.mxu1 %v6721_v11  ;;  %v2265_v11 = vld [vmem:[#allocation3 + $0x108] sm:$0xff] }
 0x4bd   : > { %3298 = vmatmul.mubr.f32.gmra.mrb[58].mxu1 %v2260_v36 }
 0x4be   : > { %3302 = vmatprep.mubr.f32.mxu1 %v6726_v57  ;;  %v2266_v57 = vld [vmem:[#allocation3 + $0x110] sm:$0xff] }
 0x4c1   : > { %3303 = vmatmul.mubr.f32.gmra.mrb[60].mxu1 %v2261_v15 }
 0x4c2   : > { %3307 = vmatprep.mubr.f32.mxu1 %v6734_v28  ;;  %v2267_v28 = vld [vmem:[#allocation3 + $0x120] sm:$0xff] }
 0x4c5   : > { %3308 = vmatmul.mubr.f32.gmra.mrb[62].mxu1 %v2262_v32 }
 0x4c6   : > { %3312 = vmatprep.mubr.f32.mxu1 %v6738_v26  ;;  %v2268_v26 = vld [vmem:[#allocation3 + $0x128] sm:$0xff] }
 0x4c9   : > { %3313 = vmatmul.mubr.f32.gmra.mrb[64].mxu1 %v2263_v17 }
 0x4ca   : > { %3317 = vmatprep.mubr.f32.mxu1 %v6742_v12  ;;  %v2269_v12 = vld [vmem:[#allocation3 + $0x138] sm:$0xff] }
 0x4cd   : > { %3318 = vmatmul.mubr.f32.gmra.mrb[66].mxu1 %v2264_v58 }
 0x4ce   : > { %3322 = vmatprep.mubr.f32.mxu1 %v6746_v41  ;;  %v2270_v41 = vld [vmem:[#allocation3 + $0x140] sm:$0xff] }
 0x4d1   : > { %3323 = vmatmul.mubr.f32.gmra.mrb[68].mxu1 %v2265_v11  ;;  %v3620_v11 = vld [vmem:[%s5534_s12 + $0x10] sm:$0xff] }
 0x4d2   : > { %3327 = vmatprep.mubr.f32.mxu1 %v6750_v5  ;;  %v2271_v5 = vld [vmem:[#allocation3 + $0x150] sm:$0xff] }
 0x4d5   : > { %3328 = vmatmul.mubr.f32.gmra.mrb[70].mxu1 %v2266_v57 }
 0x4d6   : > { %3332 = vmatprep.mubr.f32.mxu1 %v6754_v54  ;;  %v2272_v54 = vld [vmem:[#allocation3 + $0x158] sm:$0xff] }
 0x4d9   : > { %3333 = vmatmul.mubr.f32.gmra.mrb[72].mxu1 %v2267_v28 }
 0x4da   : > { %3337 = vmatprep.mubr.f32.mxu1 %v6758_v52  ;;  %v2273_v52 = vld [vmem:[#allocation3 + $0x168] sm:$0xff] }
 0x4dd   : > { %3338 = vmatmul.mubr.f32.gmra.mrb[74].mxu1 %v2268_v26 }
 0x4de   : > { %3342 = vmatprep.mubr.f32.mxu1 %v2301_v40 }
 0x4e1   : > { %3343 = vmatmul.mubr.f32.gmra.mrb[76].mxu1 %v2269_v12 }
 0x4e2   : > { %3347 = vmatprep.mubr.f32.mxu1 %v2302_v39  ;;  %v3621_v39 = vld [vmem:[%s5534_s12 + $0x18] sm:$0xff] }
 0x4e5   : > { %3348 = vmatmul.mubr.f32.gmra.mrb[78].mxu1 %v2270_v41 }
 0x4e6   : > { %3352 = vmatprep.mubr.f32.mxu1 %v2303_v21 }
 0x4e9   : > { %3353 = vmatmul.mubr.f32.gmra.mrb[80].mxu1 %v2271_v5 }
 0x4ea   : > { %3357 = vmatprep.mubr.f32.mxu1 %v2304_v18 }
 0x4ed   : > { %3358 = vmatmul.mubr.f32.gmra.mrb[82].mxu1 %v2272_v54 }
 0x4ee   : > { %3362 = vmatprep.mubr.f32.mxu1 %v2305_v42 }
 0x4f1   : > { %3363 = vmatmul.mubr.f32.gmra.mrb[84].mxu1 %v2273_v52 }
 0x4f2   : > { %3367 = vmatprep.mubr.f32.mxu1 %v2306_v22 }
 0x4f5   : > { %3368 = vmatmul.mubr.f32.gmra.mrb[86].mxu1 %v2274_v45 }
 0x4f6   : > { %3372 = vmatprep.mubr.f32.mxu1 %v2307_v4 }
 0x4f9   : > { %3373 = vmatmul.mubr.f32.gmra.mrb[88].mxu1 %v6617_v29  ;;  %v2341_v29 = vld [vmem:[#allocation3 + $0x19a] sm:$0xff] }
 0x4fa   : > { %3377 = vmatprep.mubr.f32.mxu1 %v2308_v61 }
 0x4fd   : > { %3378 = vmatmul.mubr.f32.gmra.mrb[90].mxu1 %v6625_v62  ;;  %v2342_v62 = vld [vmem:[#allocation3 + $0x1a2] sm:$0xff] }
 0x4fe   : > { %3382 = vmatprep.mubr.f32.mxu1 %v2309_v63 }
 0x501   : > { %3383 = vmatmul.mubr.f32.gmra.mrb[92].mxu1 %v2277_v38 }
 0x502   : > { %3387 = vmatprep.mubr.f32.mxu1 %v2310_v37 }
 0x505   : > { %3388 = vmatmul.mubr.f32.gmra.mrb[94].mxu1 %v5148_v13 }
 0x506   : > { %4118 = vmatprep.mubr.f32.mxu1 %v6606_v53  ;;  %v6831_v53 = vld [vmem:[%s7012_s4] ss:$0 sm:$0xff] }
 0x509   : > { %4119 = vmatmul.mubr.f32.vlgmr.msra.gmra.mrb[96].mxu1 %v6614_v19 }
 0x50a   : > { %4121 = vmatprep.mubr.f32.mxu1 %v6620_v1 }
 0x50d   : > { %4122 = vmatmul.mubr.f32.gmra.mrb[98].mxu1 %v6630_v20  ;;  %v3618_v20 = vld [vmem:[%s5534_s12] sm:$0xff] }
 0x50e   : > { %4124 = vmatprep.mubr.f32.mxu1 %v6773_v27 }
 0x511   : > { %4125 = vmatmul.mubr.f32.gmra.mrb[100].mxu1 %v6778_v46 }
 0x512   : > { %4127 = vmatprep.mubr.f32.mxu1 %v2341_v29 }
 0x515   : > { %4128 = vmatmul.mubr.f32.gmra.mrb[102].mxu1 %v2342_v62 }
 0x55c   : > { %v3234_v19 = vpop.f32.mrb[32].mxu1 }
 0x55d   : > { %v4626_v1 = vadd.f32 %v6831_v53, %v3234_v19  ;;  %v3236_v33 = vpop.f32.mrb[33].mxu1 }
 0x55f   : > { %v3460_v27 = vadd.f32 %v4626_v1, %v6601_v47 }
 0x560   : > { %v3239_v2 = vpop.f32.mrb[34].mxu1 }
 0x561   : > { %v3650_v59 = vadd.f32 %v3618_v20, %v3460_v27  ;;  %v4627_v46 = vadd.f32 %v6831_v53, %v3239_v2  ;;  %v3241_v10 = vpop.f32.mrb[35].mxu1 }
 0x563   : > { %v3682_v36 = vmax.f32 %v3650_v59, 0.0  ;;  %v3465_v15 = vadd.f32 %v4627_v46, %v6598_v0 }
 0x564   : > { %v3244_v32 = vpop.f32.mrb[36].mxu1 }
 0x565   : > { %3714 = vst [vmem:[%s6841_s10] sm:$0xff] %v3682_v36  ;;  %v3651_v17 = vadd.f32 %v3619_v31, %v3465_v15  ;;  %v4628_v47 = vadd.f32 %v6831_v53, %v3244_v32  ;;  %v3246_v58 = vpop.f32.mrb[37].mxu1 }
 0x567   : > { %v3683_v57 = vmax.f32 %v3651_v17, 0.0  ;;  %v3470_v28 = vadd.f32 %v4628_v47, %v6611_v60  ;;  %v3622_v60 = vld [vmem:[%s5534_s12 + $0x20] sm:$0xff] }
 0x568   : > { %v3249_v26 = vpop.f32.mrb[38].mxu1 }
 0x569   : > { %3715 = vst [vmem:[%s6841_s10 + $0x8] sm:$0xff] %v3683_v57  ;;  %v3652_v0 = vadd.f32 %v3620_v11, %v3470_v28  ;;  %v4629_v40 = vadd.f32 %v6831_v53, %v3249_v26  ;;  %v3251_v12 = vpop.f32.mrb[39].mxu1 }
 0x56b   : > { %v3684_v41 = vmax.f32 %v3652_v0, 0.0  ;;  %v3475_v21 = vadd.f32 %v4629_v40, %v6608_v48  ;;  %v3623_v48 = vld [vmem:[%s5534_s12 + $0x28] sm:$0xff] }
 0x56c   : > { %v3254_v5 = vpop.f32.mrb[40].mxu1 }
 0x56d   : > { %3716 = vst [vmem:[%s6841_s10 + $0x10] sm:$0xff] %v3684_v41  ;;  %v3653_v18 = vadd.f32 %v3621_v39, %v3475_v21  ;;  %v4630_v54 = vadd.f32 %v6831_v53, %v3254_v5  ;;  %v3256_v42 = vpop.f32.mrb[41].mxu1 }
 0x56f   : > { %v3685_v52 = vmax.f32 %v3653_v18, 0.0  ;;  %v3480_v22 = vadd.f32 %v4630_v54, %v6627_v35  ;;  %v3624_v35 = vld [vmem:[%s5534_s12 + $0x30] sm:$0xff] }
 0x570   : > { %v3259_v45 = vpop.f32.mrb[42].mxu1 }
 0x571   : > { %3717 = vst [vmem:[%s6841_s10 + $0x18] sm:$0xff] %v3685_v52  ;;  %v3654_v4 = vadd.f32 %v3622_v60, %v3480_v22  ;;  %v4631_v61 = vadd.f32 %v6831_v53, %v3259_v45  ;;  %v3261_v63 = vpop.f32.mrb[43].mxu1 }
 0x573   : > { %v3686_v38 = vmax.f32 %v3654_v4, 0.0  ;;  %v3485_v37 = vadd.f32 %v4631_v61, %v6622_v51  ;;  %v3625_v51 = vld [vmem:[%s5534_s12 + $0x38] sm:$0xff] }
 0x574   : > { %v3264_v13 = vpop.f32.mrb[44].mxu1 }
 0x575   : > { %3718 = vst [vmem:[%s6841_s10 + $0x20] sm:$0xff] %v3686_v38  ;;  %v3655_v29 = vadd.f32 %v3623_v48, %v3485_v37  ;;  %v4632_v62 = vadd.f32 %v6831_v53, %v3264_v13  ;;  %v3266_v19 = vpop.f32.mrb[45].mxu1 }
 0x577   : > { %v3687_v1 = vmax.f32 %v3655_v29, 0.0  ;;  %v3490_v33 = vadd.f32 %v4632_v62, %v6636_v8  ;;  %v3626_v8 = vld [vmem:[%s5534_s12 + $0x40] sm:$0xff] }
 0x578   : > { %v3269_v20 = vpop.f32.mrb[46].mxu1 }
 0x579   : > { %3719 = vst [vmem:[%s6841_s10 + $0x28] sm:$0xff] %v3687_v1  ;;  %v3656_v27 = vadd.f32 %v3624_v35, %v3490_v33  ;;  %v4633_v2 = vadd.f32 %v6831_v53, %v3269_v20  ;;  %v3271_v59 = vpop.f32.mrb[47].mxu1 }
 0x57b   : > { %v3688_v46 = vmax.f32 %v3656_v27, 0.0  ;;  %v3495_v10 = vadd.f32 %v4633_v2, %v6634_v16  ;;  %v3627_v16 = vld [vmem:[%s5534_s12 + $0x48] sm:$0xff] }
 0x57c   : > { %v3274_v31 = vpop.f32.mrb[48].mxu1 }
 0x57d   : > { %3720 = vst [vmem:[%s6841_s10 + $0x30] sm:$0xff] %v3688_v46  ;;  %v3657_v36 = vadd.f32 %v3625_v51, %v3495_v10  ;;  %v4634_v15 = vadd.f32 %v6831_v53, %v3274_v31  ;;  %v3276_v32 = vpop.f32.mrb[49].mxu1 }
 0x57f   : > { %v3689_v17 = vmax.f32 %v3657_v36, 0.0  ;;  %v3500_v47 = vadd.f32 %v4634_v15, %v6646_v9  ;;  %v3628_v9 = vld [vmem:[%s5534_s12 + $0x50] sm:$0xff] }
 0x580   : > { %v3279_v58 = vpop.f32.mrb[50].mxu1 }
 0x581   : > { %3721 = vst [vmem:[%s6841_s10 + $0x38] sm:$0xff] %v3689_v17  ;;  %v3658_v11 = vadd.f32 %v3626_v8, %v3500_v47  ;;  %v4635_v57 = vadd.f32 %v6831_v53, %v3279_v58  ;;  %v3281_v28 = vpop.f32.mrb[51].mxu1 }
 0x583   : > { %v3690_v26 = vmax.f32 %v3658_v11, 0.0  ;;  %v3505_v0 = vadd.f32 %v4635_v57, %v6643_v44  ;;  %v3629_v44 = vld [vmem:[%s5534_s12 + $0x58] sm:$0xff] }
 0x584   : > { %v3284_v40 = vpop.f32.mrb[52].mxu1 }
 0x585   : > { %3722 = vst [vmem:[%s6841_s10 + $0x40] sm:$0xff] %v3690_v26  ;;  %v3659_v12 = vadd.f32 %v3627_v16, %v3505_v0  ;;  %v4636_v39 = vadd.f32 %v6831_v53, %v3284_v40  ;;  %v3286_v41 = vpop.f32.mrb[53].mxu1 }
 0x587   : > { %v3691_v21 = vmax.f32 %v3659_v12, 0.0  ;;  %v3510_v5 = vadd.f32 %v4636_v39, %v6658_v3  ;;  %v3630_v3 = vld [vmem:[%s5534_s12 + $0x60] sm:$0xff] }
 0x588   : > { %v3289_v18 = vpop.f32.mrb[54].mxu1 }
 0x589   : > { %3723 = vst [vmem:[%s6841_s10 + $0x48] sm:$0xff] %v3691_v21  ;;  %v3660_v54 = vadd.f32 %v3628_v9, %v3510_v5  ;;  %v4637_v42 = vadd.f32 %v6831_v53, %v3289_v18  ;;  %v3291_v60 = vpop.f32.mrb[55].mxu1 }
 0x58b   : > { %v3692_v52 = vmax.f32 %v3660_v54, 0.0  ;;  %v3515_v22 = vadd.f32 %v4637_v42, %v6655_v24  ;;  %v3631_v24 = vld [vmem:[%s5534_s12 + $0x68] sm:$0xff] }
 0x58c   : > { %v3294_v45 = vpop.f32.mrb[56].mxu1 }
 0x58d   : > { %3724 = vst [vmem:[%s6841_s10 + $0x50] sm:$0xff] %v3692_v52  ;;  %v3661_v4 = vadd.f32 %v3629_v44, %v3515_v22  ;;  %v4638_v61 = vadd.f32 %v6831_v53, %v3294_v45  ;;  %v3296_v63 = vpop.f32.mrb[57].mxu1 }
 0x58f   : > { %v3693_v48 = vmax.f32 %v3661_v4, 0.0  ;;  %v3520_v38 = vadd.f32 %v4638_v61, %v6670_v14  ;;  %v3632_v14 = vld [vmem:[%s5534_s12 + $0x70] sm:$0xff] }
 0x590   : > { %v3299_v37 = vpop.f32.mrb[58].mxu1 }
 0x591   : > { %3725 = vst [vmem:[%s6841_s10 + $0x58] sm:$0xff] %v3693_v48  ;;  %v3662_v13 = vadd.f32 %v3630_v3, %v3520_v38  ;;  %v4639_v29 = vadd.f32 %v6831_v53, %v3299_v37  ;;  %v3301_v62 = vpop.f32.mrb[59].mxu1 }
 0x593   : > { %v3694_v19 = vmax.f32 %v3662_v13, 0.0  ;;  %v3525_v35 = vadd.f32 %v4639_v29, %v6667_v23  ;;  %v3633_v23 = vld [vmem:[%s5534_s12 + $0x78] sm:$0xff] }
 0x594   : > { %v3304_v1 = vpop.f32.mrb[60].mxu1 }
 0x595   : > { %3726 = vst [vmem:[%s6841_s10 + $0x60] sm:$0xff] %v3694_v19  ;;  %v3663_v33 = vadd.f32 %v3631_v24, %v3525_v35  ;;  %v4640_v20 = vadd.f32 %v6831_v53, %v3304_v1  ;;  %v3306_v27 = vpop.f32.mrb[61].mxu1 }
 0x597   : > { %v3695_v2 = vmax.f32 %v3663_v33, 0.0  ;;  %v3530_v59 = vadd.f32 %v4640_v20, %v6682_v50  ;;  %v3634_v50 = vld [vmem:[%s5534_s12 + $0x80] sm:$0xff] }
 0x598   : > { %v3309_v51 = vpop.f32.mrb[62].mxu1 }
 0x599   : > { %3727 = vst [vmem:[%s6841_s10 + $0x68] sm:$0xff] %v3695_v2  ;;  %v3664_v46 = vadd.f32 %v3632_v14, %v3530_v59  ;;  %v4641_v10 = vadd.f32 %v6831_v53, %v3309_v51  ;;  %v3311_v31 = vpop.f32.mrb[63].mxu1  ;;  %v3641_v51 = vld [vmem:[%s5534_s12 + $0xb8] sm:$0xff] }
 0x59b   : > { %v3696_v36 = vmax.f32 %v3664_v46, 0.0  ;;  %v3535_v15 = vadd.f32 %v4641_v10, %v6679_v49  ;;  %v3635_v49 = vld [vmem:[%s5534_s12 + $0x88] sm:$0xff] }
 0x59c   : > { %v3314_v32 = vpop.f32.mrb[64].mxu1 }
 0x59d   : > { %3728 = vst [vmem:[%s6841_s10 + $0x70] sm:$0xff] %v3696_v36  ;;  %v3665_v8 = vadd.f32 %v3633_v23, %v3535_v15  ;;  %v4642_v17 = vadd.f32 %v6831_v53, %v3314_v32  ;;  %v3316_v47 = vpop.f32.mrb[65].mxu1 }
 0x59f   : > { %v3697_v58 = vmax.f32 %v3665_v8, 0.0  ;;  %v3540_v11 = vadd.f32 %v4642_v17, %v6694_v6  ;;  %v3636_v6 = vld [vmem:[%s5534_s12 + $0x90] sm:$0xff] }
 0x5a0   : > { %v3319_v57 = vpop.f32.mrb[66].mxu1 }
 0x5a1   : > { %3729 = vst [vmem:[%s6841_s10 + $0x78] sm:$0xff] %v3697_v58  ;;  %v3666_v28 = vadd.f32 %v3634_v50, %v3540_v11  ;;  %v4643_v16 = vadd.f32 %v6831_v53, %v3319_v57  ;;  %v3321_v26 = vpop.f32.mrb[67].mxu1 }
 0x5a3   : > { %v3698_v0 = vmax.f32 %v3666_v28, 0.0  ;;  %v3545_v40 = vadd.f32 %v4643_v16, %v6691_v43  ;;  %v3637_v43 = vld [vmem:[%s5534_s12 + $0x98] sm:$0xff] }
 0x5a4   : > { %v3324_v12 = vpop.f32.mrb[68].mxu1 }
 0x5a5   : > { %3730 = vst [vmem:[%s6841_s10 + $0x80] sm:$0xff] %v3698_v0  ;;  %v3667_v39 = vadd.f32 %v3635_v49, %v3545_v40  ;;  %v4644_v41 = vadd.f32 %v6831_v53, %v3324_v12  ;;  %v3326_v9 = vpop.f32.mrb[69].mxu1  ;;  %v3643_v12 = vld [vmem:[%s5534_s12 + $0xc8] sm:$0xff] }
 0x5a6   : > { %v3642_v9 = vld [vmem:[%s5534_s12 + $0xc0] sm:$0xff] }
 0x5a7   : > { %v3699_v21 = vmax.f32 %v3667_v39, 0.0  ;;  %v3550_v5 = vadd.f32 %v4644_v41, %v6706_v55  ;;  %v3638_v55 = vld [vmem:[%s5534_s12 + $0xa0] sm:$0xff] }
 0x5a8   : > { %v3329_v18 = vpop.f32.mrb[70].mxu1 }
 0x5a9   : > { %3731 = vst [vmem:[%s6841_s10 + $0x88] sm:$0xff] %v3699_v21  ;;  %v3668_v54 = vadd.f32 %v3636_v6, %v3550_v5  ;;  %v4645_v42 = vadd.f32 %v6831_v53, %v3329_v18  ;;  %v3331_v60 = vpop.f32.mrb[71].mxu1 }
 0x5aa   : > { %v3645_v60 = vld [vmem:[%s5534_s12 + $0xd8] sm:$0xff] }
 0x5ab   : > { %v3700_v44 = vmax.f32 %v3668_v54, 0.0  ;;  %v3555_v52 = vadd.f32 %v4645_v42, %v6703_v30  ;;  %v3639_v30 = vld [vmem:[%s5534_s12 + $0xa8] sm:$0xff] }
 0x5ac   : > { %v3334_v22 = vpop.f32.mrb[72].mxu1 }
 0x5ad   : > { %3732 = vst [vmem:[%s6841_s10 + $0x90] sm:$0xff] %v3700_v44  ;;  %v3669_v45 = vadd.f32 %v3637_v43, %v3555_v52  ;;  %v4646_v4 = vadd.f32 %v6831_v53, %v3334_v22  ;;  %v3336_v61 = vpop.f32.mrb[73].mxu1  ;;  %v3644_v22 = vld [vmem:[%s5534_s12 + $0xd0] sm:$0xff] }
 0x5af   : > { %v3701_v63 = vmax.f32 %v3669_v45, 0.0  ;;  %v3560_v3 = vadd.f32 %v4646_v4, %v6718_v7  ;;  %v3640_v7 = vld [vmem:[%s5534_s12 + $0xb0] sm:$0xff] }
 0x5b0   : > { %v3339_v48 = vpop.f32.mrb[74].mxu1 }
 0x5b1   : > { %3733 = vst [vmem:[%s6841_s10 + $0x98] sm:$0xff] %v3701_v63  ;;  %v3670_v38 = vadd.f32 %v3638_v55, %v3560_v3  ;;  %v4647_v37 = vadd.f32 %v6831_v53, %v3339_v48  ;;  %v3341_v13 = vpop.f32.mrb[75].mxu1 }
 0x5b3   : > { %v3702_v29 = vmax.f32 %v3670_v38, 0.0  ;;  %v3565_v62 = vadd.f32 %v4647_v37, %v6715_v25  ;;  %v3647_v38 = vld [vmem:[%s5534_s12 + $0xe8] sm:$0xff] }
 0x5b4   : > { %v3344_v24 = vpop.f32.mrb[76].mxu1 }
 0x5b5   : > { %3734 = vst [vmem:[%s6841_s10 + $0xa0] sm:$0xff] %v3702_v29  ;;  %v3671_v19 = vadd.f32 %v3639_v30, %v3565_v62  ;;  %v4648_v35 = vadd.f32 %v6831_v53, %v3344_v24  ;;  %v3346_v1 = vpop.f32.mrb[77].mxu1  ;;  %v3646_v29 = vld [vmem:[%s5534_s12 + $0xe0] sm:$0xff] }
 0x5b7   : > { %v3703_v33 = vmax.f32 %v3671_v19, 0.0  ;;  %v3570_v20 = vadd.f32 %v4648_v35, %v6731_v34 }
 0x5b8   : > { %v3349_v27 = vpop.f32.mrb[78].mxu1 }
 0x5b9   : > { %3735 = vst [vmem:[%s6841_s10 + $0xa8] sm:$0xff] %v3703_v33  ;;  %v3672_v14 = vadd.f32 %v3640_v7, %v3570_v20  ;;  %v4649_v2 = vadd.f32 %v6831_v53, %v3349_v27  ;;  %v3351_v59 = vpop.f32.mrb[79].mxu1  ;;  %v3649_v20 = vld [vmem:[%s5534_s12 + $0xf8] sm:$0xff] }
 0x5ba   : > { %v3648_v59 = vld [vmem:[%s5534_s12 + $0xf0] sm:$0xff] }
 0x5bb   : > { %v3704_v25 = vmax.f32 %v3672_v14, 0.0  ;;  %v3575_v46 = vadd.f32 %v4649_v2, %v6728_v56 }
 0x5bc   : > { %v3354_v10 = vpop.f32.mrb[80].mxu1 }
 0x5bd   : > { %3736 = vst [vmem:[%s6841_s10 + $0xb0] sm:$0xff] %v3704_v25  ;;  %v3673_v31 = vadd.f32 %v3641_v51, %v3575_v46  ;;  %v3356_v23 = vpop.f32.mrb[81].mxu1  ;;  %v4650_v0 = vadd.f32 %v6831_v53, %v3354_v10 }
 0x5bf   : > { %v3705_v36 = vmax.f32 %v3673_v31, 0.0 }
 0x5c0   : > { %v3359_v15 = vpop.f32.mrb[82].mxu1 }
 0x5c1   : > { %3737 = vst [vmem:[%s6841_s10 + $0xb8] sm:$0xff] %v3705_v36  ;;  %v3361_v32 = vpop.f32.mrb[83].mxu1  ;;  %v4651_v49 = vadd.f32 %v6831_v53, %v3359_v15 }
 0x5c4   : > { %v3364_v34 = vpop.f32.mrb[84].mxu1 }
 0x5c5   : > { %v3366_v8 = vpop.f32.mrb[85].mxu1  ;;  %v4652_v18 = vadd.f32 %v6831_v53, %v3364_v34 }
 0x5c8   : > { %v3369_v17 = vpop.f32.mrb[86].mxu1 }
 0x5c9   : > { %v3371_v47 = vpop.f32.mrb[87].mxu1  ;;  %v4653_v21 = vadd.f32 %v6831_v53, %v3369_v17 }
 0x5cc   : > { %v3374_v50 = vpop.f32.mrb[88].mxu1 }
 0x5cd   : > { %v3376_v58 = vpop.f32.mrb[89].mxu1  ;;  %v4654_v63 = vadd.f32 %v6831_v53, %v3374_v50 }
 0x5d0   : > { %v3379_v11 = vpop.f32.mrb[90].mxu1 }
 0x5d1   : > { %v3381_v57 = vpop.f32.mrb[91].mxu1  ;;  %v4655_v61 = vadd.f32 %v6831_v53, %v3379_v11 }
 0x5d4   : > { %v3384_v28 = vpop.f32.mrb[92].mxu1 }
 0x5d5   : > { %v3386_v56 = vpop.f32.mrb[93].mxu1  ;;  %v4656_v1 = vadd.f32 %v6831_v53, %v3384_v28 }
 0x5d8   : > { %v3389_v16 = vpop.f32.mrb[94].mxu1 }
 0x5d9   : > { %v3391_v26 = vpop.f32.mrb[95].mxu1  ;;  %v4657_v19 = vadd.f32 %v6831_v53, %v3389_v16 }
 0x5dc   : > { %v4120_v40 = vpop.f32.mrb[96].mxu1 }
 0x5dd   : > { %v3585_v39 = vadd.f32 %v4651_v49, %v4120_v40  ;;  %v3579_v41 = vpop.f32.mrb[97].mxu1 }
 0x5de   : > { %v3580_v6 = vadd.f32 %v4650_v0, %v3579_v41 }
 0x5df   : > { %v3675_v5 = vadd.f32 %v3643_v12, %v3585_v39 }
 0x5e0   : > { %v3674_v54 = vadd.f32 %v3642_v9, %v3580_v6  ;;  %v4123_v42 = vpop.f32.mrb[98].mxu1 }
 0x5e1   : > { %v3707_v43 = vmax.f32 %v3675_v5, 0.0  ;;  %v3595_v44 = vadd.f32 %v4653_v21, %v4123_v42  ;;  %v3589_v52 = vpop.f32.mrb[99].mxu1 }
 0x5e2   : > { %v3706_v45 = vmax.f32 %v3674_v54, 0.0  ;;  %v3590_v4 = vadd.f32 %v4652_v18, %v3589_v52 }
 0x5e3   : > { %3739 = vst [vmem:[%s6841_s10 + $0xc8] sm:$0xff] %v3707_v43  ;;  %v3677_v55 = vadd.f32 %v3645_v60, %v3595_v44 }
 0x5e4   : > { %3738 = vst [vmem:[%s6841_s10 + $0xc0] sm:$0xff] %v3706_v45  ;;  %v3676_v3 = vadd.f32 %v3644_v22, %v3590_v4  ;;  %v4126_v48 = vpop.f32.mrb[100].mxu1 }
 0x5e5   : > { %v3709_v37 = vmax.f32 %v3677_v55, 0.0  ;;  %v3605_v13 = vadd.f32 %v4655_v61, %v4126_v48  ;;  %v3599_v30 = vpop.f32.mrb[101].mxu1 }
 0x5e6   : > { %v3708_v62 = vmax.f32 %v3676_v3, 0.0  ;;  %v3600_v24 = vadd.f32 %v4654_v63, %v3599_v30 }
 0x5e7   : > { %3741 = vst [vmem:[%s6841_s10 + $0xd8] sm:$0xff] %v3709_v37  ;;  %v3679_v35 = vadd.f32 %v3647_v38, %v3605_v13 }
 0x5e8   : > { %3740 = vst [vmem:[%s6841_s10 + $0xd0] sm:$0xff] %v3708_v62  ;;  %v3678_v7 = vadd.f32 %v3646_v29, %v3600_v24  ;;  %v4129_v33 = vpop.f32.mrb[102].mxu1 }
 0x5e9   : > { %v3711_v27 = vmax.f32 %v3679_v35, 0.0  ;;  %v3615_v14 = vadd.f32 %v4657_v19, %v4129_v33  ;;  %v3609_v2 = vpop.f32.mrb[103].mxu1 }
 0x5ea   : > { %v3710_v51 = vmax.f32 %v3678_v7, 0.0  ;;  %v3610_v25 = vadd.f32 %v4656_v1, %v3609_v2 }
 0x5eb   : > { %3743 = vst [vmem:[%s6841_s10 + $0xe8] sm:$0xff] %v3711_v27  ;;  %v3681_v46 = vadd.f32 %v3649_v20, %v3615_v14 }
 0x5ec   : > { %3742 = vst [vmem:[%s6841_s10 + $0xe0] sm:$0xff] %v3710_v51  ;;  %v3680_v53 = vadd.f32 %v3648_v59, %v3610_v25 }
 0x5ed   : > { %v3713_v10 = vmax.f32 %v3681_v46, 0.0 }
 0x5ee   : > { %v3712_v31 = vmax.f32 %v3680_v53, 0.0 }
 0x5ef   : > { %3745 = vst [vmem:[%s6841_s10 + $0xf8] sm:$0xff] %v3713_v10 }
 0x5f0   : > { %3744 = vst [vmem:[%s6841_s10 + $0xf0] sm:$0xff] %v3712_v31 }
 0x5f1   : > { %5248 = shalt.err (!%p5245_p1)
}
 0x5f2   : > { %s5249_s12 = scalar_lea.hbm %s6960_s11, 4096  ;;  %s5253_s15 = scalar_lea.hbm %s7013_s5, 8192 }
 0x5f3   : > { %p5250_p13 = scmp.ne.s32.totalorder %s6960_s11, %s5249_s12  ;;  %p5254_p4 = scmp.lt.u32.totalorder %s6960_s11, %s7013_s5 }
 0x5f4   : > { %p5255_p5 = scmp.lt.u32.totalorder %s5253_s15, %s5249_s12  ;;  %p5257_p11 = scmp.lt.u32.totalorder %s5249_s12, %s6960_s11 }
 0x5f5   : > { %p5251_p6 = pnand %p5250_p13, %p7098_p0 }
 0x5f6   : > { %p5256_p8 = por %p5255_p5, %p5254_p4 }
 0x5f7   : > { %p5252_p10 = pneg %p5251_p6 }
 0x5f8   : > { %p5258_p2 = por %p5257_p11, %p5256_p8 }
 0x5fa   : > { %p5259_p3 = pnand %p5258_p2, %p5252_p10 }
 0x5fc   : > { %5262 = shalt.err (!%p5259_p3)
}
 0x5fd   : > { %s5315_s28 = smov 128   ;;  %s5316_s9 = smov 8  }
 0x5fe   : > { %5052 = dma.vmem_to_hbm [thread:$0]  (%p7098_p0), %s6962_s13, 4096, %s6960_s11, %s3747_s22, %s5315_s28, %s5315_s28, %s5316_s9  }
 0x5ff PF: > { %s3775_s30 = sand.u32 1, %s5293_s18   ;;  %p7099_p7 = scmp.ne.s32.totalorder %s7050_s25, 0 }
 0x600   : > { %p7100_p9 = scmp.ge.s32.totalorder %s5305_s21, 2  ;;  %s3776_s17 = scalar_lea.sflag [#allocation6], %s3775_s30 }
 0x602   : > { %p5066_p12 = pnand %p7100_p9, %p7099_p7 }
 0x604   : > { %5288 = dma.done.wait (!%p5066_p12), %s3776_s17, 4096  }
 0x605   : > { %5290 = vsyncadd (!%p5066_p12), %s3776_s17, 4294963200  ;;  %p19_p1 = scmp.ge.s32.totalorder %s5463_s29, 4   ;;  %s7101_s18 = smov %s5297_s19 }
 0x606   : > { %s7102_s19 = smov %s5301_s20  ;;  %s7103_s20 = smov %s5479_s27 }
 0x607   : > { %s7104_s21 = smov %s5463_s29  ;;  %21 = sbr.rel (!%p19_p1) target bundleno = 6 (0x6), region = 99 }
 0x60e   :  { %3781 = vsyncpa [#allocation5], 1 }
 0x60f   :  { %3783 = vsyncpa [#allocation5 + $0x1], 1 }
 0x610   :  { %3784 = vsyncpa [#allocation8], 1 }
 0x611   :  { %3785 = vsyncpa [#allocation6], 1 }
 0x612   :  { %3787 = vsyncpa [#allocation6 + $0x1], 1 }

</bundles_post_ra>
